<compile_context>
chip_gen: v5e
topology: v5e:2x2
jax: 0.10.0
libtpu: 0.0.40
codegen_flags: <defaults>
</compile_context>

<pallas_src>
import jax
import jax.numpy as jnp
import numpy as np
from jax.experimental import pallas as pl
from jax.experimental.pallas import tpu as pltpu


def _round_up(x, m):
    return (x + m - 1) // m * m


# ----------------------------------------------------------------------------
# Kernel bodies: five (pre-folded) linear layers, ReLU on the first four.
# Activations never leave VMEM/vregs; only the requested outputs are written.
# ----------------------------------------------------------------------------
def _mlp_chain(x_ref, wb_refs):
    """Returns (last_hidden_after_relu_f32, logits_f32) for the current tile."""
    h = x_ref[...]                                # [tm, 784] bf16
    n = len(wb_refs)
    last_hidden = None
    out = None
    for idx, (w_ref, b_ref) in enumerate(wb_refs):
        y = jnp.dot(h.astype(w_ref.dtype), w_ref[...],
                    preferred_element_type=jnp.float32) + b_ref[...]
        if idx < n - 1:
            h = jnp.maximum(y, 0.0)
            last_hidden = h
        else:
            out = y
    return last_hidden, out


def mlp_kernel_logits(x_ref, w1, b1, w2, b2, w3, b3, w4, b4, w5, b5, out_ref):
    _, out = _mlp_chain(x_ref, ((w1, b1), (w2, b2), (w3, b3), (w4, b4), (w5, b5)))
    out_ref[...] = out.astype(out_ref.dtype)


def mlp_kernel_feat(x_ref, w1, b1, w2, b2, w3, b3, w4, b4, w5, b5, feat_ref, out_ref):
    h4, out = _mlp_chain(x_ref, ((w1, b1), (w2, b2), (w3, b3), (w4, b4), (w5, b5)))
    feat_ref[...] = h4.astype(feat_ref.dtype)     # last hidden feature (ReLU'd)
    out_ref[...] = out.astype(out_ref.dtype)


def fused_discriminator(x_bf16, folded, *, tm, with_feature):
    """x_bf16: [B, 784] bf16.  folded: list of (w_bf16 [Kp, Np], b_f32 [1, Np])."""
    B, D0 = x_bf16.shape
    grid = (pl.cdiv(B, tm),)                      # partial last tile handled by Pallas

    in_specs = [pl.BlockSpec((tm, D0), lambda i: (i, 0))]
    args = [x_bf16]
    for (w, b) in folded:
        din, dout = w.shape
        # Constant block index -> weights/biases DMA'd once, resident across tiles.
        in_specs.append(pl.BlockSpec((din, dout), lambda i: (0, 0)))
        in_specs.append(pl.BlockSpec((1, dout), lambda i: (0, 0)))
        args += [w, b]

    feat_dim = folded[-2][0].shape[1]             # padded output dim of layer 4 (256)
    out_dim = folded[-1][0].shape[1]              # padded output dim of final layer (128)

    flops = 2 * B * sum(int(w.shape[0]) * int(w.shape[1]) for w, _ in folded)
    bytes_accessed = (int(x_bf16.size) * 2
                      + sum(int(w.size) * 2 + int(b.size) * 4 for w, b in folded)
                      + B * out_dim * 4
                      + (B * feat_dim * 4 if with_feature else 0))

    if with_feature:
        out_shape = (jax.ShapeDtypeStruct((B, feat_dim), jnp.float32),
                     jax.ShapeDtypeStruct((B, out_dim), jnp.float32))
        out_specs = (pl.BlockSpec((tm, feat_dim), lambda i: (i, 0)),
                     pl.BlockSpec((tm, out_dim), lambda i: (i, 0)))
        kernel = mlp_kernel_feat
    else:
        out_shape = jax.ShapeDtypeStruct((B, out_dim), jnp.float32)
        out_specs = pl.BlockSpec((tm, out_dim), lambda i: (i, 0))
        kernel = mlp_kernel_logits

    return pl.pallas_call(
        kernel,
        out_shape=out_shape,
        grid=grid,
        in_specs=in_specs,
        out_specs=out_specs,
        compiler_params=pltpu.CompilerParams(
            dimension_semantics=("parallel",),        # shard batch tiles across TCs
            vmem_limit_bytes=48 * 1024 * 1024),       # headroom for 512-row tiles
        cost_estimate=pl.CostEstimate(flops=int(flops), transcendentals=0,
                                      bytes_accessed=int(bytes_accessed)),
    )(*args)


# ----------------------------------------------------------------------------
# Parameters.
# `v` is stored as [Din, Dout] (transposed from PyTorch's [out, in]); weight_norm
# with dim=0 (per-output-row norm) is therefore a reduction over axis=0 of v.
# ----------------------------------------------------------------------------
def init_params(key, input_dim=28 * 28, output_dim=10):
    dims = [input_dim, 1000, 500, 250, 250, output_dim]
    params = []
    for i in range(len(dims) - 1):
        din, dout = dims[i], dims[i + 1]
        key, kv = jax.random.split(key)
        v = jax.random.normal(kv, (din, dout), jnp.float32) * (1.0 / np.sqrt(din))
        g = jnp.sqrt(jnp.sum(v * v, axis=0, keepdims=True))   # [1, dout] (torch WN init)
        b = jnp.zeros((1, dout), jnp.float32)
        params.append((v, g, b))
    return params


def fold_and_pad_params(params, weight_dtype=jnp.bfloat16):
    """Eval-path prep, done ONCE outside the kernel: fold the weight-norm scale
    into the weights, zero-pad output dims to multiples of 128, cast to bf16.
    Layer 0 keeps K=784 (matches the raw input, so x is never padded); later K
    dims are padded to the previous layer's (zero-filled) padded output width."""
    folded = []
    for li, (v, g, b) in enumerate(params):
        norm = jnp.sqrt(jnp.sum(v * v, axis=0, keepdims=True))   # [1, Dout]
        w = v * (g / norm)                                       # effective weight, f32
        din, dout = w.shape
        din_p = din if li == 0 else _round_up(din, 128)
        dout_p = _round_up(dout, 128)
        w_p = jnp.zeros((din_p, dout_p), jnp.float32).at[:din, :dout].set(w)
        b_p = jnp.zeros((1, dout_p), jnp.float32).at[:, :dout].set(b)
        folded.append((w_p.astype(weight_dtype), b_p))
    return folded


# ----------------------------------------------------------------------------
# Forward pass (eval mode).
# ----------------------------------------------------------------------------
def discriminator_forward(x, params, folded=None, feature=False):
    if folded is None:
        folded = fold_and_pad_params(params)
    input_dim = params[0][0].shape[0]
    output_dim = params[-1][0].shape[1]
    feat_dim = params[-2][0].shape[1]

    # x.view(-1, input_dimension); eval mode: noise = Tensor([0]) -> x + 0, omitted.
    # TODO(synk): training-mode Gaussian noise injection not implemented (eval path only).
    x2 = x.reshape(-1, input_dim).astype(jnp.bfloat16)   # single fused reshape+cast
    B = x2.shape[0]

    # Batch tiling: whole batch in one tile when small (weight-DMA-bound regime),
    # 256-row tiles for medium batches (matches 256x256 MXU, >=2 tiles for v7x's
    # two TensorCores), 512-row tiles for large batches (amortizes per-step
    # pipeline overhead; ~15 MiB VMEM footprint).
    if B <= 256:
        tm = B
    elif B < 1024:
        tm = 256
    else:
        tm = 512

    if feature:
        feat_p, out_p = fused_discriminator(x2, folded, tm=tm, with_feature=True)
        return feat_p[:, :feat_dim], out_p[:, :output_dim]
    out_p = fused_discriminator(x2, folded, tm=tm, with_feature=False)
    return out_p[:, :output_dim]


# ----------------------------------------------------------------------------
# References.
# ----------------------------------------------------------------------------
def reference_forward(x, params):
    """Pure f32 reference (exact module semantics, eval mode)."""
    input_dim = params[0][0].shape[0]
    x = x.reshape(-1, input_dim).astype(jnp.float32)
    for (v, g, b) in params[:-1]:
        norm = jnp.sqrt(jnp.sum(v * v, axis=0, keepdims=True))
        x = jnp.maximum(x @ (v * (g / norm)) + b, 0.0)
    v, g, b = params[-1]
    norm = jnp.sqrt(jnp.sum(v * v, axis=0, keepdims=True))
    return x @ (v * (g / norm)) + b


def reference_forward_bf16(x, params):
    """Same arithmetic as the kernel (bf16 weights/activations, f32 accumulate)."""
    input_dim = params[0][0].shape[0]
    h = x.reshape(-1, input_dim).astype(jnp.float32)
    for i, (v, g, b) in enumerate(params):
        norm = jnp.sqrt(jnp.sum(v * v, axis=0, keepdims=True))
        w = (v * (g / norm)).astype(jnp.bfloat16)
        y = jnp.dot(h.astype(jnp.bfloat16), w,
                    preferred_element_type=jnp.float32) + b
        h = jnp.maximum(y, 0.0) if i < len(params) - 1 else y
    return h


if __name__ == "__main__":
    key = jax.random.PRNGKey(0)
    key, kx = jax.random.split(key)

    params = init_params(key, input_dim=28 * 28, output_dim=10)
    folded = fold_and_pad_params(params)   # computed once (cached outside the kernel)

    # --- Small batch, MNIST-like input: [B, 1, 28, 28] -> flattened to [B, 784]. ---
    B = 4
    x = jax.random.normal(kx, (B, 1, 28, 28), jnp.float32)

    out = discriminator_forward(x, params, folded=folded)
    out = jax.block_until_ready(out)
    assert out.shape == (B, 10)

    # Tight check against a JAX reference using identical bf16 arithmetic.
    ref_bf16 = reference_forward_bf16(x, params)
    np.testing.assert_allclose(np.asarray(out), np.asarray(ref_bf16),
                               rtol=2e-3, atol=2e-3)
    # Looser check against the full-f32 reference (bf16 weight quantization).
    ref_f32 = reference_forward(x, params)
    np.testing.assert_allclose(np.asarray(out), np.asarray(ref_f32),
                               rtol=5e-2, atol=5e-2)

    # feature=True path.
    feat, out2 = discriminator_forward(x, params, folded=folded, feature=True)
    feat, out2 = jax.block_until_ready((feat, out2))
    assert feat.shape == (B, 250) and out2.shape == (B, 10)
    np.testing.assert_allclose(np.asarray(out2), np.asarray(out), rtol=1e-6, atol=1e-6)

    # --- Multi-tile path (256-row tiles + partial boundary tile). ---
    key, kx2 = jax.random.split(key)
    B2 = 300
    x_big = jax.random.normal(kx2, (B2, 784), jnp.float32)
    out_big = jax.block_until_ready(discriminator_forward(x_big, params, folded=folded))
    assert out_big.shape == (B2, 10)
    ref_big = reference_forward_bf16(x_big, params)
    np.testing.assert_allclose(np.asarray(out_big), np.asarray(ref_big),
                               rtol=2e-3, atol=2e-3)

    print("KERNEL_OK")
</pallas_src>

<mosaic_0001>
module attributes {stable_mosaic.version = 11 : i64} {
  func.func @mlp_kernel_logits(%arg0: i32, %arg1: memref<4x784xbf16, #tpu.memory_space<vmem>>, %arg2: memref<784x1024xbf16, #tpu.memory_space<vmem>>, %arg3: memref<1x1024xf32, #tpu.memory_space<vmem>>, %arg4: memref<1024x512xbf16, #tpu.memory_space<vmem>>, %arg5: memref<1x512xf32, #tpu.memory_space<vmem>>, %arg6: memref<512x256xbf16, #tpu.memory_space<vmem>>, %arg7: memref<1x256xf32, #tpu.memory_space<vmem>>, %arg8: memref<256x256xbf16, #tpu.memory_space<vmem>>, %arg9: memref<1x256xf32, #tpu.memory_space<vmem>>, %arg10: memref<256x128xbf16, #tpu.memory_space<vmem>>, %arg11: memref<1x128xf32, #tpu.memory_space<vmem>>, %arg12: memref<4x128xf32, #tpu.memory_space<vmem>>) attributes {dimension_semantics = [#tpu.dimension_semantics<parallel>], iteration_bounds = array<i64: 1>, scalar_prefetch = 0 : i64, scratch_operands = 0 : i64, tpu.core_type = #tpu.core_type<tc>, window_params = [{transform_indices = @transform_0, window_bounds = array<i64: 4, 784>}, {pipeline_mode = #tpu.pipeline_mode<synchronous>, transform_indices = @transform_1, window_bounds = array<i64: 784, 1024>}, {pipeline_mode = #tpu.pipeline_mode<synchronous>, transform_indices = @transform_2, window_bounds = array<i64: 1, 1024>}, {pipeline_mode = #tpu.pipeline_mode<synchronous>, transform_indices = @transform_3, window_bounds = array<i64: 1024, 512>}, {pipeline_mode = #tpu.pipeline_mode<synchronous>, transform_indices = @transform_4, window_bounds = array<i64: 1, 512>}, {pipeline_mode = #tpu.pipeline_mode<synchronous>, transform_indices = @transform_5, window_bounds = array<i64: 512, 256>}, {pipeline_mode = #tpu.pipeline_mode<synchronous>, transform_indices = @transform_6, window_bounds = array<i64: 1, 256>}, {pipeline_mode = #tpu.pipeline_mode<synchronous>, transform_indices = @transform_7, window_bounds = array<i64: 256, 256>}, {pipeline_mode = #tpu.pipeline_mode<synchronous>, transform_indices = @transform_8, window_bounds = array<i64: 1, 256>}, {pipeline_mode = #tpu.pipeline_mode<synchronous>, transform_indices = @transform_9, window_bounds = array<i64: 256, 128>}, {pipeline_mode = #tpu.pipeline_mode<synchronous>, transform_indices = @transform_10, window_bounds = array<i64: 1, 128>}, {transform_indices = @transform_11, window_bounds = array<i64: 4, 128>}]} {
    %c0 = arith.constant 0 : index
    %c0_0 = arith.constant 0 : index
    %0 = vector.load %arg1[%c0, %c0_0] : memref<4x784xbf16, #tpu.memory_space<vmem>>, vector<4x784xbf16>
    %c0_1 = arith.constant 0 : index
    %c0_2 = arith.constant 0 : index
    %1 = vector.load %arg2[%c0_1, %c0_2] : memref<784x1024xbf16, #tpu.memory_space<vmem>>, vector<784x1024xbf16>
    %cst = arith.constant dense<0.000000e+00> : vector<4x1024xf32>
    %2 = tpu.matmul %0, %1, %cst {dimension_numbers = #tpu.dot_dimension_numbers<[1], [0], [0], [1], [0, 0, 1, 1], [], []>} : vector<4x784xbf16>, vector<784x1024xbf16>, vector<4x1024xf32> -> vector<4x1024xf32>
    %c0_3 = arith.constant 0 : index
    %c0_4 = arith.constant 0 : index
    %3 = vector.load %arg3[%c0_3, %c0_4] : memref<1x1024xf32, #tpu.memory_space<vmem>>, vector<1x1024xf32>
    %4 = vector.broadcast %3 : vector<1x1024xf32> to vector<4x1024xf32>
    %5 = arith.addf %2, %4 : vector<4x1024xf32>
    %cst_5 = arith.constant 0.000000e+00 : f32
    %6 = vector.broadcast %cst_5 : f32 to vector<4x1024xf32>
    %7 = arith.maximumf %5, %6 : vector<4x1024xf32>
    %8 = arith.truncf %7 : vector<4x1024xf32> to vector<4x1024xbf16>
    %c0_6 = arith.constant 0 : index
    %c0_7 = arith.constant 0 : index
    %9 = vector.load %arg4[%c0_6, %c0_7] : memref<1024x512xbf16, #tpu.memory_space<vmem>>, vector<1024x512xbf16>
    %cst_8 = arith.constant dense<0.000000e+00> : vector<4x512xf32>
    %10 = tpu.matmul %8, %9, %cst_8 {dimension_numbers = #tpu.dot_dimension_numbers<[1], [0], [0], [1], [0, 0, 1, 1], [], []>} : vector<4x1024xbf16>, vector<1024x512xbf16>, vector<4x512xf32> -> vector<4x512xf32>
    %c0_9 = arith.constant 0 : index
    %c0_10 = arith.constant 0 : index
    %11 = vector.load %arg5[%c0_9, %c0_10] : memref<1x512xf32, #tpu.memory_space<vmem>>, vector<1x512xf32>
    %12 = vector.broadcast %11 : vector<1x512xf32> to vector<4x512xf32>
    %13 = arith.addf %10, %12 : vector<4x512xf32>
    %cst_11 = arith.constant 0.000000e+00 : f32
    %14 = vector.broadcast %cst_11 : f32 to vector<4x512xf32>
    %15 = arith.maximumf %13, %14 : vector<4x512xf32>
    %16 = arith.truncf %15 : vector<4x512xf32> to vector<4x512xbf16>
    %c0_12 = arith.constant 0 : index
    %c0_13 = arith.constant 0 : index
    %17 = vector.load %arg6[%c0_12, %c0_13] : memref<512x256xbf16, #tpu.memory_space<vmem>>, vector<512x256xbf16>
    %cst_14 = arith.constant dense<0.000000e+00> : vector<4x256xf32>
    %18 = tpu.matmul %16, %17, %cst_14 {dimension_numbers = #tpu.dot_dimension_numbers<[1], [0], [0], [1], [0, 0, 1, 1], [], []>} : vector<4x512xbf16>, vector<512x256xbf16>, vector<4x256xf32> -> vector<4x256xf32>
    %c0_15 = arith.constant 0 : index
    %c0_16 = arith.constant 0 : index
    %19 = vector.load %arg7[%c0_15, %c0_16] : memref<1x256xf32, #tpu.memory_space<vmem>>, vector<1x256xf32>
    %20 = vector.broadcast %19 : vector<1x256xf32> to vector<4x256xf32>
    %21 = arith.addf %18, %20 : vector<4x256xf32>
    %cst_17 = arith.constant 0.000000e+00 : f32
    %22 = vector.broadcast %cst_17 : f32 to vector<4x256xf32>
    %23 = arith.maximumf %21, %22 : vector<4x256xf32>
    %24 = arith.truncf %23 : vector<4x256xf32> to vector<4x256xbf16>
    %c0_18 = arith.constant 0 : index
    %c0_19 = arith.constant 0 : index
    %25 = vector.load %arg8[%c0_18, %c0_19] : memref<256x256xbf16, #tpu.memory_space<vmem>>, vector<256x256xbf16>
    %cst_20 = arith.constant dense<0.000000e+00> : vector<4x256xf32>
    %26 = tpu.matmul %24, %25, %cst_20 {dimension_numbers = #tpu.dot_dimension_numbers<[1], [0], [0], [1], [0, 0, 1, 1], [], []>} : vector<4x256xbf16>, vector<256x256xbf16>, vector<4x256xf32> -> vector<4x256xf32>
    %c0_21 = arith.constant 0 : index
    %c0_22 = arith.constant 0 : index
    %27 = vector.load %arg9[%c0_21, %c0_22] : memref<1x256xf32, #tpu.memory_space<vmem>>, vector<1x256xf32>
    %28 = vector.broadcast %27 : vector<1x256xf32> to vector<4x256xf32>
    %29 = arith.addf %26, %28 : vector<4x256xf32>
    %cst_23 = arith.constant 0.000000e+00 : f32
    %30 = vector.broadcast %cst_23 : f32 to vector<4x256xf32>
    %31 = arith.maximumf %29, %30 : vector<4x256xf32>
    %32 = arith.truncf %31 : vector<4x256xf32> to vector<4x256xbf16>
    %c0_24 = arith.constant 0 : index
    %c0_25 = arith.constant 0 : index
    %33 = vector.load %arg10[%c0_24, %c0_25] : memref<256x128xbf16, #tpu.memory_space<vmem>>, vector<256x128xbf16>
    %cst_26 = arith.constant dense<0.000000e+00> : vector<4x128xf32>
    %34 = tpu.matmul %32, %33, %cst_26 {dimension_numbers = #tpu.dot_dimension_numbers<[1], [0], [0], [1], [0, 0, 1, 1], [], []>} : vector<4x256xbf16>, vector<256x128xbf16>, vector<4x128xf32> -> vector<4x128xf32>
    %c0_27 = arith.constant 0 : index
    %c0_28 = arith.constant 0 : index
    %35 = vector.load %arg11[%c0_27, %c0_28] : memref<1x128xf32, #tpu.memory_space<vmem>>, vector<1x128xf32>
    %36 = vector.broadcast %35 : vector<1x128xf32> to vector<4x128xf32>
    %37 = arith.addf %34, %36 : vector<4x128xf32>
    %c0_29 = arith.constant 0 : index
    %c0_30 = arith.constant 0 : index
    %38 = vector.load %arg12[%c0_29, %c0_30] : memref<4x128xf32, #tpu.memory_space<vmem>>, vector<4x128xf32>
    tpu.vector_store %arg12[%c0_29, %c0_30], %37 {strides = array<i32>} : memref<4x128xf32, #tpu.memory_space<vmem>>, vector<4x128xf32>,
    return
  }
  func.func @transform_0(%arg0: i32) -> (i32, i32) {
    %c0_i32 = arith.constant 0 : i32
    %c0_i32_0 = arith.constant 0 : i32
    return %arg0, %c0_i32 : i32, i32
  }
  func.func @transform_1(%arg0: i32) -> (i32, i32) {
    %c0_i32 = arith.constant 0 : i32
    %c0_i32_0 = arith.constant 0 : i32
    %c0_i32_1 = arith.constant 0 : i32
    return %c0_i32, %c0_i32_0 : i32, i32
  }
  func.func @transform_2(%arg0: i32) -> (i32, i32) {
    %c0_i32 = arith.constant 0 : i32
    %c0_i32_0 = arith.constant 0 : i32
    %c0_i32_1 = arith.constant 0 : i32
    return %c0_i32, %c0_i32_0 : i32, i32
  }
  func.func @transform_3(%arg0: i32) -> (i32, i32) {
    %c0_i32 = arith.constant 0 : i32
    %c0_i32_0 = arith.constant 0 : i32
    %c0_i32_1 = arith.constant 0 : i32
    return %c0_i32, %c0_i32_0 : i32, i32
  }
  func.func @transform_4(%arg0: i32) -> (i32, i32) {
    %c0_i32 = arith.constant 0 : i32
    %c0_i32_0 = arith.constant 0 : i32
    %c0_i32_1 = arith.constant 0 : i32
    return %c0_i32, %c0_i32_0 : i32, i32
  }
  func.func @transform_5(%arg0: i32) -> (i32, i32) {
    %c0_i32 = arith.constant 0 : i32
    %c0_i32_0 = arith.constant 0 : i32
    %c0_i32_1 = arith.constant 0 : i32
    return %c0_i32, %c0_i32_0 : i32, i32
  }
  func.func @transform_6(%arg0: i32) -> (i32, i32) {
    %c0_i32 = arith.constant 0 : i32
    %c0_i32_0 = arith.constant 0 : i32
    %c0_i32_1 = arith.constant 0 : i32
    return %c0_i32, %c0_i32_0 : i32, i32
  }
  func.func @transform_7(%arg0: i32) -> (i32, i32) {
    %c0_i32 = arith.constant 0 : i32
    %c0_i32_0 = arith.constant 0 : i32
    %c0_i32_1 = arith.constant 0 : i32
    return %c0_i32, %c0_i32_0 : i32, i32
  }
  func.func @transform_8(%arg0: i32) -> (i32, i32) {
    %c0_i32 = arith.constant 0 : i32
    %c0_i32_0 = arith.constant 0 : i32
    %c0_i32_1 = arith.constant 0 : i32
    return %c0_i32, %c0_i32_0 : i32, i32
  }
  func.func @transform_9(%arg0: i32) -> (i32, i32) {
    %c0_i32 = arith.constant 0 : i32
    %c0_i32_0 = arith.constant 0 : i32
    %c0_i32_1 = arith.constant 0 : i32
    return %c0_i32, %c0_i32_0 : i32, i32
  }
  func.func @transform_10(%arg0: i32) -> (i32, i32) {
    %c0_i32 = arith.constant 0 : i32
    %c0_i32_0 = arith.constant 0 : i32
    %c0_i32_1 = arith.constant 0 : i32
    return %c0_i32, %c0_i32_0 : i32, i32
  }
  func.func @transform_11(%arg0: i32) -> (i32, i32) {
    %c0_i32 = arith.constant 0 : i32
    %c0_i32_0 = arith.constant 0 : i32
    return %arg0, %c0_i32 : i32, i32
  }
}

</mosaic_0001>

<bundles_post_ra>
// kernel: tpu_custom_call.1
= control target key start
LH: loop header
LB: loop body
LE: loop exit
PB: predicated region body
PF: predicated region fallthrough
CT: control target
= control target key end

     0   :  { %16 = vsyncpa [#allocation3], 0  ;;  %s10817_s0 = inlined_call_operand.hbm [shape: bf16[4,784], index: 0, kind: input, shape index: {}]   ;;  %s10818_s1 = inlined_call_operand.hbm [shape: bf16[784,1024], index: 1, kind: input, shape index: {}]   ;;  %s10819_s2 = inlined_call_operand.hbm [shape: f32[1,1024], index: 2, kind: input, shape index: {}]   ;;  %s10820_s3 = inlined_call_operand.hbm [shape: bf16[1024,512], index: 3, kind: input, shape index: {}]   ;;  %s10821_s4 = inlined_call_operand.hbm [shape: f32[1,512], index: 4, kind: input, shape index: {}]   ;;  %s10822_s5 = inlined_call_operand.hbm [shape: bf16[512,256], index: 5, kind: input, shape index: {}]   ;;  %s10823_s6 = inlined_call_operand.hbm [shape: f32[1,256], index: 6, kind: input, shape index: {}]   ;;  %s10824_s7 = inlined_call_operand.hbm [shape: bf16[256,256], index: 7, kind: input, shape index: {}]   ;;  %s10825_s8 = inlined_call_operand.hbm [shape: f32[1,256], index: 8, kind: input, shape index: {}]   ;;  %s10826_s9 = inlined_call_operand.hbm [shape: bf16[256,128], index: 9, kind: input, shape index: {}]   ;;  %s10827_s10 = inlined_call_operand.hbm [shape: f32[1,128], index: 10, kind: input, shape index: {}]   ;;  %s10828_s11 = inlined_call_operand.hbm [shape: f32[4,128], index: 11, kind: output, shape index: {}]  }
   0x1   :  { %17 = vsyncpa [#allocation6], 0 }
   0x2   :  { %18 = vsyncpa [#allocation9], 0 }
   0x3   :  { %19 = vsyncpa [#allocation12], 0 }
   0x4   :  { %20 = vsyncpa [#allocation15], 0 }
   0x5   :  { %21 = vsyncpa [#allocation18], 0  ;;  %s38_s19 = sshll.u32 %s10818_s1, 4  ;;  %s39_s19 = int_to_ptr.hbm [resolvable:$true] %s38_s19 }
   0x6   :  { %22 = vsyncpa [#allocation4], 0  ;;  %s10387_s20 = smov [#allocation5]   ;;  %s62_s24 = sshll.u32 %s10820_s3, 4  ;;  %s63_s24 = int_to_ptr.hbm [resolvable:$true] %s62_s24 }
   0x7   :  { %s40_s21 = sshll.u32 %s10387_s20, 4  ;;  %s10388_s25 = smov 512   ;;  %s41_s21 = int_to_ptr.vmem [resolvable:$true] %s40_s21 }
   0x8   :  { %s10389_s26 = smov 32   ;;  %s10390_s27 = smov [#allocation8]  }
   0x9   :  { %46 = dma.hbm_to_vmem [thread:$0]  %s39_s19, 50176, %s41_s21, [#allocation6], %s10388_s25, %s10388_s25, %s10389_s26  }
   0xa   :  { %s64_s28 = sshll.u32 %s10390_s27, 4  ;;  %s10391_s29 = smov 256   ;;  %s65_s28 = int_to_ptr.vmem [resolvable:$true] %s64_s28 }
   0xb   :  { %s10392_s30 = smov 16   ;;  %s86_s13 = sshll.u32 %s10822_s5, 4  ;;  %s87_s13 = int_to_ptr.hbm [resolvable:$true] %s86_s13 }
   0xc   :  { %70 = dma.hbm_to_vmem [thread:$0]  %s63_s24, 32768, %s65_s28, [#allocation9], %s10391_s29, %s10391_s29, %s10392_s30  }
   0xd   :  { %s10393_s14 = smov [#allocation11]   ;;  %s110_s17 = sshll.u32 %s10824_s7, 4  ;;  %s111_s17 = int_to_ptr.hbm [resolvable:$true] %s110_s17 }
   0xe   :  { %s88_s15 = sshll.u32 %s10393_s14, 4  ;;  %s10394_s18 = smov 128   ;;  %s89_s15 = int_to_ptr.vmem [resolvable:$true] %s88_s15 }
   0xf   :  { %s10395_s19 = smov 8   ;;  %s10396_s20 = smov [#allocation14]  }
  0x10   :  { %94 = dma.hbm_to_vmem [thread:$0]  %s87_s13, 8192, %s89_s15, [#allocation12], %s10394_s18, %s10394_s18, %s10395_s19  }
  0x11   :  { %s112_s21 = sshll.u32 %s10396_s20, 4  ;;  %s134_s24 = sshll.u32 %s10826_s9, 4  ;;  %s113_s21 = int_to_ptr.vmem [resolvable:$true] %s112_s21  ;;  %s135_s24 = int_to_ptr.hbm [resolvable:$true] %s134_s24 }
  0x12   :  { %118 = dma.hbm_to_vmem [thread:$0]  %s111_s17, 4096, %s113_s21, [#allocation15], %s10394_s18, %s10394_s18, %s10395_s19  }
  0x13   :  { %s10397_s5 = smov [#allocation17]   ;;  %s28_s7 = sshll.u32 %s10817_s0, 4  ;;  %s29_s7 = int_to_ptr.hbm [resolvable:$true] %s28_s7 }
  0x14   :  { %s136_s25 = sshll.u32 %s10397_s5, 4  ;;  %s10398_s28 = smov 64   ;;  %s137_s25 = int_to_ptr.vmem [resolvable:$true] %s136_s25 }
  0x15   :  { %s10399_s29 = smov 4   ;;  %s10400_s30 = smov [#allocation2]  }
  0x16   :  { %142 = dma.hbm_to_vmem [thread:$0]  %s135_s24, 2048, %s137_s25, [#allocation18], %s10398_s28, %s10398_s28, %s10399_s29  }
  0x17   :  { %s30_s1 = sshll.u32 %s10400_s30, 4  ;;  %s52_s9 = sshll.u32 %s10819_s2, 4  ;;  %s31_s1 = int_to_ptr.vmem [resolvable:$true] %s30_s1  ;;  %s53_s9 = int_to_ptr.hbm [resolvable:$true] %s52_s9 }
  0x18   :  { %33 = dma.hbm_to_vmem [thread:$0]  %s29_s7, 224, %s31_s1, [#allocation3]  }
  0x19   :  { %s76_s16 = sshll.u32 %s10821_s4, 4  ;;  %s10401_s3 = smov [#allocation7]   ;;  %s77_s16 = int_to_ptr.hbm [resolvable:$true] %s76_s16 }
  0x1a   :  { %s54_s17 = sshll.u32 %s10401_s3, 4  ;;  %s10402_s0 = smov [#allocation10]   ;;  %s55_s17 = int_to_ptr.vmem [resolvable:$true] %s54_s17 }
  0x1b   :  { %57 = dma.hbm_to_vmem [thread:$0]  %s53_s9, 128, %s55_s17, [#allocation6]  }
  0x1c   :  { %s78_s18 = sshll.u32 %s10402_s0, 4  ;;  %s100_s21 = sshll.u32 %s10823_s6, 4  ;;  %s79_s18 = int_to_ptr.vmem [resolvable:$true] %s78_s18  ;;  %s101_s21 = int_to_ptr.hbm [resolvable:$true] %s100_s21 }
  0x1d   :  { %81 = dma.hbm_to_vmem [thread:$0]  %s77_s16, 64, %s79_s18, [#allocation9]  }
  0x1e   :  { %s124_s23 = sshll.u32 %s10825_s8, 4  ;;  %s10403_s24 = smov [#allocation13]   ;;  %s125_s23 = int_to_ptr.hbm [resolvable:$true] %s124_s23 }
  0x1f   :  { %s102_s4 = sshll.u32 %s10403_s24, 4  ;;  %s10404_s5 = smov [#allocation16]   ;;  %s103_s4 = int_to_ptr.vmem [resolvable:$true] %s102_s4 }
  0x20   :  { %105 = dma.hbm_to_vmem [thread:$0]  %s101_s21, 32, %s103_s4, [#allocation12]  }
  0x21   :  { %s126_s25 = sshll.u32 %s10404_s5, 4  ;;  %s148_s7 = sshll.u32 %s10827_s10, 4  ;;  %s127_s25 = int_to_ptr.vmem [resolvable:$true] %s126_s25  ;;  %s149_s7 = int_to_ptr.hbm [resolvable:$true] %s148_s7 }
  0x22   :  { %129 = dma.hbm_to_vmem [thread:$0]  %s125_s23, 32, %s127_s25, [#allocation15]  }
  0x23   :  { %s10405_s6 = smov [#allocation19]  }
  0x24   :  { %s150_s28 = sshll.u32 %s10405_s6, 4  ;;  %s151_s28 = int_to_ptr.vmem [resolvable:$true] %s150_s28 }
  0x25   :  { %153 = dma.hbm_to_vmem [thread:$0]  %s149_s7, 16, %s151_s28, [#allocation18]  }
  0x26   :  { %10373 = dma.done.wait [#allocation3], 224  }
  0x27   :  { %10374 = vsyncadd [#allocation3], 4294967072 }
  0x28   :  { %10375 = dma.done.wait [#allocation6], 50304  }
  0x29   :  { %10376 = vsyncadd [#allocation6], 4294916992 }
  0x2a   :  { %10377 = dma.done.wait [#allocation9], 32832  }
  0x2b   :  { %10378 = vsyncadd [#allocation9], 4294934464 }
  0x2c   :  { %10379 = dma.done.wait [#allocation12], 8224  }
  0x2d   :  { %10380 = vsyncadd [#allocation12], 4294959072 }
  0x2e   :  { %10381 = dma.done.wait [#allocation15], 4128  }
  0x2f   :  { %10382 = vsyncadd [#allocation15], 4294963168 }
  0x30   :  { %10383 = dma.done.wait [#allocation18], 2064  }
  0x31   :  { %10384 = vsyncadd [#allocation18], 4294965232  ;;  %v6465_v0 = vld [vmem:[#allocation5 + $0x1c0] sm:$0xf]  ;;  %vm2589_vm0 = vcmask 130048   ;;  %s10406_s8 = smov [#allocation20]  }
  0x32   :  { %v9347_v1 = vld [vmem:[#allocation5 + $0x1dc] sm:$0xf0]  ;;  %s6222_s10 = sshll.u32 %s10406_s8, 4  ;;  %s6224_s1 = sshll.u32 %s10828_s11, 4  ;;  %s6223_s10 = int_to_ptr.vmem [resolvable:$true] %s6222_s10  ;;  %s6225_s1 = int_to_ptr.hbm [resolvable:$true] %s6224_s1 }
  0x33   :  { %v6721_v2 = vld [vmem:[#allocation5 + $0x3c0] sm:$0xf]  ;;  %v6466_v3 = vor.u32 %v9347_v1, %v6465_v0 }
  0x34   :  { %v9411_v4 = vld [vmem:[#allocation5 + $0x3dc] sm:$0xf0] }
  0x35   :  { %v6977_v5 = vld [vmem:[#allocation5 + $0x5c0] sm:$0xf]  ;;  %v6722_v7 = vor.u32 %v9411_v4, %v6721_v2  ;;  %2592 = vmatpush.bf16.msra.mxu0 %v6466_v3 }
  0x36   :  { %v9475_v6 = vld [vmem:[#allocation5 + $0x5dc] sm:$0xf0] }
  0x37   :  { %v6978_v8 = vor.u32 %v9475_v6, %v6977_v5  ;;  %v7233_v9 = vld [vmem:[#allocation5 + $0x7c0] sm:$0xf]  ;;  %2605 = vmatpush.bf16.msra.mxu1 %v6722_v7 }
  0x38   :  { %v9539_v10 = vld [vmem:[#allocation5 + $0x7dc] sm:$0xf0] }
  0x39   :  { %v6433_v11 = vld [vmem:[#allocation5 + $0x180] sm:$0xf]  ;;  %v7234_v12 = vor.u32 %v9539_v10, %v7233_v9  ;;  %2618 = vmatpush.bf16.msra.mxu2 %v6978_v8 }
  0x3a   :  { %v9339_v13 = vld [vmem:[#allocation5 + $0x19c] sm:$0xf0] }
  0x3b   :  { %v6689_v14 = vld [vmem:[#allocation5 + $0x380] sm:$0xf]  ;;  %v6434_v16 = vor.u32 %v9339_v13, %v6433_v11  ;;  %2631 = vmatpush.bf16.msra.mxu3 %v7234_v12 }
  0x3c   :  { %v9403_v15 = vld [vmem:[#allocation5 + $0x39c] sm:$0xf0] }
  0x3d   :  { %v6690_v17 = vor.u32 %v9403_v15, %v6689_v14  ;;  %v6945_v18 = vld [vmem:[#allocation5 + $0x580] sm:$0xf]  ;;  %2593 = vmatpush.bf16.msra.mxu0 %v6434_v16 }
  0x3e   :  { %v9467_v19 = vld [vmem:[#allocation5 + $0x59c] sm:$0xf0] }
  0x3f   :  { %v7201_v20 = vld [vmem:[#allocation5 + $0x780] sm:$0xf]  ;;  %v6946_v21 = vor.u32 %v9467_v19, %v6945_v18  ;;  %2606 = vmatpush.bf16.msra.mxu1 %v6690_v17 }
  0x40   :  { %v9531_v22 = vld [vmem:[#allocation5 + $0x79c] sm:$0xf0] }
  0x41   :  { %v6401_v23 = vld [vmem:[#allocation5 + $0x140] sm:$0xf]  ;;  %v7202_v25 = vor.u32 %v9531_v22, %v7201_v20  ;;  %2619 = vmatpush.bf16.msra.mxu2 %v6946_v21  ;;  %v199_v20 = vld [vmem:[#allocation2] sm:$0xff] }
  0x42   :  { %v9331_v24 = vld [vmem:[#allocation5 + $0x15c] sm:$0xf0]  ;;  %612 = vst [vmem:[#allocation1] ss:$4 sm:$0xff] %v199_v20  ;;  %v6627_v20 = vld [vmem:[#allocation5 + $0x320] sm:$0xf0] }
  0x43   :  { %v6657_v26 = vld [vmem:[#allocation5 + $0x340] sm:$0xf]  ;;  %v6402_v29 = vor.u32 %v9331_v24, %v6401_v23  ;;  %2632 = vmatpush.bf16.msra.mxu3 %v7202_v25 }
  0x44   :  { %v9395_v27 = vld [vmem:[#allocation5 + $0x35c] sm:$0xf0] }
  0x45   :  { %v6913_v28 = vld [vmem:[#allocation5 + $0x540] sm:$0xf]  ;;  %v6658_v33 = vor.u32 %v9395_v27, %v6657_v26  ;;  %2594 = vmatpush.bf16.msra.mxu0 %v6402_v29 }
  0x46   :  { %v9459_v30 = vld [vmem:[#allocation5 + $0x55c] sm:$0xf0] }
  0x47   :  { %v7169_v31 = vld [vmem:[#allocation5 + $0x740] sm:$0xf]  ;;  %v6914_v34 = vor.u32 %v9459_v30, %v6913_v28  ;;  %2607 = vmatpush.bf16.msra.mxu1 %v6658_v33 }
  0x48   :  { %v9523_v32 = vld [vmem:[#allocation5 + $0x75c] sm:$0xf0] }
  0x49   :  { %v6369_v35 = vld [vmem:[#allocation5 + $0x100] sm:$0xf]  ;;  %v7170_v38 = vor.u32 %v9523_v32, %v7169_v31  ;;  %2620 = vmatpush.bf16.msra.mxu2 %v6914_v34  ;;  %v9343_v34 = vld [vmem:[#allocation5 + $0x1c4] sm:$0xf] }
  0x4a   :  { %v9323_v36 = vld [vmem:[#allocation5 + $0x11c] sm:$0xf0] }
  0x4b   :  { %v6625_v37 = vld [vmem:[#allocation5 + $0x300] sm:$0xf]  ;;  %v6370_v44 = vor.u32 %v9323_v36, %v6369_v35  ;;  %2633 = vmatpush.bf16.msra.mxu3 %v7170_v38  ;;  %v6467_v35 = vld [vmem:[#allocation5 + $0x1e0] sm:$0xf0] }
  0x4c   :  { %v9387_v39 = vld [vmem:[#allocation5 + $0x31c] sm:$0xf0] }
  0x4d   :  { %v6881_v40 = vld [vmem:[#allocation5 + $0x500] sm:$0xf]  ;;  %v6626_v45 = vor.u32 %v9387_v39, %v6625_v37  ;;  %2595 = vmatpush.bf16.msra.mxu0 %v6370_v44 }
  0x4e   :  { %v9451_v41 = vld [vmem:[#allocation5 + $0x51c] sm:$0xf0] }
  0x4f   :  { %v7137_v42 = vld [vmem:[#allocation5 + $0x700] sm:$0xf]  ;;  %v6882_v46 = vor.u32 %v9451_v41, %v6881_v40  ;;  %2608 = vmatpush.bf16.msra.mxu1 %v6626_v45  ;;  %v6470_v45 = vor.u32 %v9343_v34, %v6467_v35 }
  0x50   :  { %v9515_v43 = vld [vmem:[#allocation5 + $0x71c] sm:$0xf0] }
  0x51   :  { %v6337_v47 = vld [vmem:[#allocation5 + $0xc0] sm:$0xf]  ;;  %v7138_v50 = vor.u32 %v9515_v43, %v7137_v42  ;;  %2621 = vmatpush.bf16.msra.mxu2 %v6882_v46  ;;  %v9407_v42 = vld [vmem:[#allocation5 + $0x3c4] sm:$0xf] }
  0x52   :  { %v9315_v48 = vld [vmem:[#allocation5 + $0xdc] sm:$0xf0]  ;;  %v6723_v43 = vld [vmem:[#allocation5 + $0x3e0] sm:$0xf0] }
  0x53   :  { %v6593_v49 = vld [vmem:[#allocation5 + $0x2c0] sm:$0xf]  ;;  %v6338_v56 = vor.u32 %v9315_v48, %v6337_v47  ;;  %2634 = vmatpush.bf16.msra.mxu3 %v7138_v50  ;;  %v9335_v50 = vld [vmem:[#allocation5 + $0x184] sm:$0xf] }
  0x54   :  { %v9379_v51 = vld [vmem:[#allocation5 + $0x2dc] sm:$0xf0] }
  0x55   :  { %v6849_v52 = vld [vmem:[#allocation5 + $0x4c0] sm:$0xf]  ;;  %v6594_v57 = vor.u32 %v9379_v51, %v6593_v49  ;;  %2596 = vmatpush.bf16.msra.mxu0 %v6338_v56  ;;  %v6435_v51 = vld [vmem:[#allocation5 + $0x1a0] sm:$0xf0]  ;;  %v6726_v56 = vor.u32 %v9407_v42, %v6723_v43 }
  0x56   :  { %v9443_v53 = vld [vmem:[#allocation5 + $0x4dc] sm:$0xf0]  ;;  %v9367_v42 = vld [vmem:[#allocation5 + $0x284] sm:$0xf] }
  0x57   :  { %v7105_v54 = vld [vmem:[#allocation5 + $0x6c0] sm:$0xf]  ;;  %v6850_v58 = vor.u32 %v9443_v53, %v6849_v52  ;;  %2609 = vmatpush.bf16.msra.mxu1 %v6594_v57 }
  0x58   :  { %v9507_v55 = vld [vmem:[#allocation5 + $0x6dc] sm:$0xf0] }
  0x59   :  { %v6305_v59 = vld [vmem:[#allocation5 + $0x80] sm:$0xf]  ;;  %v7106_v62 = vor.u32 %v9507_v55, %v7105_v54  ;;  %2622 = vmatpush.bf16.msra.mxu2 %v6850_v58  ;;  %v10502_v54 = vld.sshfl [vmem:[#allocation1] sm:$0xff pattern:$0x73625140] }
  0x5a   :  { %v9307_v60 = vld [vmem:[#allocation5 + $0x9c] sm:$0xf0]  ;;  %v9399_v55 = vld [vmem:[#allocation5 + $0x384] sm:$0xf] }
  0x5b   :  { %v6561_v61 = vld [vmem:[#allocation5 + $0x280] sm:$0xf]  ;;  %v6306_v4 = vor.u32 %v9307_v60, %v6305_v59  ;;  %2635 = vmatpush.bf16.msra.mxu3 %v7106_v62  ;;  %v6691_v59 = vld [vmem:[#allocation5 + $0x3a0] sm:$0xf0] }
  0x5c   :  { %v9371_v63 = vld [vmem:[#allocation5 + $0x29c] sm:$0xf0] }
  0x5d   :  { %v6817_v0 = vld [vmem:[#allocation5 + $0x480] sm:$0xf]  ;;  %v6562_v5 = vor.u32 %v9371_v63, %v6561_v61  ;;  %2597 = vmatpush.bf16.msra.mxu0 %v6306_v4  ;;  %v6438_v61 = vor.u32 %v9335_v50, %v6435_v51  ;;  %v10509_v4 = vld.sshfl [vmem:[#allocation1 + $0x8] sm:$0xff pattern:$0x73625140] }
  0x5e   :  { %v9435_v1 = vld [vmem:[#allocation5 + $0x49c] sm:$0xf0] }
  0x5f   :  { %v7073_v2 = vld [vmem:[#allocation5 + $0x680] sm:$0xf]  ;;  %v6818_v6 = vor.u32 %v9435_v1, %v6817_v0  ;;  %2610 = vmatpush.bf16.msra.mxu1 %v6562_v5  ;;  %v6694_v5 = vor.u32 %v9399_v55, %v6691_v59  ;;  %v9295_v55 = vld [vmem:[#allocation5 + $0x44] sm:$0xf] }
  0x60   :  { %v9499_v3 = vld [vmem:[#allocation5 + $0x69c] sm:$0xf0] }
  0x61   :  { %v6273_v7 = vld [vmem:[#allocation5 + $0x40] sm:$0xf]  ;;  %v7074_v10 = vor.u32 %v9499_v3, %v7073_v2  ;;  %2623 = vmatpush.bf16.msra.mxu2 %v6818_v6  ;;  %v9327_v2 = vld [vmem:[#allocation5 + $0x144] sm:$0xf] }
  0x62   :  { %v9299_v8 = vld [vmem:[#allocation5 + $0x5c] sm:$0xf0]  ;;  %v6403_v3 = vld [vmem:[#allocation5 + $0x160] sm:$0xf0] }
  0x63   :  { %v6529_v9 = vld [vmem:[#allocation5 + $0x240] sm:$0xf]  ;;  %v6274_v17 = vor.u32 %v9299_v8, %v6273_v7  ;;  %2636 = vmatpush.bf16.msra.mxu3 %v7074_v10  ;;  %v9391_v7 = vld [vmem:[#allocation5 + $0x344] sm:$0xf]  ;;  %v6406_v10 = vor.u32 %v9327_v2, %v6403_v3 }
  0x64   :  { %v9363_v11 = vld [vmem:[#allocation5 + $0x25c] sm:$0xf0]  ;;  %v6659_v8 = vld [vmem:[#allocation5 + $0x360] sm:$0xf0] }
  0x65   :  { %v6785_v12 = vld [vmem:[#allocation5 + $0x440] sm:$0xf]  ;;  %v6530_v21 = vor.u32 %v9363_v11, %v6529_v9  ;;  %2598 = vmatpush.bf16.msra.mxu0 %v6274_v17  ;;  %v9383_v17 = vld [vmem:[#allocation5 + $0x304] sm:$0xf] }
  0x66   :  { %v9427_v13 = vld [vmem:[#allocation5 + $0x45c] sm:$0xf0] }
  0x67   :  { %v7041_v14 = vld [vmem:[#allocation5 + $0x640] sm:$0xf]  ;;  %v6786_v22 = vor.u32 %v9427_v13, %v6785_v12  ;;  %2611 = vmatpush.bf16.msra.mxu1 %v6530_v21 }
  0x68   :  { %v9491_v15 = vld [vmem:[#allocation5 + $0x65c] sm:$0xf0] }
  0x69   :  { %v6241_v16 = vld [vmem:[#allocation5] sm:$0xf]  ;;  %v7042_v25 = vor.u32 %v9491_v15, %v7041_v14  ;;  %2624 = vmatpush.bf16.msra.mxu2 %v6786_v22  ;;  %v9319_v15 = vld [vmem:[#allocation5 + $0x104] sm:$0xf] }
  0x6a   :  { %v9291_v18 = vld [vmem:[#allocation5 + $0x1c] sm:$0xf0] }
  0x6b   :  { %v6497_v19 = vld [vmem:[#allocation5 + $0x200] sm:$0xf]  ;;  %v6242_v32 = vor.u32 %v9291_v18, %v6241_v16  ;;  %2637 = vmatpush.bf16.msra.mxu3 %v7042_v25  ;;  %v6371_v16 = vld [vmem:[#allocation5 + $0x120] sm:$0xf0]  ;;  %v6662_v18 = vor.u32 %v9391_v7, %v6659_v8 }
  0x6c   :  { %v9355_v23 = vld [vmem:[#allocation5 + $0x21c] sm:$0xf0]  ;;  %v9471_v7 = vld [vmem:[#allocation5 + $0x5c4] sm:$0xf] }
  0x6d   :  { %v6753_v24 = vld [vmem:[#allocation5 + $0x400] sm:$0xf]  ;;  %v6498_v36 = vor.u32 %v9355_v23, %v6497_v19  ;;  %2599 = vmatpush.bf16.msra.mxu0 %v6242_v32  ;;  %v9375_v32 = vld [vmem:[#allocation5 + $0x2c4] sm:$0xf] }
  0x6e   :  { %v9419_v26 = vld [vmem:[#allocation5 + $0x41c] sm:$0xf0]  ;;  %v6979_v8 = vld [vmem:[#allocation5 + $0x5e0] sm:$0xf0] }
  0x6f   :  { %v7009_v27 = vld [vmem:[#allocation5 + $0x600] sm:$0xf]  ;;  %v6754_v37 = vor.u32 %v9419_v26, %v6753_v24  ;;  %2612 = vmatpush.bf16.msra.mxu1 %v6498_v36  ;;  %v6374_v24 = vor.u32 %v9319_v15, %v6371_v16  ;;  %v9351_v15 = vld [vmem:[#allocation5 + $0x204] sm:$0xf] }
  0x70   :  { %v9483_v28 = vld [vmem:[#allocation5 + $0x61c] sm:$0xf0]  ;;  %2600 = vmatmul.bf16.vlgmr.msra.gmra.mxu0 %v10502_v54 }
  0x71   :  { %v7489_v29 = vld [vmem:[#allocation5 + $0x9c0] sm:$0xf]  ;;  %v7010_v39 = vor.u32 %v9483_v28, %v7009_v27  ;;  %2625 = vmatpush.bf16.msra.mxu2 %v6754_v37  ;;  %v200_v27 = vld [vmem:[#allocation2 + $0x8] sm:$0x3f]  ;;  %v9311_v28 = vld [vmem:[#allocation5 + $0xc4] sm:$0xf] }
  0x72   :  { %v9603_v30 = vld [vmem:[#allocation5 + $0x9dc] sm:$0xf0]  ;;  %2613 = vmatmul.bf16.vlgmr.msra.gmra.mxu1 %v10509_v4  ;;  %615 = vst [vmem:[#allocation1 + $0x20] ss:$4 sm:$0xff] %v200_v27  ;;  %v9527_v27 = vld [vmem:[#allocation5 + $0x784] sm:$0xf] }
  0x73   :  { %v7745_v31 = vld [vmem:[#allocation5 + $0xbc0] sm:$0xf]  ;;  %v7490_v40 = vor.u32 %v9603_v30, %v7489_v29  ;;  %2638 = vmatpush.bf16.msra.mxu3 %v7010_v39  ;;  %v6339_v29 = vld [vmem:[#allocation5 + $0xe0] sm:$0xf0]  ;;  %v6630_v30 = vor.u32 %v9383_v17, %v6627_v20 }
  0x74   :  { %v9667_v33 = vld [vmem:[#allocation5 + $0xbdc] sm:$0xf0]  ;;  %v6342_v35 = vor.u32 %v9311_v28, %v6339_v29  ;;  %v7747_v20 = vld [vmem:[#allocation5 + $0xbe0] sm:$0xf0] }
  0x75   :  { %v7777_v38 = vld [vmem:[#allocation5 + $0xc00] sm:$0xf]  ;;  %v7746_v44 = vor.u32 %v9667_v33, %v7745_v31  ;;  %2644 = vmatpush.bf16.msrb.mxu0 %v7490_v40  ;;  %v6595_v33 = vld [vmem:[#allocation5 + $0x2e0] sm:$0xf0] }
  0x76   :  { %v9675_v41 = vld [vmem:[#allocation5 + $0xc1c] sm:$0xf0]  ;;  %v9303_v40 = vld [vmem:[#allocation5 + $0x84] sm:$0xf]  ;;  %v6598_v43 = vor.u32 %v9375_v32, %v6595_v33 }
  0x77   :  { %v7457_v46 = vld [vmem:[#allocation5 + $0x980] sm:$0xf]  ;;  %v7778_v53 = vor.u32 %v9675_v41, %v7777_v38  ;;  %2657 = vmatpush.bf16.msrb.mxu1 %v7746_v44  ;;  %2683 = vmatpush.bf16.msrb.mxu3 %v6470_v45  ;;  %v6307_v41 = vld [vmem:[#allocation5 + $0xa0] sm:$0xf0] }
  0x78   :  { %v9595_v47 = vld [vmem:[#allocation5 + $0x99c] sm:$0xf0]  ;;  %v6563_v45 = vld [vmem:[#allocation5 + $0x2a0] sm:$0xf0] }
  0x79   :  { %v7713_v48 = vld [vmem:[#allocation5 + $0xb80] sm:$0xf]  ;;  %v7458_v57 = vor.u32 %v9595_v47, %v7457_v46  ;;  %2677 = vmatpush.bf16.msrb.mxu2 %v7778_v53  ;;  %v7203_v28 = vld [vmem:[#allocation5 + $0x7a0] sm:$0xf0] }
  0x7a   :  { %v9659_v49 = vld [vmem:[#allocation5 + $0xb9c] sm:$0xf0]  ;;  %v10518_v33 = vld.sshfl [vmem:[#allocation1 + $0x28] sm:$0xff pattern:$0x73625140] }
  0x7b   :  { %v10500_v52 = vld.sshfl [vmem:[#allocation1 + $0x10] sm:$0xff pattern:$0x73625140]  ;;  %v10504_v58 = vld.sshfl [vmem:[#allocation1 + $0x18] sm:$0xff pattern:$0x73625140]  ;;  %v7714_v60 = vor.u32 %v9659_v49, %v7713_v48  ;;  %2645 = vmatpush.bf16.msrb.mxu0 %v7458_v57  ;;  %2684 = vmatpush.bf16.msrb.mxu3 %v6438_v61  ;;  %v6310_v49 = vor.u32 %v9303_v40, %v6307_v41  ;;  %v6566_v57 = vor.u32 %v9367_v42, %v6563_v45 }
  0x7c   :  { %v7425_v62 = vld [vmem:[#allocation5 + $0x940] sm:$0xf]  ;;  %2626 = vmatmul.bf16.vlgmr.msra.gmra.mxu2 %v10500_v52  ;;  %2639 = vmatmul.bf16.vlgmr.msra.gmra.mxu3 %v10504_v58  ;;  %v6531_v61 = vld [vmem:[#allocation5 + $0x260] sm:$0xf0] }
  0x7d   :  { %v9587_v63 = vld [vmem:[#allocation5 + $0x95c] sm:$0xf0]  ;;  %2696 = vmatpush.bf16.msra.mxu2 %v6726_v56  ;;  %2658 = vmatpush.bf16.msrb.mxu1 %v7714_v60  ;;  %v6275_v56 = vld [vmem:[#allocation5 + $0x60] sm:$0xf0] }
  0x7e   :  { %v7681_v0 = vld [vmem:[#allocation5 + $0xb40] sm:$0xf]  ;;  %v7426_v6 = vor.u32 %v9587_v63, %v7425_v62  ;;  %v9359_v60 = vld [vmem:[#allocation5 + $0x244] sm:$0xf] }
  0x7f   :  { %v9651_v1 = vld [vmem:[#allocation5 + $0xb5c] sm:$0xf0]  ;;  %2685 = vmatpush.bf16.msrb.mxu3 %v6406_v10  ;;  %v7235_v10 = vld [vmem:[#allocation5 + $0x7e0] sm:$0xf0] }
  0x80   :  { %v7682_v9 = vor.u32 %v9651_v1, %v7681_v0  ;;  %v7393_v11 = vld [vmem:[#allocation5 + $0x900] sm:$0xf]  ;;  %2646 = vmatpush.bf16.msrb.mxu0 %v7426_v6  ;;  %v6278_v0 = vor.u32 %v9295_v55, %v6275_v56  ;;  %v6243_v6 = vld [vmem:[#allocation5 + $0x20] sm:$0xf0] }
  0x81   :  { %v9579_v12 = vld [vmem:[#allocation5 + $0x91c] sm:$0xf0]  ;;  %2697 = vmatpush.bf16.msra.mxu2 %v6694_v5  ;;  %v9287_v5 = vld [vmem:[#allocation5 + $0x4] sm:$0xf] }
  0x82   :  { %v7649_v13 = vld [vmem:[#allocation5 + $0xb00] sm:$0xf]  ;;  %v7394_v19 = vor.u32 %v9579_v12, %v7393_v11  ;;  %2659 = vmatpush.bf16.msrb.mxu1 %v7682_v9  ;;  %v9535_v9 = vld [vmem:[#allocation5 + $0x7c4] sm:$0xf]  ;;  %v6534_v11 = vor.u32 %v9359_v60, %v6531_v61  ;;  %v6246_v17 = vor.u32 %v9287_v5, %v6243_v6 }
  0x83   :  { %v9643_v14 = vld [vmem:[#allocation5 + $0xb1c] sm:$0xf0]  ;;  %2686 = vmatpush.bf16.msrb.mxu3 %v6374_v24  ;;  %v9463_v24 = vld [vmem:[#allocation5 + $0x584] sm:$0xf] }
  0x84   :  { %v7361_v21 = vld [vmem:[#allocation5 + $0x8c0] sm:$0xf]  ;;  %v7650_v23 = vor.u32 %v9643_v14, %v7649_v13  ;;  %2647 = vmatpush.bf16.msrb.mxu0 %v7394_v19  ;;  %v9599_v13 = vld [vmem:[#allocation5 + $0x9c4] sm:$0xf] }
  0x85   :  { %v9571_v22 = vld [vmem:[#allocation5 + $0x8dc] sm:$0xf0]  ;;  %2698 = vmatpush.bf16.msra.mxu2 %v6662_v18  ;;  %v7491_v14 = vld [vmem:[#allocation5 + $0x9e0] sm:$0xf0] }
  0x86   :  { %v7617_v25 = vld [vmem:[#allocation5 + $0xac0] sm:$0xf]  ;;  %v7362_v31 = vor.u32 %v9571_v22, %v7361_v21  ;;  %2660 = vmatpush.bf16.msrb.mxu1 %v7650_v23  ;;  %v6499_v18 = vld [vmem:[#allocation5 + $0x220] sm:$0xf0]  ;;  %v6982_v21 = vor.u32 %v9471_v7, %v6979_v8  ;;  %v7238_v22 = vor.u32 %v9535_v9, %v7235_v10 }
  0x87   :  { %v9635_v26 = vld [vmem:[#allocation5 + $0xadc] sm:$0xf0]  ;;  %2687 = vmatpush.bf16.msrb.mxu3 %v6342_v35  ;;  %v9663_v19 = vld [vmem:[#allocation5 + $0xbc4] sm:$0xf]  ;;  %v6502_v29 = vor.u32 %v9351_v15, %v6499_v18  ;;  %v7206_v35 = vor.u32 %v9527_v27, %v7203_v28 }
  0x88   :  { %v7618_v34 = vor.u32 %v9635_v26, %v7617_v25  ;;  %v7329_v36 = vld [vmem:[#allocation5 + $0x880] sm:$0xf]  ;;  %2648 = vmatpush.bf16.msrb.mxu0 %v7362_v31  ;;  %v10516_v23 = vld.sshfl [vmem:[#allocation1 + $0x20] sm:$0xff pattern:$0x73625140]  ;;  %v7494_v25 = vor.u32 %v9599_v13, %v7491_v14  ;;  %v7750_v32 = vor.u32 %v9663_v19, %v7747_v20 }
  0x89   :  { %v9563_v37 = vld [vmem:[#allocation5 + $0x89c] sm:$0xf0]  ;;  %2699 = vmatpush.bf16.msra.mxu2 %v6630_v30  ;;  %v6947_v26 = vld [vmem:[#allocation5 + $0x5a0] sm:$0xf0] }
  0x8a   :  { %v7585_v38 = vld [vmem:[#allocation5 + $0xa80] sm:$0xf]  ;;  %v7330_v44 = vor.u32 %v9563_v37, %v7329_v36  ;;  %2661 = vmatpush.bf16.msrb.mxu1 %v7618_v34  ;;  %v9591_v30 = vld [vmem:[#allocation5 + $0x984] sm:$0xf]  ;;  %v6950_v34 = vor.u32 %v9463_v24, %v6947_v26 }
  0x8b   :  { %v9627_v39 = vld [vmem:[#allocation5 + $0xa9c] sm:$0xf0]  ;;  %2688 = vmatpush.bf16.msrb.mxu3 %v6310_v49  ;;  %v7459_v31 = vld [vmem:[#allocation5 + $0x9a0] sm:$0xf0] }
  0x8c   :  { %v7297_v46 = vld [vmem:[#allocation5 + $0x840] sm:$0xf]  ;;  %v7586_v48 = vor.u32 %v9627_v39, %v7585_v38  ;;  %2649 = vmatpush.bf16.msrb.mxu0 %v7330_v44  ;;  %v9655_v36 = vld [vmem:[#allocation5 + $0xb84] sm:$0xf]  ;;  %v7462_v39 = vor.u32 %v9591_v30, %v7459_v31 }
  0x8d   :  { %v9555_v47 = vld [vmem:[#allocation5 + $0x85c] sm:$0xf0]  ;;  %2700 = vmatpush.bf16.msra.mxu2 %v6598_v43  ;;  %v7715_v37 = vld [vmem:[#allocation5 + $0xba0] sm:$0xf0] }
  0x8e   :  { %v7553_v50 = vld [vmem:[#allocation5 + $0xa40] sm:$0xf]  ;;  %v7298_v59 = vor.u32 %v9555_v47, %v7297_v46  ;;  %2662 = vmatpush.bf16.msrb.mxu1 %v7586_v48  ;;  %v9455_v38 = vld [vmem:[#allocation5 + $0x544] sm:$0xf]  ;;  %v7718_v45 = vor.u32 %v9655_v36, %v7715_v37 }
  0x8f   :  { %v10512_v51 = vld.sshfl [vmem:[#allocation1 + $0x30] sm:$0xff pattern:$0x73625140]  ;;  %2689 = vmatpush.bf16.msrb.mxu3 %v6278_v0  ;;  %v6915_v40 = vld [vmem:[#allocation5 + $0x560] sm:$0xf0] }
  0x90   :  { %v9619_v53 = vld [vmem:[#allocation5 + $0xa5c] sm:$0xf0]  ;;  %7807 = vmatmul.msk.bf16.vlgmr.msrb.gmra.mxu2 %vm2589_vm0, %v10512_v51  ;;  %2650 = vmatpush.bf16.msrb.mxu0 %v7298_v59  ;;  %v9519_v41 = vld [vmem:[#allocation5 + $0x744] sm:$0xf]  ;;  %v6918_v46 = vor.u32 %v9455_v38, %v6915_v40 }
  0x91   :  { %v7265_v62 = vld [vmem:[#allocation5 + $0x800] sm:$0xf]  ;;  %v7554_v63 = vor.u32 %v9619_v53, %v7553_v50  ;;  %2701 = vmatpush.bf16.msra.mxu2 %v6566_v57  ;;  %v7171_v42 = vld [vmem:[#allocation5 + $0x760] sm:$0xf0] }
  0x92   :  { %v9547_v1 = vld [vmem:[#allocation5 + $0x81c] sm:$0xf0]  ;;  %v9583_v43 = vld [vmem:[#allocation5 + $0x944] sm:$0xf]  ;;  %v7174_v47 = vor.u32 %v9519_v41, %v7171_v42 }
  0x93   :  { %v7521_v2 = vld [vmem:[#allocation5 + $0xa00] sm:$0xf]  ;;  %v7266_v12 = vor.u32 %v9547_v1, %v7265_v62  ;;  %2663 = vmatpush.bf16.msrb.mxu1 %v7554_v63  ;;  %2690 = vmatpush.bf16.msrb.mxu3 %v6246_v17  ;;  %v7427_v44 = vld [vmem:[#allocation5 + $0x960] sm:$0xf0] }
  0x94   :  { %v9611_v3 = vld [vmem:[#allocation5 + $0xa1c] sm:$0xf0]  ;;  %v9647_v48 = vld [vmem:[#allocation5 + $0xb44] sm:$0xf]  ;;  %v7430_v53 = vor.u32 %v9583_v43, %v7427_v44 }
  0x95   :  { %v7522_v16 = vor.u32 %v9611_v3, %v7521_v2  ;;  %2702 = vmatpush.bf16.msra.mxu2 %v6534_v11  ;;  %2651 = vmatpush.bf16.msrb.mxu0 %v7266_v12  ;;  %v7683_v49 = vld [vmem:[#allocation5 + $0xb60] sm:$0xf0] }
  0x96   :  { %2691 = vmatmul.bf16.vlgmr.msrb.gmra.mxu3 %v10502_v54  ;;  %v9447_v50 = vld [vmem:[#allocation5 + $0x504] sm:$0xf]  ;;  %v7686_v61 = vor.u32 %v9647_v48, %v7683_v49  ;;  %v6473_v48 = vld [vmem:[#allocation5 + $0x1c8] sm:$0xf] }
  0x97   :  { %2664 = vmatpush.bf16.msrb.mxu1 %v7522_v16  ;;  %2735 = vmatpush.bf16.msra.mxu3 %v7494_v25  ;;  %v6883_v55 = vld [vmem:[#allocation5 + $0x520] sm:$0xf0]  ;;  %v9348_v49 = vld [vmem:[#allocation5 + $0x1e4] sm:$0xf0] }
  0x98   :  { %2652 = vmatmul.bf16.vlgmr.msrb.gmra.mxu0 %v10516_v23  ;;  %v9511_v56 = vld [vmem:[#allocation5 + $0x704] sm:$0xf]  ;;  %v6886_v62 = vor.u32 %v9447_v50, %v6883_v55  ;;  %v6729_v50 = vld [vmem:[#allocation5 + $0x3c8] sm:$0xf] }
  0x99   :  { %2709 = vmatpush.bf16.msra.mxu0 %v6982_v21  ;;  %2703 = vmatpush.bf16.msra.mxu2 %v6502_v29  ;;  %v7139_v57 = vld [vmem:[#allocation5 + $0x720] sm:$0xf0]  ;;  %v9412_v55 = vld [vmem:[#allocation5 + $0x3e4] sm:$0xf0] }
  0x9a   :  { %2665 = vmatmul.bf16.vlgmr.msrb.gmra.mxu1 %v10518_v33  ;;  %v9575_v59 = vld [vmem:[#allocation5 + $0x904] sm:$0xf]  ;;  %v7142_v63 = vor.u32 %v9511_v56, %v7139_v57 }
  0x9b   :  { %2722 = vmatpush.bf16.msra.mxu1 %v7238_v22  ;;  %2736 = vmatpush.bf16.msra.mxu3 %v7462_v39  ;;  %v7395_v60 = vld [vmem:[#allocation5 + $0x920] sm:$0xf0] }
  0x9c   :  { %v9639_v0 = vld [vmem:[#allocation5 + $0xb04] sm:$0xf]  ;;  %v7398_v3 = vor.u32 %v9575_v59, %v7395_v60 }
  0x9d   :  { %2748 = vmatpush.bf16.msrb.mxu2 %v7750_v32  ;;  %2710 = vmatpush.bf16.msra.mxu0 %v6950_v34  ;;  %v7651_v1 = vld [vmem:[#allocation5 + $0xb20] sm:$0xf0] }
  0x9e   :  { %v9439_v2 = vld [vmem:[#allocation5 + $0x4c4] sm:$0xf]  ;;  %v7654_v10 = vor.u32 %v9639_v0, %v7651_v1  ;;  %v6474_v1 = vor.u32 %v9348_v49, %v6473_v48  ;;  %v9316_v48 = vld [vmem:[#allocation5 + $0xe4] sm:$0xf0] }
  0x9f   :  { %2723 = vmatpush.bf16.msra.mxu1 %v7206_v35  ;;  %2737 = vmatpush.bf16.msra.mxu3 %v7430_v53  ;;  %v6851_v5 = vld [vmem:[#allocation5 + $0x4e0] sm:$0xf0]  ;;  %v6601_v49 = vld [vmem:[#allocation5 + $0x2c8] sm:$0xf] }
  0xa0   :  { %2704 = vmatmul.bf16.vlgmr.msra.gmra.mxu2 %v10509_v4  ;;  %v9503_v6 = vld [vmem:[#allocation5 + $0x6c4] sm:$0xf]  ;;  %v6854_v11 = vor.u32 %v9439_v2, %v6851_v5  ;;  %v9476_v2 = vld [vmem:[#allocation5 + $0x5e4] sm:$0xf0] }
  0xa1   :  { %2749 = vmatpush.bf16.msrb.mxu2 %v7718_v45  ;;  %2711 = vmatpush.bf16.msra.mxu0 %v6918_v46  ;;  %v7107_v7 = vld [vmem:[#allocation5 + $0x6e0] sm:$0xf0]  ;;  %v9540_v5 = vld [vmem:[#allocation5 + $0x7e4] sm:$0xf0] }
  0xa2   :  { %v9567_v8 = vld [vmem:[#allocation5 + $0x8c4] sm:$0xf]  ;;  %v7110_v12 = vor.u32 %v9503_v6, %v7107_v7  ;;  %v6730_v6 = vor.u32 %v9412_v55, %v6729_v50  ;;  %v9380_v50 = vld [vmem:[#allocation5 + $0x2e4] sm:$0xf0] }
  0xa3   :  { %2724 = vmatpush.bf16.msra.mxu1 %v7174_v47  ;;  %v7363_v9 = vld [vmem:[#allocation5 + $0x8e0] sm:$0xf0]  ;;  %2738 = vmatpush.bf16.msra.mxu3 %v7398_v3  ;;  %v7241_v3 = vld [vmem:[#allocation5 + $0x7c8] sm:$0xf] }
  0xa4   :  { %v9631_v13 = vld [vmem:[#allocation5 + $0xac4] sm:$0xf]  ;;  %v7366_v16 = vor.u32 %v9567_v8, %v7363_v9  ;;  %v6441_v8 = vld [vmem:[#allocation5 + $0x188] sm:$0xf] }
  0xa5   :  { %2750 = vmatpush.bf16.msrb.mxu2 %v7686_v61  ;;  %2712 = vmatpush.bf16.msra.mxu0 %v6886_v62  ;;  %v7619_v14 = vld [vmem:[#allocation5 + $0xae0] sm:$0xf0]  ;;  %v9340_v9 = vld [vmem:[#allocation5 + $0x1a4] sm:$0xf0] }
  0xa6   :  { %v9431_v15 = vld [vmem:[#allocation5 + $0x484] sm:$0xf]  ;;  %v7622_v22 = vor.u32 %v9631_v13, %v7619_v14  ;;  %v7242_v14 = vor.u32 %v9540_v5, %v7241_v3 }
  0xa7   :  { %2725 = vmatpush.bf16.msra.mxu1 %v7142_v63  ;;  %v6819_v17 = vld [vmem:[#allocation5 + $0x4a0] sm:$0xf0]  ;;  %2739 = vmatpush.bf16.msra.mxu3 %v7366_v16  ;;  %v6985_v63 = vld [vmem:[#allocation5 + $0x5c8] sm:$0xf]  ;;  %v6442_v16 = vor.u32 %v9340_v9, %v6441_v8 }
  0xa8   :  { %v9495_v18 = vld [vmem:[#allocation5 + $0x684] sm:$0xf]  ;;  %v6822_v24 = vor.u32 %v9431_v15, %v6819_v17  ;;  %v6986_v13 = vor.u32 %v9476_v2, %v6985_v63  ;;  %v6953_v15 = vld [vmem:[#allocation5 + $0x588] sm:$0xf] }
  0xa9   :  { %v7075_v19 = vld [vmem:[#allocation5 + $0x6a0] sm:$0xf0]  ;;  %2751 = vmatpush.bf16.msrb.mxu2 %v7654_v10  ;;  %2713 = vmatpush.bf16.msra.mxu0 %v6854_v11  ;;  %v6697_v11 = vld [vmem:[#allocation5 + $0x388] sm:$0xf] }
  0xaa   :  { %v9559_v20 = vld [vmem:[#allocation5 + $0x884] sm:$0xf]  ;;  %v7078_v25 = vor.u32 %v9495_v18, %v7075_v19  ;;  %v9468_v17 = vld [vmem:[#allocation5 + $0x5a4] sm:$0xf0] }
  0xab   :  { %v7331_v21 = vld [vmem:[#allocation5 + $0x8a0] sm:$0xf0]  ;;  %2726 = vmatpush.bf16.msra.mxu1 %v7110_v12  ;;  %v9404_v12 = vld [vmem:[#allocation5 + $0x3a4] sm:$0xf0] }
  0xac   :  { %v9623_v26 = vld [vmem:[#allocation5 + $0xa84] sm:$0xf]  ;;  %v7334_v29 = vor.u32 %v9559_v20, %v7331_v21  ;;  %v7209_v18 = vld [vmem:[#allocation5 + $0x788] sm:$0xf]  ;;  %v6698_v20 = vor.u32 %v9404_v12, %v6697_v11 }
  0xad   :  { %v7587_v27 = vld [vmem:[#allocation5 + $0xaa0] sm:$0xf0]  ;;  %2752 = vmatpush.bf16.msrb.mxu2 %v7622_v22  ;;  %2714 = vmatpush.bf16.msra.mxu0 %v6822_v24  ;;  %v9532_v19 = vld [vmem:[#allocation5 + $0x7a4] sm:$0xf0] }
  0xae   :  { %v9423_v28 = vld [vmem:[#allocation5 + $0x444] sm:$0xf]  ;;  %v7590_v36 = vor.u32 %v9623_v26, %v7587_v27  ;;  %2740 = vmatpush.bf16.msra.mxu3 %v7334_v29  ;;  %v6409_v21 = vld [vmem:[#allocation5 + $0x148] sm:$0xf]  ;;  %v6954_v26 = vor.u32 %v9468_v17, %v6953_v15  ;;  %v7210_v27 = vor.u32 %v9532_v19, %v7209_v18 }
  0xaf   :  { %v6787_v30 = vld [vmem:[#allocation5 + $0x460] sm:$0xf0]  ;;  %2727 = vmatpush.bf16.msra.mxu1 %v7078_v25  ;;  %v9332_v22 = vld [vmem:[#allocation5 + $0x164] sm:$0xf0] }
  0xb0   :  { %v9487_v31 = vld [vmem:[#allocation5 + $0x644] sm:$0xf]  ;;  %v6790_v39 = vor.u32 %v9423_v28, %v6787_v30  ;;  %v6665_v24 = vld [vmem:[#allocation5 + $0x348] sm:$0xf]  ;;  %v6410_v29 = vor.u32 %v9332_v22, %v6409_v21 }
  0xb1   :  { %v7043_v32 = vld [vmem:[#allocation5 + $0x660] sm:$0xf0]  ;;  %2753 = vmatpush.bf16.msrb.mxu2 %v7590_v36  ;;  %v9396_v25 = vld [vmem:[#allocation5 + $0x364] sm:$0xf0] }
  0xb2   :  { %v9551_v34 = vld [vmem:[#allocation5 + $0x844] sm:$0xf]  ;;  %v7046_v40 = vor.u32 %v9487_v31, %v7043_v32  ;;  %2715 = vmatpush.bf16.msra.mxu0 %v6790_v39  ;;  %v6921_v28 = vld [vmem:[#allocation5 + $0x548] sm:$0xf] }
  0xb3   :  { %v7299_v35 = vld [vmem:[#allocation5 + $0x860] sm:$0xf0]  ;;  %v9460_v30 = vld [vmem:[#allocation5 + $0x564] sm:$0xf0] }
  0xb4   :  { %v9615_v37 = vld [vmem:[#allocation5 + $0xa44] sm:$0xf]  ;;  %v7302_v44 = vor.u32 %v9551_v34, %v7299_v35  ;;  %2728 = vmatpush.bf16.msra.mxu1 %v7046_v40  ;;  %v7177_v31 = vld [vmem:[#allocation5 + $0x748] sm:$0xf]  ;;  %v6666_v34 = vor.u32 %v9396_v25, %v6665_v24  ;;  %v6922_v39 = vor.u32 %v9460_v30, %v6921_v28 }
  0xb5   :  { %v7555_v38 = vld [vmem:[#allocation5 + $0xa60] sm:$0xf0]  ;;  %v9524_v32 = vld [vmem:[#allocation5 + $0x764] sm:$0xf0] }
  0xb6   :  { %v9415_v41 = vld [vmem:[#allocation5 + $0x404] sm:$0xf]  ;;  %v7558_v53 = vor.u32 %v9615_v37, %v7555_v38  ;;  %2741 = vmatpush.bf16.msra.mxu3 %v7302_v44  ;;  %v6377_v35 = vld [vmem:[#allocation5 + $0x108] sm:$0xf]  ;;  %v7178_v40 = vor.u32 %v9524_v32, %v7177_v31 }
  0xb7   :  { %v6755_v42 = vld [vmem:[#allocation5 + $0x420] sm:$0xf0]  ;;  %v9324_v36 = vld [vmem:[#allocation5 + $0x124] sm:$0xf0] }
  0xb8   :  { %v9479_v43 = vld [vmem:[#allocation5 + $0x604] sm:$0xf]  ;;  %v6758_v59 = vor.u32 %v9415_v41, %v6755_v42  ;;  %2754 = vmatpush.bf16.msrb.mxu2 %v7558_v53  ;;  %v6633_v37 = vld [vmem:[#allocation5 + $0x308] sm:$0xf]  ;;  %v6378_v42 = vor.u32 %v9324_v36, %v6377_v35 }
  0xb9   :  { %v7011_v45 = vld [vmem:[#allocation5 + $0x620] sm:$0xf0]  ;;  %v9388_v38 = vld [vmem:[#allocation5 + $0x324] sm:$0xf0] }
  0xba   :  { %v9543_v46 = vld [vmem:[#allocation5 + $0x804] sm:$0xf]  ;;  %v7014_v60 = vor.u32 %v9479_v43, %v7011_v45  ;;  %2716 = vmatpush.bf16.msra.mxu0 %v6758_v59  ;;  %v6889_v41 = vld [vmem:[#allocation5 + $0x508] sm:$0xf] }
  0xbb   :  { %v7267_v47 = vld [vmem:[#allocation5 + $0x820] sm:$0xf0]  ;;  %v9452_v43 = vld [vmem:[#allocation5 + $0x524] sm:$0xf0] }
  0xbc   :  { %v9671_v56 = vld [vmem:[#allocation5 + $0xc04] sm:$0xf]  ;;  %v7270_v0 = vor.u32 %v9543_v46, %v7267_v47  ;;  %2729 = vmatpush.bf16.msra.mxu1 %v7014_v60  ;;  %v7145_v44 = vld [vmem:[#allocation5 + $0x708] sm:$0xf]  ;;  %v6634_v46 = vor.u32 %v9388_v38, %v6633_v37  ;;  %v6890_v53 = vor.u32 %v9452_v43, %v6889_v41  ;;  %v9344_v41 = vld [vmem:[#allocation5 + $0x1cc] sm:$0xf] }
  0xbd   :  { %v7779_v57 = vld [vmem:[#allocation5 + $0xc20] sm:$0xf0]  ;;  %2717 = vmatmul.bf16.vlgmr.msra.gmra.mxu0 %v10500_v52  ;;  %v9516_v45 = vld [vmem:[#allocation5 + $0x724] sm:$0xf0] }
  0xbe   :  { %v9607_v61 = vld [vmem:[#allocation5 + $0xa04] sm:$0xf]  ;;  %v7782_v7 = vor.u32 %v9671_v56, %v7779_v57  ;;  %2742 = vmatpush.bf16.msra.mxu3 %v7270_v0  ;;  %v6345_v47 = vld [vmem:[#allocation5 + $0xc8] sm:$0xf]  ;;  %v7146_v55 = vor.u32 %v9516_v45, %v7145_v44  ;;  %v6475_v44 = vld [vmem:[#allocation5 + $0x1e8] sm:$0xf0] }
  0xbf   :  { %v7523_v62 = vld [vmem:[#allocation5 + $0xa20] sm:$0xf0]  ;;  %2730 = vmatmul.bf16.vlgmr.msra.gmra.mxu1 %v10504_v58  ;;  %v6857_v56 = vld [vmem:[#allocation5 + $0x4c8] sm:$0xf]  ;;  %v6346_v57 = vor.u32 %v9316_v48, %v6345_v47 }
  0xc0   :  { %v7526_v10 = vor.u32 %v9607_v61, %v7523_v62  ;;  %2774 = vmatpush.bf16.msrb.mxu1 %v6474_v1  ;;  %2768 = vmatpush.bf16.msrb.mxu0 %v7782_v7  ;;  %v9444_v59 = vld [vmem:[#allocation5 + $0x4e4] sm:$0xf0]  ;;  %v6602_v62 = vor.u32 %v9380_v50, %v6601_v49 }
  0xc1   :  { %2743 = vmatmul.bf16.vlgmr.msra.gmra.mxu3 %v10516_v23  ;;  %v7113_v60 = vld [vmem:[#allocation5 + $0x6c8] sm:$0xf]  ;;  %v6858_v3 = vor.u32 %v9444_v59, %v6857_v56 }
  0xc2   :  { %2787 = vmatpush.bf16.msrb.mxu3 %v6730_v6  ;;  %2755 = vmatpush.bf16.msrb.mxu2 %v7526_v10  ;;  %v9508_v61 = vld [vmem:[#allocation5 + $0x6e4] sm:$0xf0] }
  0xc3   :  { %v6313_v63 = vld [vmem:[#allocation5 + $0x88] sm:$0xf]  ;;  %v7114_v5 = vor.u32 %v9508_v61, %v7113_v60  ;;  %v9408_v60 = vld [vmem:[#allocation5 + $0x3cc] sm:$0xf] }
  0xc4   :  { %2800 = vmatpush.bf16.msra.mxu0 %v6986_v13  ;;  %2775 = vmatpush.bf16.msrb.mxu1 %v6442_v16  ;;  %v9308_v0 = vld [vmem:[#allocation5 + $0xa4] sm:$0xf0]  ;;  %v6731_v61 = vld [vmem:[#allocation5 + $0x3e8] sm:$0xf0] }
  0xc5   :  { %2756 = vmatmul.bf16.vlgmr.msrb.gmra.mxu2 %v10518_v33  ;;  %v6569_v1 = vld [vmem:[#allocation5 + $0x288] sm:$0xf]  ;;  %v6314_v7 = vor.u32 %v9308_v0, %v6313_v63  ;;  %v9336_v63 = vld [vmem:[#allocation5 + $0x18c] sm:$0xf] }
  0xc6   :  { %2813 = vmatpush.bf16.msra.mxu2 %v7242_v14  ;;  %2788 = vmatpush.bf16.msrb.mxu3 %v6698_v20  ;;  %v9372_v2 = vld [vmem:[#allocation5 + $0x2a4] sm:$0xf0]  ;;  %v6443_v0 = vld [vmem:[#allocation5 + $0x1a8] sm:$0xf0] }
  0xc7   :  { %v6825_v6 = vld [vmem:[#allocation5 + $0x488] sm:$0xf]  ;;  %v6570_v11 = vor.u32 %v9372_v2, %v6569_v1 }
  0xc8   :  { %2801 = vmatpush.bf16.msra.mxu0 %v6954_v26  ;;  %2776 = vmatpush.bf16.msrb.mxu1 %v6410_v29  ;;  %v9436_v8 = vld [vmem:[#allocation5 + $0x4a4] sm:$0xf0] }
  0xc9   :  { %v7081_v9 = vld [vmem:[#allocation5 + $0x688] sm:$0xf]  ;;  %v6826_v16 = vor.u32 %v9436_v8, %v6825_v6  ;;  %v6446_v8 = vor.u32 %v9336_v63, %v6443_v0  ;;  %v6283_v63 = vld [vmem:[#allocation5 + $0x68] sm:$0xf0] }
  0xca   :  { %2814 = vmatpush.bf16.msra.mxu2 %v7210_v27  ;;  %2789 = vmatpush.bf16.msrb.mxu3 %v6666_v34  ;;  %v9500_v10 = vld [vmem:[#allocation5 + $0x6a4] sm:$0xf0] }
  0xcb   :  { %v6281_v12 = vld [vmem:[#allocation5 + $0x48] sm:$0xf]  ;;  %v7082_v17 = vor.u32 %v9500_v10, %v7081_v9  ;;  %v9400_v9 = vld [vmem:[#allocation5 + $0x38c] sm:$0xf] }
  0xcc   :  { %2802 = vmatpush.bf16.msra.mxu0 %v6922_v39  ;;  %2777 = vmatpush.bf16.msrb.mxu1 %v6378_v42  ;;  %v9300_v13 = vld [vmem:[#allocation5 + $0x64] sm:$0xf0]  ;;  %v6699_v10 = vld [vmem:[#allocation5 + $0x3a8] sm:$0xf0] }
  0xcd   :  { %7808 = vmatmul.msk.bf16.vlgmr.msrb.gmra.mxu0 %vm2589_vm0, %v10512_v51  ;;  %v6537_v14 = vld [vmem:[#allocation5 + $0x248] sm:$0xf]  ;;  %v6282_v20 = vor.u32 %v9300_v13, %v6281_v12  ;;  %v9328_v12 = vld [vmem:[#allocation5 + $0x14c] sm:$0xf] }
  0xce   :  { %2815 = vmatpush.bf16.msra.mxu2 %v7178_v40  ;;  %2790 = vmatpush.bf16.msrb.mxu3 %v6634_v46  ;;  %v9364_v15 = vld [vmem:[#allocation5 + $0x264] sm:$0xf0]  ;;  %v6411_v13 = vld [vmem:[#allocation5 + $0x168] sm:$0xf0] }
  0xcf   :  { %v6793_v18 = vld [vmem:[#allocation5 + $0x448] sm:$0xf]  ;;  %v6538_v25 = vor.u32 %v9364_v15, %v6537_v14 }
  0xd0   :  { %2803 = vmatpush.bf16.msra.mxu0 %v6890_v53  ;;  %2778 = vmatpush.bf16.msrb.mxu1 %v6346_v57  ;;  %v9428_v19 = vld [vmem:[#allocation5 + $0x464] sm:$0xf0]  ;;  %v6478_v57 = vor.u32 %v9344_v41, %v6475_v44  ;;  %v6603_v44 = vld [vmem:[#allocation5 + $0x2e8] sm:$0xf0] }
  0xd1   :  { %v7049_v21 = vld [vmem:[#allocation5 + $0x648] sm:$0xf]  ;;  %v6794_v32 = vor.u32 %v9428_v19, %v6793_v18 }
  0xd2   :  { %2816 = vmatpush.bf16.msra.mxu2 %v7146_v55  ;;  %2791 = vmatpush.bf16.msrb.mxu3 %v6602_v62  ;;  %v9492_v22 = vld [vmem:[#allocation5 + $0x664] sm:$0xf0] }
  0xd3   :  { %v6249_v24 = vld [vmem:[#allocation5 + $0x8] sm:$0xf]  ;;  %v7050_v34 = vor.u32 %v9492_v22, %v7049_v21  ;;  %v9392_v21 = vld [vmem:[#allocation5 + $0x34c] sm:$0xf] }
  0xd4   :  { %2804 = vmatpush.bf16.msra.mxu0 %v6858_v3  ;;  %2779 = vmatpush.bf16.msrb.mxu1 %v6314_v7  ;;  %v9292_v26 = vld [vmem:[#allocation5 + $0x24] sm:$0xf0]  ;;  %v6667_v22 = vld [vmem:[#allocation5 + $0x368] sm:$0xf0] }
  0xd5   :  { %v6505_v27 = vld [vmem:[#allocation5 + $0x208] sm:$0xf]  ;;  %v6250_v38 = vor.u32 %v9292_v26, %v6249_v24  ;;  %v9320_v24 = vld [vmem:[#allocation5 + $0x10c] sm:$0xf] }
  0xd6   :  { %2817 = vmatpush.bf16.msra.mxu2 %v7114_v5  ;;  %2792 = vmatpush.bf16.msrb.mxu3 %v6570_v11  ;;  %v9356_v28 = vld [vmem:[#allocation5 + $0x224] sm:$0xf0]  ;;  %v6734_v5 = vor.u32 %v9408_v60, %v6731_v61  ;;  %v6571_v60 = vld [vmem:[#allocation5 + $0x2a8] sm:$0xf0] }
  0xd7   :  { %v7497_v29 = vld [vmem:[#allocation5 + $0x9c8] sm:$0xf]  ;;  %v6506_v42 = vor.u32 %v9356_v28, %v6505_v27  ;;  %v6670_v28 = vor.u32 %v9392_v21, %v6667_v22  ;;  %v9464_v22 = vld [vmem:[#allocation5 + $0x58c] sm:$0xf] }
  0xd8   :  { %v9604_v30 = vld [vmem:[#allocation5 + $0x9e4] sm:$0xf0]  ;;  %2805 = vmatpush.bf16.msra.mxu0 %v6826_v16  ;;  %2780 = vmatpush.bf16.msrb.mxu1 %v6282_v20  ;;  %v6414_v20 = vor.u32 %v9328_v12, %v6411_v13  ;;  %v9360_v12 = vld [vmem:[#allocation5 + $0x24c] sm:$0xf] }
  0xd9   :  { %v7753_v31 = vld [vmem:[#allocation5 + $0xbc8] sm:$0xf]  ;;  %v7498_v43 = vor.u32 %v9604_v30, %v7497_v29  ;;  %v6539_v13 = vld [vmem:[#allocation5 + $0x268] sm:$0xf0] }
  0xda   :  { %2818 = vmatpush.bf16.msra.mxu2 %v7082_v17  ;;  %v9668_v35 = vld [vmem:[#allocation5 + $0xbe4] sm:$0xf0]  ;;  %2793 = vmatpush.bf16.msrb.mxu3 %v6538_v25  ;;  %v6702_v17 = vor.u32 %v9400_v9, %v6699_v10  ;;  %v6379_v25 = vld [vmem:[#allocation5 + $0x128] sm:$0xf0]  ;;  %v6542_v21 = vor.u32 %v9360_v12, %v6539_v13 }
  0xdb   :  { %v6761_v36 = vld [vmem:[#allocation5 + $0x408] sm:$0xf]  ;;  %v7754_v47 = vor.u32 %v9668_v35, %v7753_v31  ;;  %v6382_v30 = vor.u32 %v9320_v24, %v6379_v25  ;;  %v9384_v31 = vld [vmem:[#allocation5 + $0x30c] sm:$0xf] }
  0xdc   :  { %v9420_v37 = vld [vmem:[#allocation5 + $0x424] sm:$0xf0]  ;;  %2806 = vmatpush.bf16.msra.mxu0 %v6794_v32  ;;  %2781 = vmatpush.bf16.msrb.mxu1 %v6250_v38  ;;  %v6635_v32 = vld [vmem:[#allocation5 + $0x328] sm:$0xf0] }
  0xdd   :  { %v7017_v39 = vld [vmem:[#allocation5 + $0x608] sm:$0xf]  ;;  %v6762_v50 = vor.u32 %v9420_v37, %v6761_v36  ;;  %v9312_v35 = vld [vmem:[#allocation5 + $0xcc] sm:$0xf] }
  0xde   :  { %v9484_v40 = vld [vmem:[#allocation5 + $0x624] sm:$0xf0]  ;;  %2819 = vmatpush.bf16.msra.mxu2 %v7050_v34  ;;  %2794 = vmatpush.bf16.msrb.mxu3 %v6506_v42  ;;  %v6347_v36 = vld [vmem:[#allocation5 + $0xe8] sm:$0xf0] }
  0xdf   :  { %v7785_v45 = vld [vmem:[#allocation5 + $0xc08] sm:$0xf]  ;;  %v7018_v53 = vor.u32 %v9484_v40, %v7017_v39  ;;  %2782 = vmatmul.bf16.vlgmr.msrb.gmra.mxu1 %v10502_v54  ;;  %v6638_v39 = vor.u32 %v9384_v31, %v6635_v32  ;;  %v6350_v42 = vor.u32 %v9312_v35, %v6347_v36  ;;  %v9536_v9 = vld [vmem:[#allocation5 + $0x7cc] sm:$0xf] }
  0xe0   :  { %v9676_v46 = vld [vmem:[#allocation5 + $0xc24] sm:$0xf0]  ;;  %2826 = vmatpush.bf16.msra.mxu1 %v7498_v43  ;;  %2807 = vmatpush.bf16.msra.mxu0 %v6762_v50  ;;  %v9376_v43 = vld [vmem:[#allocation5 + $0x2cc] sm:$0xf] }
  0xe1   :  { %v7465_v48 = vld [vmem:[#allocation5 + $0x988] sm:$0xf]  ;;  %v7786_v59 = vor.u32 %v9676_v46, %v7785_v45  ;;  %2795 = vmatmul.bf16.vlgmr.msrb.gmra.mxu3 %v10509_v4  ;;  %v9304_v46 = vld [vmem:[#allocation5 + $0x8c] sm:$0xf] }
  0xe2   :  { %v9596_v49 = vld [vmem:[#allocation5 + $0x9a4] sm:$0xf0]  ;;  %2839 = vmatpush.bf16.msra.mxu3 %v7754_v47  ;;  %2820 = vmatpush.bf16.msra.mxu2 %v7018_v53  ;;  %v6315_v47 = vld [vmem:[#allocation5 + $0xa8] sm:$0xf0]  ;;  %v6606_v53 = vor.u32 %v9376_v43, %v6603_v44 }
  0xe3   :  { %v7721_v55 = vld [vmem:[#allocation5 + $0xb88] sm:$0xf]  ;;  %v7466_v62 = vor.u32 %v9596_v49, %v7465_v48  ;;  %2808 = vmatmul.bf16.vlgmr.msra.gmra.mxu0 %v10500_v52  ;;  %v9528_v24 = vld [vmem:[#allocation5 + $0x78c] sm:$0xf] }
  0xe4   :  { %v9660_v56 = vld [vmem:[#allocation5 + $0xba4] sm:$0xf0]  ;;  %2859 = vmatpush.bf16.msrb.mxu0 %v7786_v59  ;;  %v9368_v59 = vld [vmem:[#allocation5 + $0x28c] sm:$0xf] }
  0xe5   :  { %v7722_v1 = vor.u32 %v9660_v56, %v7721_v55  ;;  %v7433_v2 = vld [vmem:[#allocation5 + $0x948] sm:$0xf]  ;;  %2827 = vmatpush.bf16.msra.mxu1 %v7466_v62  ;;  %2821 = vmatmul.bf16.vlgmr.msra.gmra.mxu2 %v10504_v58  ;;  %v9296_v62 = vld [vmem:[#allocation5 + $0x4c] sm:$0xf] }
  0xe6   :  { %v9588_v3 = vld [vmem:[#allocation5 + $0x964] sm:$0xf0]  ;;  %2865 = vmatpush.bf16.msrb.mxu2 %v6478_v57  ;;  %v6318_v57 = vor.u32 %v9304_v46, %v6315_v47  ;;  %v6286_v10 = vor.u32 %v9296_v62, %v6283_v63  ;;  %v9592_v31 = vld [vmem:[#allocation5 + $0x98c] sm:$0xf]  ;;  %v10538_v46 = vld [vmem:[#allocation7] sm:$0xff] }
  0xe7   :  { %v7689_v6 = vld [vmem:[#allocation5 + $0xb48] sm:$0xf]  ;;  %v7434_v11 = vor.u32 %v9588_v3, %v7433_v2  ;;  %2840 = vmatpush.bf16.msra.mxu3 %v7722_v1  ;;  %v7467_v32 = vld [vmem:[#allocation5 + $0x9a8] sm:$0xf0] }
  0xe8   :  { %v9652_v7 = vld [vmem:[#allocation5 + $0xb64] sm:$0xf0]  ;;  %2878 = vmatpush.bf16.msra.mxu0 %v6734_v5  ;;  %v9456_v36 = vld [vmem:[#allocation5 + $0x54c] sm:$0xf] }
  0xe9   :  { %v7690_v14 = vor.u32 %v9652_v7, %v7689_v6  ;;  %v7401_v15 = vld [vmem:[#allocation5 + $0x908] sm:$0xf]  ;;  %2828 = vmatpush.bf16.msra.mxu1 %v7434_v11  ;;  %v6574_v6 = vor.u32 %v9368_v59, %v6571_v60  ;;  %v9472_v7 = vld [vmem:[#allocation5 + $0x5cc] sm:$0xf] }
  0xea   :  { %v9580_v16 = vld [vmem:[#allocation5 + $0x924] sm:$0xf0]  ;;  %2866 = vmatpush.bf16.msrb.mxu2 %v6446_v8  ;;  %v6987_v8 = vld [vmem:[#allocation5 + $0x5e8] sm:$0xf0] }
  0xeb   :  { %v7657_v18 = vld [vmem:[#allocation5 + $0xb08] sm:$0xf]  ;;  %v7402_v4 = vor.u32 %v9580_v16, %v7401_v15  ;;  %2841 = vmatpush.bf16.msra.mxu3 %v7690_v14  ;;  %v7243_v11 = vld [vmem:[#allocation5 + $0x7e8] sm:$0xf0] }
  0xec   :  { %v9644_v19 = vld [vmem:[#allocation5 + $0xb24] sm:$0xf0]  ;;  %2879 = vmatpush.bf16.msra.mxu0 %v6702_v17  ;;  %v9288_v15 = vld [vmem:[#allocation5 + $0xc] sm:$0xf] }
  0xed   :  { %v7658_v52 = vor.u32 %v9644_v19, %v7657_v18  ;;  %v7369_v26 = vld [vmem:[#allocation5 + $0x8c8] sm:$0xf]  ;;  %2829 = vmatpush.bf16.msra.mxu1 %v7402_v4  ;;  %v6251_v16 = vld [vmem:[#allocation5 + $0x28] sm:$0xf0]  ;;  %v6990_v18 = vor.u32 %v9472_v7, %v6987_v8 }
  0xee   :  { %v9572_v27 = vld [vmem:[#allocation5 + $0x8e4] sm:$0xf0]  ;;  %2867 = vmatpush.bf16.msrb.mxu2 %v6414_v20  ;;  %v9600_v19 = vld [vmem:[#allocation5 + $0x9cc] sm:$0xf]  ;;  %v6254_v25 = vor.u32 %v9288_v15, %v6251_v16 }
  0xef   :  { %v7625_v54 = vld [vmem:[#allocation5 + $0xac8] sm:$0xf]  ;;  %v7370_v34 = vor.u32 %v9572_v27, %v7369_v26  ;;  %2842 = vmatpush.bf16.msra.mxu3 %v7658_v52  ;;  %v7499_v20 = vld [vmem:[#allocation5 + $0x9e8] sm:$0xf0] }
  0xf0   :  { %v9636_v29 = vld [vmem:[#allocation5 + $0xae4] sm:$0xf0]  ;;  %2880 = vmatpush.bf16.msra.mxu0 %v6670_v28  ;;  %v6955_v4 = vld [vmem:[#allocation5 + $0x5a8] sm:$0xf0]  ;;  %v7502_v28 = vor.u32 %v9600_v19, %v7499_v20 }
  0xf1   :  { %v7626_v58 = vor.u32 %v9636_v29, %v7625_v54  ;;  %v7337_v37 = vld [vmem:[#allocation5 + $0x888] sm:$0xf]  ;;  %2830 = vmatpush.bf16.msra.mxu1 %v7370_v34  ;;  %v7211_v52 = vld [vmem:[#allocation5 + $0x7a8] sm:$0xf0] }
  0xf2   :  { %v9564_v38 = vld [vmem:[#allocation5 + $0x8a4] sm:$0xf0]  ;;  %2868 = vmatpush.bf16.msrb.mxu2 %v6382_v30  ;;  %v9352_v26 = vld [vmem:[#allocation5 + $0x20c] sm:$0xf]  ;;  %v6958_v30 = vor.u32 %v9464_v22, %v6955_v4  ;;  %v7214_v34 = vor.u32 %v9528_v24, %v7211_v52 }
  0xf3   :  { %v7593_v40 = vld [vmem:[#allocation5 + $0xa88] sm:$0xf]  ;;  %v7338_v45 = vor.u32 %v9564_v38, %v7337_v37  ;;  %2843 = vmatpush.bf16.msra.mxu3 %v7626_v58  ;;  %7809 = vmatmul.msk.bf16.vlgmr.msrb.gmra.mxu0 %vm2589_vm0, %v10512_v51  ;;  %v7246_v51 = vor.u32 %v9536_v9, %v7243_v11  ;;  %v6507_v27 = vld [vmem:[#allocation5 + $0x228] sm:$0xf0] }
  0xf4   :  { %v9628_v41 = vld [vmem:[#allocation5 + $0xaa4] sm:$0xf0]  ;;  %2881 = vmatpush.bf16.msra.mxu0 %v6638_v39  ;;  %v9664_v54 = vld [vmem:[#allocation5 + $0xbcc] sm:$0xf]  ;;  %v6510_v35 = vor.u32 %v9352_v26, %v6507_v27 }
  0xf5   :  { %v7594_v48 = vor.u32 %v9628_v41, %v7593_v40  ;;  %v7305_v49 = vld [vmem:[#allocation5 + $0x848] sm:$0xf]  ;;  %2831 = vmatpush.bf16.msra.mxu1 %v7338_v45  ;;  %v7755_v29 = vld [vmem:[#allocation5 + $0xbe8] sm:$0xf0]  ;;  %v7470_v40 = vor.u32 %v9592_v31, %v7467_v32 }
  0xf6   :  { %v9556_v50 = vld [vmem:[#allocation5 + $0x864] sm:$0xf0]  ;;  %2869 = vmatpush.bf16.msrb.mxu2 %v6350_v42  ;;  %v6923_v58 = vld [vmem:[#allocation5 + $0x568] sm:$0xf0]  ;;  %v7758_v37 = vor.u32 %v9664_v54, %v7755_v29 }
  0xf7   :  { %v7561_v55 = vld [vmem:[#allocation5 + $0xa48] sm:$0xf]  ;;  %v7306_v61 = vor.u32 %v9556_v50, %v7305_v49  ;;  %2844 = vmatpush.bf16.msra.mxu3 %v7594_v48  ;;  %v9520_v38 = vld [vmem:[#allocation5 + $0x74c] sm:$0xf]  ;;  %v6926_v43 = vor.u32 %v9456_v36, %v6923_v58 }
  0xf8   :  { %v9620_v56 = vld [vmem:[#allocation5 + $0xa64] sm:$0xf0]  ;;  %2882 = vmatpush.bf16.msra.mxu0 %v6606_v53  ;;  %v7179_v39 = vld [vmem:[#allocation5 + $0x768] sm:$0xf0] }
  0xf9   :  { %v7273_v0 = vld [vmem:[#allocation5 + $0x808] sm:$0xf]  ;;  %v7562_v1 = vor.u32 %v9620_v56, %v7561_v55  ;;  %2832 = vmatpush.bf16.msra.mxu1 %v7306_v61  ;;  %v9656_v41 = vld [vmem:[#allocation5 + $0xb8c] sm:$0xf]  ;;  %v7182_v47 = vor.u32 %v9520_v38, %v7179_v39  ;;  %v595_v56 = vperm.slane %v10538_v46, 0 }
  0xfa   :  { %v9548_v2 = vld [vmem:[#allocation5 + $0x824] sm:$0xf0]  ;;  %2870 = vmatpush.bf16.msrb.mxu2 %v6318_v57  ;;  %v7723_v42 = vld [vmem:[#allocation5 + $0xba8] sm:$0xf0] }
  0xfb   :  { %v7529_v3 = vld [vmem:[#allocation5 + $0xa08] sm:$0xf]  ;;  %v7274_v14 = vor.u32 %v9548_v2, %v7273_v0  ;;  %2845 = vmatpush.bf16.msra.mxu3 %v7562_v1  ;;  %v9584_v44 = vld [vmem:[#allocation5 + $0x94c] sm:$0xf]  ;;  %v7726_v49 = vor.u32 %v9656_v41, %v7723_v42 }
  0xfc   :  { %v9612_v5 = vld [vmem:[#allocation5 + $0xa24] sm:$0xf0]  ;;  %2883 = vmatpush.bf16.msra.mxu0 %v6574_v6  ;;  %v7435_v45 = vld [vmem:[#allocation5 + $0x968] sm:$0xf0] }
  0xfd   :  { %v7530_v17 = vor.u32 %v9612_v5, %v7529_v3  ;;  %2833 = vmatpush.bf16.msra.mxu1 %v7274_v14  ;;  %v6891_v48 = vld [vmem:[#allocation5 + $0x528] sm:$0xf0]  ;;  %v7438_v55 = vor.u32 %v9584_v44, %v7435_v45  ;;  %v10544_v63 = vld.sshfl [vmem:[#allocation1 + $0x8] sm:$0xff pattern:$0x73625140]  ;;  %v2601_v3 = vpop.f32.mrf.mxu0 }
  0xfe   :  { %2871 = vmatpush.bf16.msrb.mxu2 %v6286_v10  ;;  %v10540_v50 = vld.sshfl [vmem:[#allocation1] sm:$0xff pattern:$0x73625140]  ;;  %v2602_v8 = vadd.f32 %v2601_v3, %v595_v56 }
  0xff   :  { %2846 = vmatpush.bf16.msra.mxu3 %v7530_v17  ;;  %v7147_v53 = vld [vmem:[#allocation5 + $0x728] sm:$0xf0]  ;;  %v2640_v54 = vpop.f32.mrf.mxu3 }
 0x100   :  { %2884 = vmatpush.bf16.msra.mxu0 %v6542_v21  ;;  %2834 = vmatmul.bf16.vlgmr.msra.gmra.mxu1 %v10516_v23  ;;  %v9448_v23 = vld [vmem:[#allocation5 + $0x50c] sm:$0xf] }
 0x101   :  { %2891 = vmatpush.bf16.msrb.mxu1 %v6990_v18  ;;  %v9648_v57 = vld [vmem:[#allocation5 + $0xb4c] sm:$0xf]  ;;  %v6894_v60 = vor.u32 %v9448_v23, %v6891_v48  ;;  %v2614_v18 = vpop.f32.mrf.mxu1 }
 0x102   :  { %2872 = vmatpush.bf16.msrb.mxu2 %v6254_v25  ;;  %2847 = vmatmul.bf16.vlgmr.msra.gmra.mxu3 %v10518_v33  ;;  %v9512_v33 = vld [vmem:[#allocation5 + $0x70c] sm:$0xf]  ;;  %v2615_v21 = vadd.f32 %v2614_v18, %v2602_v8  ;;  %v2627_v25 = vpop.f32.mrf.mxu2  ;;  %v6993_v18 = vld [vmem:[#allocation5 + $0x5d0] sm:$0xf] }
 0x103   :  { %2904 = vmatpush.bf16.msrb.mxu3 %v7246_v51  ;;  %v7691_v59 = vld [vmem:[#allocation5 + $0xb68] sm:$0xf0]  ;;  %v7150_v0 = vor.u32 %v9512_v33, %v7147_v53  ;;  %v6737_v33 = vld [vmem:[#allocation5 + $0x3d0] sm:$0xf] }
 0x104   :  { %2885 = vmatpush.bf16.msra.mxu0 %v6510_v35  ;;  %v9576_v61 = vld [vmem:[#allocation5 + $0x90c] sm:$0xf]  ;;  %v7694_v5 = vor.u32 %v9648_v57, %v7691_v59  ;;  %v9413_v53 = vld [vmem:[#allocation5 + $0x3ec] sm:$0xf0] }
 0x105   :  { %2892 = vmatpush.bf16.msrb.mxu1 %v6958_v30  ;;  %2873 = vmatmul.bf16.vlgmr.msrb.gmra.mxu2 %v10540_v50  ;;  %v7403_v62 = vld [vmem:[#allocation5 + $0x928] sm:$0xf0]  ;;  %v2603_v36 = vpop.f32.mrf.mxu0  ;;  %v9349_v57 = vld [vmem:[#allocation5 + $0x1ec] sm:$0xf0]  ;;  %v6738_v3 = vor.u32 %v9413_v53, %v6737_v33 }
 0x106   :  { %2917 = vmatpush.bf16.msra.mxu2 %v7502_v28  ;;  %v9440_v1 = vld [vmem:[#allocation5 + $0x4cc] sm:$0xf]  ;;  %v7406_v9 = vor.u32 %v9576_v61, %v7403_v62  ;;  %v2628_v28 = vadd.f32 %v2627_v25, %v2615_v21  ;;  %v9541_v21 = vld [vmem:[#allocation5 + $0x7ec] sm:$0xf0] }
 0x107   :  { %2905 = vmatpush.bf16.msrb.mxu3 %v7214_v34  ;;  %2886 = vmatmul.bf16.vlgmr.msra.gmra.mxu0 %v10544_v63  ;;  %v6859_v2 = vld [vmem:[#allocation5 + $0x4e8] sm:$0xf0]  ;;  %v10549_v25 = vld.sshfl [vmem:[#allocation1 + $0x10] sm:$0xff pattern:$0x73625140] }
 0x108   :  { %2930 = vmatpush.bf16.msrb.mxu0 %v7758_v37  ;;  %v9504_v6 = vld [vmem:[#allocation5 + $0x6cc] sm:$0xf]  ;;  %v6862_v12 = vor.u32 %v9440_v1, %v6859_v2  ;;  %v10547_v58 = vadd.f32 %v2640_v54, %v2628_v28  ;;  %v9333_v28 = vld [vmem:[#allocation5 + $0x16c] sm:$0xf0] }
 0x109   :  { %2893 = vmatpush.bf16.msrb.mxu1 %v6926_v43  ;;  %v7115_v7 = vld [vmem:[#allocation5 + $0x6e8] sm:$0xf0]  ;;  %v10552_v54 = vld.sshfl [vmem:[#allocation1 + $0x18] sm:$0xff pattern:$0x73625140] }
 0x10a   :  { %2918 = vmatpush.bf16.msra.mxu2 %v7470_v40  ;;  %v9640_v10 = vld [vmem:[#allocation5 + $0xb0c] sm:$0xf]  ;;  %v7118_v15 = vor.u32 %v9504_v6, %v7115_v7  ;;  %v2629_v61 = vpop.f32.mrf.mxu2  ;;  %v2642_v7 = vpop.f32.mrf.mxu3  ;;  %v9533_v36 = vld [vmem:[#allocation5 + $0x7ac] sm:$0xf0] }
 0x10b   :  { %2906 = vmatpush.bf16.msrb.mxu3 %v7182_v47  ;;  %v7659_v11 = vld [vmem:[#allocation5 + $0xb28] sm:$0xf0]  ;;  %v10558_v53 = vld.sshfl [vmem:[#allocation1 + $0x28] sm:$0xff pattern:$0x73625140] }
 0x10c   :  { %2931 = vmatpush.bf16.msrb.mxu0 %v7726_v49  ;;  %v9568_v13 = vld [vmem:[#allocation5 + $0x8cc] sm:$0xf]  ;;  %v7662_v19 = vor.u32 %v9640_v10, %v7659_v11  ;;  %v6481_v49 = vld [vmem:[#allocation5 + $0x1d0] sm:$0xf] }
 0x10d   :  { %2894 = vmatpush.bf16.msrb.mxu1 %v6894_v60  ;;  %v7371_v14 = vld [vmem:[#allocation5 + $0x8e8] sm:$0xf0]  ;;  %v6482_v8 = vor.u32 %v9349_v57, %v6481_v49  ;;  %v6705_v10 = vld [vmem:[#allocation5 + $0x390] sm:$0xf] }
 0x10e   :  { %2919 = vmatpush.bf16.msra.mxu2 %v7438_v55  ;;  %v9432_v16 = vld [vmem:[#allocation5 + $0x48c] sm:$0xf]  ;;  %v7374_v22 = vor.u32 %v9568_v13, %v7371_v14  ;;  %v2616_v55 = vpop.f32.mrf.mxu1  ;;  %v9405_v11 = vld [vmem:[#allocation5 + $0x3ac] sm:$0xf0] }
 0x10f   :  { %2907 = vmatpush.bf16.msrb.mxu3 %v7150_v0  ;;  %v6827_v17 = vld [vmem:[#allocation5 + $0x4a8] sm:$0xf0]  ;;  %v6449_v13 = vld [vmem:[#allocation5 + $0x190] sm:$0xf] }
 0x110   :  { %2932 = vmatpush.bf16.msrb.mxu0 %v7694_v5  ;;  %v9496_v20 = vld [vmem:[#allocation5 + $0x68c] sm:$0xf]  ;;  %v6830_v52 = vor.u32 %v9432_v16, %v6827_v17  ;;  %v9341_v14 = vld [vmem:[#allocation5 + $0x1ac] sm:$0xf0] }
 0x111   :  { %v7083_v51 = vld [vmem:[#allocation5 + $0x6a8] sm:$0xf0]  ;;  %2895 = vmatpush.bf16.msrb.mxu1 %v6862_v12  ;;  %v9525_v49 = vld [vmem:[#allocation5 + $0x76c] sm:$0xf0] }
 0x112   :  { %2920 = vmatpush.bf16.msra.mxu2 %v7406_v9  ;;  %v9632_v4 = vld [vmem:[#allocation5 + $0xacc] sm:$0xf]  ;;  %v7086_v29 = vor.u32 %v9496_v20, %v7083_v51  ;;  %v6706_v20 = vor.u32 %v9405_v11, %v6705_v10  ;;  %v7249_v51 = vld [vmem:[#allocation5 + $0x7d0] sm:$0xf] }
 0x113   :  { %v7627_v24 = vld [vmem:[#allocation5 + $0xae8] sm:$0xf0]  ;;  %2908 = vmatpush.bf16.msrb.mxu3 %v7118_v15  ;;  %v6609_v55 = vld [vmem:[#allocation5 + $0x2d0] sm:$0xf] }
 0x114   :  { %v9560_v26 = vld [vmem:[#allocation5 + $0x88c] sm:$0xf]  ;;  %2933 = vmatpush.bf16.msrb.mxu0 %v7662_v19  ;;  %v7630_v32 = vor.u32 %v9632_v4, %v7627_v24  ;;  %v9477_v19 = vld [vmem:[#allocation5 + $0x5ec] sm:$0xf0] }
 0x115   :  { %v7339_v27 = vld [vmem:[#allocation5 + $0x8a8] sm:$0xf0]  ;;  %2896 = vmatpush.bf16.msrb.mxu1 %v6830_v52  ;;  %v6673_v4 = vld [vmem:[#allocation5 + $0x350] sm:$0xf]  ;;  %v2653_v57 = vpop.f32.mrf.mxu0 }
 0x116   :  { %v9424_v30 = vld [vmem:[#allocation5 + $0x44c] sm:$0xf]  ;;  %2921 = vmatpush.bf16.msra.mxu2 %v7374_v22  ;;  %v7342_v37 = vor.u32 %v9560_v26, %v7339_v27  ;;  %v6450_v22 = vor.u32 %v9341_v14, %v6449_v13  ;;  %v9397_v24 = vld [vmem:[#allocation5 + $0x36c] sm:$0xf0]  ;;  %v6994_v26 = vor.u32 %v9477_v19, %v6993_v18  ;;  %v596_v19 = vperm.slane %v10538_v46, 1 }
 0x117   :  { %v6795_v31 = vld [vmem:[#allocation5 + $0x468] sm:$0xf0]  ;;  %2909 = vmatpush.bf16.msrb.mxu3 %v7086_v29  ;;  %v6417_v27 = vld [vmem:[#allocation5 + $0x150] sm:$0xf]  ;;  %v7250_v29 = vor.u32 %v9541_v21, %v7249_v51 }
 0x118   :  { %v9488_v34 = vld [vmem:[#allocation5 + $0x64c] sm:$0xf]  ;;  %v6798_v40 = vor.u32 %v9424_v30, %v6795_v31  ;;  %2934 = vmatpush.bf16.msrb.mxu0 %v7630_v32  ;;  %v2679_v30 = vpop.f32.mrf.mxu2  ;;  %v6961_v31 = vld [vmem:[#allocation5 + $0x590] sm:$0xf] }
 0x119   :  { %v7051_v35 = vld [vmem:[#allocation5 + $0x668] sm:$0xf0]  ;;  %v9469_v32 = vld [vmem:[#allocation5 + $0x5ac] sm:$0xf0] }
 0x11a   :  { %v9624_v38 = vld [vmem:[#allocation5 + $0xa8c] sm:$0xf]  ;;  %v7054_v44 = vor.u32 %v9488_v34, %v7051_v35  ;;  %2922 = vmatpush.bf16.msra.mxu2 %v7342_v37  ;;  %2897 = vmatpush.bf16.msrb.mxu1 %v6798_v40  ;;  %v6674_v34 = vor.u32 %v9397_v24, %v6673_v4  ;;  %v7217_v35 = vld [vmem:[#allocation5 + $0x790] sm:$0xf] }
 0x11b   :  { %v7595_v39 = vld [vmem:[#allocation5 + $0xaa8] sm:$0xf0]  ;;  %v9389_v40 = vld [vmem:[#allocation5 + $0x32c] sm:$0xf0] }
 0x11c   :  { %v9552_v41 = vld [vmem:[#allocation5 + $0x84c] sm:$0xf]  ;;  %v7598_v48 = vor.u32 %v9624_v38, %v7595_v39  ;;  %2910 = vmatpush.bf16.msrb.mxu3 %v7054_v44  ;;  %v6418_v38 = vor.u32 %v9333_v28, %v6417_v27  ;;  %v6641_v39 = vld [vmem:[#allocation5 + $0x310] sm:$0xf]  ;;  %v7218_v44 = vor.u32 %v9533_v36, %v7217_v35 }
 0x11d   :  { %v7307_v42 = vld [vmem:[#allocation5 + $0x868] sm:$0xf0]  ;;  %v9317_v61 = vld [vmem:[#allocation5 + $0xec] sm:$0xf0]  ;;  %v2655_v28 = vpop.f32.mrf.mxu0 }
 0x11e   :  { %v9416_v43 = vld [vmem:[#allocation5 + $0x40c] sm:$0xf]  ;;  %v7310_v56 = vor.u32 %v9552_v41, %v7307_v42  ;;  %2935 = vmatpush.bf16.msrb.mxu0 %v7598_v48  ;;  %v6962_v41 = vor.u32 %v9469_v32, %v6961_v31  ;;  %v6385_v42 = vld [vmem:[#allocation5 + $0x110] sm:$0xf] }
 0x11f   :  { %v6763_v45 = vld [vmem:[#allocation5 + $0x428] sm:$0xf0]  ;;  %v7185_v48 = vld [vmem:[#allocation5 + $0x750] sm:$0xf] }
 0x120   :  { %v9480_v47 = vld [vmem:[#allocation5 + $0x60c] sm:$0xf]  ;;  %v6766_v62 = vor.u32 %v9416_v43, %v6763_v45  ;;  %2923 = vmatpush.bf16.msra.mxu2 %v7310_v56  ;;  %v9325_v43 = vld [vmem:[#allocation5 + $0x12c] sm:$0xf0] }
 0x121   :  { %v7019_v23 = vld [vmem:[#allocation5 + $0x628] sm:$0xf0]  ;;  %v6929_v45 = vld [vmem:[#allocation5 + $0x550] sm:$0xf]  ;;  %v6386_v33 = vor.u32 %v9325_v43, %v6385_v42 }
 0x122   :  { %v9616_v59 = vld [vmem:[#allocation5 + $0xa4c] sm:$0xf]  ;;  %v7022_v2 = vor.u32 %v9480_v47, %v7019_v23  ;;  %2898 = vmatpush.bf16.msrb.mxu1 %v6766_v62  ;;  %v9461_v47 = vld [vmem:[#allocation5 + $0x56c] sm:$0xf0]  ;;  %v6642_v23 = vor.u32 %v9389_v40, %v6641_v39  ;;  %v2654_v62 = vadd.f32 %v2653_v57, %v10547_v58 }
 0x123   :  { %v7563_v60 = vld [vmem:[#allocation5 + $0xa68] sm:$0xf0]  ;;  %v9381_v56 = vld [vmem:[#allocation5 + $0x2ec] sm:$0xf0] }
 0x124   :  { %v9544_v0 = vld [vmem:[#allocation5 + $0x80c] sm:$0xf]  ;;  %v7566_v9 = vor.u32 %v9616_v59, %v7563_v60  ;;  %2911 = vmatpush.bf16.msrb.mxu3 %v7022_v2  ;;  %v6930_v59 = vor.u32 %v9461_v47, %v6929_v45  ;;  %v6353_v60 = vld [vmem:[#allocation5 + $0xd0] sm:$0xf]  ;;  %v2681_v2 = vpop.f32.mrf.mxu2 }
 0x125   :  { %v7275_v1 = vld [vmem:[#allocation5 + $0x828] sm:$0xf0]  ;;  %2899 = vmatmul.bf16.vlgmr.msrb.gmra.mxu1 %v10549_v25  ;;  %v7153_v7 = vld [vmem:[#allocation5 + $0x710] sm:$0xf]  ;;  %v6354_v10 = vor.u32 %v9317_v61, %v6353_v60 }
 0x126   :  { %v9672_v5 = vld [vmem:[#allocation5 + $0xc0c] sm:$0xf]  ;;  %v7278_v12 = vor.u32 %v9544_v0, %v7275_v1  ;;  %2969 = vmatpush.bf16.msra.mxu1 %v6738_v3  ;;  %2936 = vmatpush.bf16.msrb.mxu0 %v7566_v9  ;;  %v2666_v0 = vpop.f32.mrf.mxu1  ;;  %v7186_v1 = vor.u32 %v9525_v49, %v7185_v48  ;;  %v6897_v3 = vld [vmem:[#allocation5 + $0x510] sm:$0xf] }
 0x127   :  { %v7787_v6 = vld [vmem:[#allocation5 + $0xc28] sm:$0xf0]  ;;  %2912 = vmatmul.bf16.vlgmr.msrb.gmra.mxu3 %v10552_v54  ;;  %v2667_v9 = vadd.f32 %v2666_v0, %v2654_v62  ;;  %v6577_v11 = vld [vmem:[#allocation5 + $0x290] sm:$0xf] }
 0x128   :  { %v9608_v15 = vld [vmem:[#allocation5 + $0xa0c] sm:$0xf]  ;;  %v7790_v17 = vor.u32 %v9672_v5, %v7787_v6  ;;  %2956 = vmatpush.bf16.msra.mxu3 %v6482_v8  ;;  %2924 = vmatpush.bf16.msra.mxu2 %v7278_v12  ;;  %v9453_v5 = vld [vmem:[#allocation5 + $0x52c] sm:$0xf0]  ;;  %v6610_v6 = vor.u32 %v9381_v56, %v6609_v55 }
 0x129   :  { %v7531_v16 = vld [vmem:[#allocation5 + $0xa28] sm:$0xf0]  ;;  %v9517_v8 = vld [vmem:[#allocation5 + $0x72c] sm:$0xf0]  ;;  %v6898_v13 = vor.u32 %v9453_v5, %v6897_v3 }
 0x12a   :  { %v7534_v52 = vor.u32 %v9608_v15, %v7531_v16  ;;  %2970 = vmatpush.bf16.msra.mxu1 %v6706_v20  ;;  %v10555_v37 = vld.sshfl [vmem:[#allocation1 + $0x20] sm:$0xff pattern:$0x73625140]  ;;  %v10562_v16 = vadd.f32 %v2679_v30, %v2667_v9  ;;  %v7154_v58 = vor.u32 %v9517_v8, %v7153_v7  ;;  %v10565_v42 = vld.sshfl [vmem:[#allocation1 + $0x30] sm:$0xff pattern:$0x73625140] }
 0x12b   :  { %2925 = vmatmul.bf16.vlgmr.msra.gmra.mxu2 %v10555_v37  ;;  %v9373_v12 = vld [vmem:[#allocation5 + $0x2ac] sm:$0xf0] }
 0x12c   :  { %2950 = vmatpush.bf16.msrb.mxu2 %v7790_v17  ;;  %2957 = vmatpush.bf16.msra.mxu3 %v6450_v22  ;;  %v6321_v14 = vld [vmem:[#allocation5 + $0x90] sm:$0xf]  ;;  %v6578_v20 = vor.u32 %v9373_v12, %v6577_v11 }
 0x12d   :  { %2937 = vmatpush.bf16.msrb.mxu0 %v7534_v52  ;;  %v9309_v15 = vld [vmem:[#allocation5 + $0xac] sm:$0xf0] }
 0x12e   :  { %2971 = vmatpush.bf16.msra.mxu1 %v6674_v34  ;;  %v6865_v17 = vld [vmem:[#allocation5 + $0x4d0] sm:$0xf]  ;;  %v6322_v22 = vor.u32 %v9309_v15, %v6321_v14  ;;  %v2668_v35 = vpop.f32.mrf.mxu1 }
 0x12f   :  { %v9445_v18 = vld [vmem:[#allocation5 + $0x4ec] sm:$0xf0]  ;;  %v6451_v35 = vld [vmem:[#allocation5 + $0x1b0] sm:$0xf0] }
 0x130   :  { %2982 = vmatpush.bf16.msra.mxu2 %v6994_v26  ;;  %2958 = vmatpush.bf16.msra.mxu3 %v6418_v38  ;;  %v7121_v51 = vld [vmem:[#allocation5 + $0x6d0] sm:$0xf]  ;;  %v6866_v52 = vor.u32 %v9445_v18, %v6865_v17 }
 0x131   :  { %2995 = vmatpush.bf16.msra.mxu0 %v7250_v29  ;;  %v9509_v21 = vld [vmem:[#allocation5 + $0x6ec] sm:$0xf0]  ;;  %v2692_v29 = vpop.f32.mrf.mxu3 }
 0x132   :  { %2938 = vmatmul.bf16.vlgmr.msrb.gmra.mxu0 %v10558_v53  ;;  %2972 = vmatpush.bf16.msra.mxu1 %v6642_v23  ;;  %v6545_v4 = vld [vmem:[#allocation5 + $0x250] sm:$0xf]  ;;  %v7122_v30 = vor.u32 %v9509_v21, %v7121_v51  ;;  %v2693_v34 = vadd.f32 %v2692_v29, %v596_v19  ;;  %v6483_v51 = vld [vmem:[#allocation5 + $0x1f0] sm:$0xf0] }
 0x133   :  { %v9365_v24 = vld [vmem:[#allocation5 + $0x26c] sm:$0xf0]  ;;  %v9409_v29 = vld [vmem:[#allocation5 + $0x3d4] sm:$0xf] }
 0x134   :  { %2983 = vmatpush.bf16.msra.mxu2 %v6962_v41  ;;  %2959 = vmatpush.bf16.msra.mxu3 %v6386_v33  ;;  %v6289_v26 = vld [vmem:[#allocation5 + $0x50] sm:$0xf]  ;;  %v6546_v36 = vor.u32 %v9365_v24, %v6545_v4  ;;  %v2705_v41 = vpop.f32.mrf.mxu2 }
 0x135   :  { %2996 = vmatpush.bf16.msra.mxu0 %v7218_v44  ;;  %v9301_v27 = vld [vmem:[#allocation5 + $0x6c] sm:$0xf0]  ;;  %v10569_v23 = vadd.f32 %v2705_v41, %v2693_v34  ;;  %v9337_v34 = vld [vmem:[#allocation5 + $0x194] sm:$0xf] }
 0x136   :  { %2973 = vmatpush.bf16.msra.mxu1 %v6610_v6  ;;  %v6833_v31 = vld [vmem:[#allocation5 + $0x490] sm:$0xf]  ;;  %v6290_v43 = vor.u32 %v9301_v27, %v6289_v26 }
 0x137   :  { %v9437_v32 = vld [vmem:[#allocation5 + $0x4ac] sm:$0xf0] }
 0x138   :  { %2984 = vmatpush.bf16.msra.mxu2 %v6930_v59  ;;  %2960 = vmatpush.bf16.msra.mxu3 %v6354_v10  ;;  %v7089_v38 = vld [vmem:[#allocation5 + $0x690] sm:$0xf]  ;;  %v6834_v48 = vor.u32 %v9437_v32, %v6833_v31 }
 0x139   :  { %2997 = vmatpush.bf16.msra.mxu0 %v7186_v1  ;;  %v9501_v39 = vld [vmem:[#allocation5 + $0x6ac] sm:$0xf0]  ;;  %v2694_v10 = vpop.f32.mrf.mxu3 }
 0x13a   :  { %2974 = vmatpush.bf16.msra.mxu1 %v6578_v20  ;;  %v6257_v40 = vld [vmem:[#allocation5 + $0x10] sm:$0xf]  ;;  %v7090_v56 = vor.u32 %v9501_v39, %v7089_v38  ;;  %v9345_v20 = vld [vmem:[#allocation5 + $0x1d4] sm:$0xf] }
 0x13b   :  { %7810 = vmatmul.msk.bf16.vlgmr.msrb.gmra.mxu2 %vm2589_vm0, %v10565_v42  ;;  %v9293_v44 = vld [vmem:[#allocation5 + $0x2c] sm:$0xf0]  ;;  %v6486_v31 = vor.u32 %v9345_v20, %v6483_v51  ;;  %v6355_v20 = vld [vmem:[#allocation5 + $0xf0] sm:$0xf0] }
 0x13c   :  { %2985 = vmatpush.bf16.msra.mxu2 %v6898_v13  ;;  %2961 = vmatpush.bf16.msra.mxu3 %v6322_v22  ;;  %v6513_v45 = vld [vmem:[#allocation5 + $0x210] sm:$0xf]  ;;  %v6258_v1 = vor.u32 %v9293_v44, %v6257_v40  ;;  %v2707_v18 = vpop.f32.mrf.mxu2  ;;  %v9401_v44 = vld [vmem:[#allocation5 + $0x394] sm:$0xf] }
 0x13d   :  { %2998 = vmatpush.bf16.msra.mxu0 %v7154_v58  ;;  %v9357_v47 = vld [vmem:[#allocation5 + $0x22c] sm:$0xf0] }
 0x13e   :  { %v7505_v49 = vld [vmem:[#allocation5 + $0x9d0] sm:$0xf]  ;;  %2975 = vmatpush.bf16.msra.mxu1 %v6546_v36  ;;  %v6514_v61 = vor.u32 %v9357_v47, %v6513_v45  ;;  %v6707_v45 = vld [vmem:[#allocation5 + $0x3b0] sm:$0xf0]  ;;  %v6454_v47 = vor.u32 %v9337_v34, %v6451_v35 }
 0x13f   :  { %v7761_v33 = vld [vmem:[#allocation5 + $0xbd0] sm:$0xf]  ;;  %v9305_v35 = vld [vmem:[#allocation5 + $0x94] sm:$0xf] }
 0x140   :  { %2986 = vmatpush.bf16.msra.mxu2 %v6866_v52  ;;  %v9669_v55 = vld [vmem:[#allocation5 + $0xbec] sm:$0xf0]  ;;  %2962 = vmatpush.bf16.msra.mxu3 %v6290_v43 }
 0x141   :  { %2999 = vmatpush.bf16.msra.mxu0 %v7122_v30  ;;  %v9605_v57 = vld [vmem:[#allocation5 + $0x9ec] sm:$0xf0]  ;;  %v7762_v2 = vor.u32 %v9669_v55, %v7761_v33  ;;  %v6739_v30 = vld [vmem:[#allocation5 + $0x3f0] sm:$0xf0] }
 0x142   :  { %v6801_v59 = vld [vmem:[#allocation5 + $0x450] sm:$0xf]  ;;  %v7506_v5 = vor.u32 %v9605_v57, %v7505_v49  ;;  %2976 = vmatpush.bf16.msra.mxu1 %v6514_v61  ;;  %v6742_v38 = vor.u32 %v9409_v29, %v6739_v30  ;;  %v9329_v49 = vld [vmem:[#allocation5 + $0x154] sm:$0xf] }
 0x143   :  { %v9429_v60 = vld [vmem:[#allocation5 + $0x46c] sm:$0xf0]  ;;  %v6419_v33 = vld [vmem:[#allocation5 + $0x170] sm:$0xf0] }
 0x144   :  { %v7057_v62 = vld [vmem:[#allocation5 + $0x650] sm:$0xf]  ;;  %2987 = vmatpush.bf16.msra.mxu2 %v6834_v48  ;;  %v6802_v6 = vor.u32 %v9429_v60, %v6801_v59  ;;  %2963 = vmatpush.bf16.msra.mxu3 %v6258_v1  ;;  %v2718_v1 = vpop.f32.mrf.mxu0  ;;  %v2744_v30 = vpop.f32.mrf.mxu3 }
 0x145   :  { %v9493_v0 = vld [vmem:[#allocation5 + $0x66c] sm:$0xf0]  ;;  %3000 = vmatpush.bf16.msra.mxu0 %v7090_v56  ;;  %2977 = vmatmul.bf16.vlgmr.msra.gmra.mxu1 %v10544_v63  ;;  %v6710_v56 = vor.u32 %v9401_v44, %v6707_v45 }
 0x146   :  { %v7473_v3 = vld [vmem:[#allocation5 + $0x990] sm:$0xf]  ;;  %v7058_v11 = vor.u32 %v9493_v0, %v7057_v62  ;;  %3021 = vmatpush.bf16.msrb.mxu1 %v7762_v2  ;;  %v9393_v62 = vld [vmem:[#allocation5 + $0x354] sm:$0xf]  ;;  %v6422_v2 = vor.u32 %v9329_v49, %v6419_v33 }
 0x147   :  { %v9597_v7 = vld [vmem:[#allocation5 + $0x9ac] sm:$0xf0]  ;;  %2964 = vmatmul.bf16.vlgmr.msra.gmra.mxu3 %v10540_v50  ;;  %v6675_v0 = vld [vmem:[#allocation5 + $0x370] sm:$0xf0] }
 0x148   :  { %v7729_v8 = vld [vmem:[#allocation5 + $0xb90] sm:$0xf]  ;;  %3008 = vmatpush.bf16.msrb.mxu3 %v7506_v5  ;;  %2988 = vmatpush.bf16.msra.mxu2 %v6802_v6  ;;  %v7474_v21 = vor.u32 %v9597_v7, %v7473_v3  ;;  %v2719_v3 = vadd.f32 %v2718_v1, %v10569_v23  ;;  %v9321_v6 = vld [vmem:[#allocation5 + $0x114] sm:$0xf]  ;;  %v2757_v34 = vpop.f32.mrf.mxu2 }
 0x149   :  { %v9661_v9 = vld [vmem:[#allocation5 + $0xbac] sm:$0xf0]  ;;  %3001 = vmatpush.bf16.msra.mxu0 %v7058_v11  ;;  %v6387_v7 = vld [vmem:[#allocation5 + $0x130] sm:$0xf0] }
 0x14a   :  { %v6769_v12 = vld [vmem:[#allocation5 + $0x410] sm:$0xf]  ;;  %v7730_v19 = vor.u32 %v9661_v9, %v7729_v8  ;;  %v6678_v9 = vor.u32 %v9393_v62, %v6675_v0  ;;  %v9473_v49 = vld [vmem:[#allocation5 + $0x5d4] sm:$0xf] }
 0x14b   :  { %v9421_v13 = vld [vmem:[#allocation5 + $0x42c] sm:$0xf0]  ;;  %v6291_v62 = vld [vmem:[#allocation5 + $0x70] sm:$0xf0] }
 0x14c   :  { %v7025_v14 = vld [vmem:[#allocation5 + $0x610] sm:$0xf]  ;;  %v6770_v22 = vor.u32 %v9421_v13, %v6769_v12  ;;  %3022 = vmatpush.bf16.msrb.mxu1 %v7730_v19  ;;  %3009 = vmatpush.bf16.msrb.mxu3 %v7474_v21  ;;  %v9313_v19 = vld [vmem:[#allocation5 + $0xd4] sm:$0xf] }
 0x14d   :  { %v9485_v15 = vld [vmem:[#allocation5 + $0x62c] sm:$0xf0]  ;;  %v6358_v29 = vor.u32 %v9313_v19, %v6355_v20  ;;  %v7507_v19 = vld [vmem:[#allocation5 + $0x9f0] sm:$0xf0] }
 0x14e   :  { %v7793_v58 = vld [vmem:[#allocation5 + $0xc10] sm:$0xf]  ;;  %v7026_v26 = vor.u32 %v9485_v15, %v7025_v14  ;;  %2989 = vmatpush.bf16.msra.mxu2 %v6770_v22  ;;  %v9385_v14 = vld [vmem:[#allocation5 + $0x314] sm:$0xf] }
 0x14f   :  { %v9677_v17 = vld [vmem:[#allocation5 + $0xc2c] sm:$0xf0]  ;;  %v6643_v15 = vld [vmem:[#allocation5 + $0x330] sm:$0xf0] }
 0x150   :  { %v7441_v4 = vld [vmem:[#allocation5 + $0x950] sm:$0xf]  ;;  %v7794_v28 = vor.u32 %v9677_v17, %v7793_v58  ;;  %3002 = vmatpush.bf16.msra.mxu0 %v7026_v26  ;;  %v6390_v58 = vor.u32 %v9321_v6, %v6387_v7  ;;  %v2731_v17 = vpop.f32.mrf.mxu1  ;;  %v6646_v21 = vor.u32 %v9385_v14, %v6643_v15  ;;  %v9377_v26 = vld [vmem:[#allocation5 + $0x2d4] sm:$0xf] }
 0x151   :  { %v7697_v24 = vld [vmem:[#allocation5 + $0xb50] sm:$0xf]  ;;  %2990 = vmatmul.bf16.vlgmr.msra.gmra.mxu2 %v10549_v25  ;;  %v2732_v23 = vadd.f32 %v2731_v17, %v2719_v3  ;;  %v6547_v6 = vld [vmem:[#allocation5 + $0x270] sm:$0xf0]  ;;  %v2759_v17 = vpop.f32.mrf.mxu2 }
 0x152   :  { %v9653_v52 = vld [vmem:[#allocation5 + $0xb6c] sm:$0xf0]  ;;  %3041 = vmatpush.bf16.msrb.mxu2 %v7794_v28  ;;  %v2720_v28 = vpop.f32.mrf.mxu0  ;;  %v9465_v7 = vld [vmem:[#allocation5 + $0x594] sm:$0xf] }
 0x153   :  { %v9589_v27 = vld [vmem:[#allocation5 + $0x96c] sm:$0xf0]  ;;  %v7698_v32 = vor.u32 %v9653_v52, %v7697_v24  ;;  %3003 = vmatmul.bf16.vlgmr.msra.gmra.mxu0 %v10552_v54  ;;  %v9289_v15 = vld [vmem:[#allocation5 + $0x14] sm:$0xf] }
 0x154   :  { %v7442_v36 = vor.u32 %v9589_v27, %v7441_v4  ;;  %v7409_v39 = vld [vmem:[#allocation5 + $0x910] sm:$0xf]  ;;  %3047 = vmatpush.bf16.msrb.mxu0 %v6486_v31  ;;  %v6611_v27 = vld [vmem:[#allocation5 + $0x2f0] sm:$0xf0]  ;;  %v2745_v31 = vadd.f32 %v2744_v30, %v2732_v23 }
 0x155   :  { %v7665_v40 = vld [vmem:[#allocation5 + $0xb10] sm:$0xf]  ;;  %3023 = vmatpush.bf16.msrb.mxu1 %v7698_v32  ;;  %v9601_v23 = vld [vmem:[#allocation5 + $0x9d4] sm:$0xf] }
 0x156   :  { %v9645_v41 = vld [vmem:[#allocation5 + $0xb2c] sm:$0xf0]  ;;  %3010 = vmatpush.bf16.msrb.mxu3 %v7442_v36  ;;  %3060 = vmatpush.bf16.msra.mxu2 %v6742_v38  ;;  %v6323_v36 = vld [vmem:[#allocation5 + $0xb0] sm:$0xf0]  ;;  %v2758_v45 = vadd.f32 %v2757_v34, %v2745_v31  ;;  %v7510_v28 = vor.u32 %v9601_v23, %v7507_v19 }
 0x157   :  { %v9581_v43 = vld [vmem:[#allocation5 + $0x92c] sm:$0xf0]  ;;  %v7666_v48 = vor.u32 %v9645_v41, %v7665_v40  ;;  %v6614_v40 = vor.u32 %v9377_v26, %v6611_v27  ;;  %v6326_v33 = vor.u32 %v9305_v35, %v6323_v36  ;;  %v9521_v26 = vld [vmem:[#allocation5 + $0x754] sm:$0xf] }
 0x158   :  { %v7410_v55 = vor.u32 %v9581_v43, %v7409_v39  ;;  %v7377_v57 = vld [vmem:[#allocation5 + $0x8d0] sm:$0xf]  ;;  %3048 = vmatpush.bf16.msrb.mxu0 %v6454_v47  ;;  %v9369_v47 = vld [vmem:[#allocation5 + $0x294] sm:$0xf] }
 0x159   :  { %v7633_v59 = vld [vmem:[#allocation5 + $0xad0] sm:$0xf]  ;;  %3024 = vmatpush.bf16.msrb.mxu1 %v7666_v48  ;;  %v6579_v48 = vld [vmem:[#allocation5 + $0x2b0] sm:$0xf0] }
 0x15a   :  { %v9637_v60 = vld [vmem:[#allocation5 + $0xaec] sm:$0xf0]  ;;  %3011 = vmatpush.bf16.msrb.mxu3 %v7410_v55  ;;  %3061 = vmatpush.bf16.msra.mxu2 %v6710_v56  ;;  %v6995_v55 = vld [vmem:[#allocation5 + $0x5f0] sm:$0xf0]  ;;  %v6582_v1 = vor.u32 %v9369_v47, %v6579_v48 }
 0x15b   :  { %v9573_v61 = vld [vmem:[#allocation5 + $0x8ec] sm:$0xf0]  ;;  %v7634_v5 = vor.u32 %v9637_v60, %v7633_v59  ;;  %v9537_v56 = vld [vmem:[#allocation5 + $0x7d4] sm:$0xf]  ;;  %v2733_v59 = vpop.f32.mrf.mxu1 }
 0x15c   :  { %v7378_v8 = vor.u32 %v9573_v61, %v7377_v57  ;;  %v7345_v10 = vld [vmem:[#allocation5 + $0x890] sm:$0xf]  ;;  %3049 = vmatpush.bf16.msrb.mxu0 %v6422_v2  ;;  %v7251_v57 = vld [vmem:[#allocation5 + $0x7f0] sm:$0xf0]  ;;  %v6998_v2 = vor.u32 %v9473_v49, %v6995_v55 }
 0x15d   :  { %v7601_v11 = vld [vmem:[#allocation5 + $0xa90] sm:$0xf]  ;;  %3025 = vmatpush.bf16.msrb.mxu1 %v7634_v5  ;;  %v9297_v61 = vld [vmem:[#allocation5 + $0x54] sm:$0xf]  ;;  %v7254_v3 = vor.u32 %v9537_v56, %v7251_v57 }
 0x15e   :  { %v9629_v12 = vld [vmem:[#allocation5 + $0xaac] sm:$0xf0]  ;;  %3012 = vmatpush.bf16.msrb.mxu3 %v7378_v8  ;;  %3062 = vmatpush.bf16.msra.mxu2 %v6678_v9  ;;  %v9361_v5 = vld [vmem:[#allocation5 + $0x254] sm:$0xf]  ;;  %v2770_v8 = vpop.f32.mrf.mxu0  ;;  %v6294_v9 = vor.u32 %v9297_v61, %v6291_v62 }
 0x15f   :  { %v9565_v13 = vld [vmem:[#allocation5 + $0x8ac] sm:$0xf0]  ;;  %v7602_v18 = vor.u32 %v9629_v12, %v7601_v11  ;;  %v9529_v11 = vld [vmem:[#allocation5 + $0x794] sm:$0xf]  ;;  %v10578_v14 = vadd.f32 %v2770_v8, %v2758_v45 }
 0x160   :  { %v7346_v51 = vor.u32 %v9565_v13, %v7345_v10  ;;  %v7313_v22 = vld [vmem:[#allocation5 + $0x850] sm:$0xf]  ;;  %3050 = vmatpush.bf16.msrb.mxu0 %v6390_v58  ;;  %v6963_v10 = vld [vmem:[#allocation5 + $0x5b0] sm:$0xf0]  ;;  %v2746_v13 = vpop.f32.mrf.mxu3 }
 0x161   :  { %v7569_v4 = vld [vmem:[#allocation5 + $0xa50] sm:$0xf]  ;;  %3026 = vmatpush.bf16.msrb.mxu1 %v7602_v18  ;;  %7811 = vmatmul.msk.bf16.vlgmr.msrb.gmra.mxu2 %vm2589_vm0, %v10565_v42  ;;  %v7219_v12 = vld [vmem:[#allocation5 + $0x7b0] sm:$0xf0]  ;;  %v6550_v18 = vor.u32 %v9361_v5, %v6547_v6  ;;  %v6966_v20 = vor.u32 %v9465_v7, %v6963_v10  ;;  %v597_v6 = vperm.slane %v10538_v46, 2 }
 0x162   :  { %v9621_v24 = vld [vmem:[#allocation5 + $0xa6c] sm:$0xf0]  ;;  %3013 = vmatpush.bf16.msrb.mxu3 %v7346_v51  ;;  %3063 = vmatpush.bf16.msra.mxu2 %v6646_v21  ;;  %v6259_v58 = vld [vmem:[#allocation5 + $0x30] sm:$0xf0]  ;;  %v7222_v51 = vor.u32 %v9529_v11, %v7219_v12 }
 0x163   :  { %v9557_v52 = vld [vmem:[#allocation5 + $0x86c] sm:$0xf0]  ;;  %v7570_v32 = vor.u32 %v9621_v24, %v7569_v4  ;;  %v9353_v21 = vld [vmem:[#allocation5 + $0x214] sm:$0xf]  ;;  %v6262_v24 = vor.u32 %v9289_v15, %v6259_v58  ;;  %v2783_v58 = vpop.f32.mrf.mxu1 }
 0x164   :  { %v7281_v38 = vld [vmem:[#allocation5 + $0x810] sm:$0xf]  ;;  %v7314_v39 = vor.u32 %v9557_v52, %v7313_v22  ;;  %3051 = vmatpush.bf16.msrb.mxu0 %v6358_v29  ;;  %v6515_v22 = vld [vmem:[#allocation5 + $0x230] sm:$0xf0] }
 0x165   :  { %v9549_v41 = vld [vmem:[#allocation5 + $0x82c] sm:$0xf0]  ;;  %3027 = vmatpush.bf16.msrb.mxu1 %v7570_v32  ;;  %v9457_v4 = vld [vmem:[#allocation5 + $0x554] sm:$0xf]  ;;  %v6518_v31 = vor.u32 %v9353_v21, %v6515_v22 }
 0x166   :  { %v7537_v43 = vld [vmem:[#allocation5 + $0xa10] sm:$0xf]  ;;  %3014 = vmatpush.bf16.msrb.mxu3 %v7314_v39  ;;  %3064 = vmatpush.bf16.msra.mxu2 %v6614_v40  ;;  %v7282_v0 = vor.u32 %v9549_v41, %v7281_v38  ;;  %v6931_v52 = vld [vmem:[#allocation5 + $0x570] sm:$0xf0]  ;;  %v2772_v39 = vpop.f32.mrf.mxu0 }
 0x167   :  { %v9613_v44 = vld [vmem:[#allocation5 + $0xa2c] sm:$0xf0]  ;;  %v7187_v27 = vld [vmem:[#allocation5 + $0x770] sm:$0xf0]  ;;  %v6934_v35 = vor.u32 %v9457_v4, %v6931_v52 }
 0x168   :  { %v7538_v60 = vor.u32 %v9613_v44, %v7537_v43  ;;  %3052 = vmatpush.bf16.msrb.mxu0 %v6326_v33  ;;  %v9665_v29 = vld [vmem:[#allocation5 + $0xbd4] sm:$0xf]  ;;  %v7190_v36 = vor.u32 %v9521_v26, %v7187_v27  ;;  %v2796_v52 = vpop.f32.mrf.mxu3 }
 0x169   :  { %v7763_v30 = vld [vmem:[#allocation5 + $0xbf0] sm:$0xf0] }
 0x16a   :  { %3028 = vmatpush.bf16.msrb.mxu1 %v7538_v60  ;;  %3015 = vmatpush.bf16.msrb.mxu3 %v7282_v0  ;;  %v9593_v32 = vld [vmem:[#allocation5 + $0x994] sm:$0xf]  ;;  %v7766_v40 = vor.u32 %v9665_v29, %v7763_v30 }
 0x16b   :  { %3065 = vmatpush.bf16.msra.mxu2 %v6582_v1  ;;  %v7475_v34 = vld [vmem:[#allocation5 + $0x9b0] sm:$0xf0] }
 0x16c   :  { %3053 = vmatpush.bf16.msrb.mxu0 %v6294_v9  ;;  %v9449_v38 = vld [vmem:[#allocation5 + $0x514] sm:$0xf]  ;;  %v7478_v45 = vor.u32 %v9593_v32, %v7475_v34 }
 0x16d   :  { %3029 = vmatmul.bf16.vlgmr.msrb.gmra.mxu1 %v10558_v53  ;;  %3016 = vmatmul.bf16.vlgmr.msrb.gmra.mxu3 %v10555_v37  ;;  %v6899_v41 = vld [vmem:[#allocation5 + $0x530] sm:$0xf0] }
 0x16e   :  { %3073 = vmatpush.bf16.msra.mxu3 %v6998_v2  ;;  %3086 = vmatpush.bf16.msra.mxu1 %v7254_v3  ;;  %v9513_v43 = vld [vmem:[#allocation5 + $0x714] sm:$0xf]  ;;  %v6902_v55 = vor.u32 %v9449_v38, %v6899_v41  ;;  %v2809_v10 = vpop.f32.mrf.mxu0 }
 0x16f   :  { %3066 = vmatpush.bf16.msra.mxu2 %v6550_v18  ;;  %v7155_v44 = vld [vmem:[#allocation5 + $0x730] sm:$0xf0]  ;;  %v2784_v18 = vadd.f32 %v2783_v58, %v597_v6  ;;  %v7001_v58 = vld [vmem:[#allocation5 + $0x5d8] sm:$0xf] }
 0x170   :  { %3054 = vmatpush.bf16.msrb.mxu0 %v6262_v24  ;;  %v9657_v47 = vld [vmem:[#allocation5 + $0xb94] sm:$0xf]  ;;  %v7158_v56 = vor.u32 %v9513_v43, %v7155_v44 }
 0x171   :  { %v7731_v48 = vld [vmem:[#allocation5 + $0xbb0] sm:$0xf0]  ;;  %v2797_v29 = vadd.f32 %v2796_v52, %v2784_v18 }
 0x172   :  { %3074 = vmatpush.bf16.msra.mxu3 %v6966_v20  ;;  %3087 = vmatpush.bf16.msra.mxu1 %v7222_v51  ;;  %v9585_v49 = vld [vmem:[#allocation5 + $0x954] sm:$0xf]  ;;  %v7734_v59 = vor.u32 %v9657_v47, %v7731_v48  ;;  %v2822_v47 = vpop.f32.mrf.mxu2 }
 0x173   :  { %3067 = vmatpush.bf16.msra.mxu2 %v6518_v31  ;;  %v7443_v33 = vld [vmem:[#allocation5 + $0x970] sm:$0xf0]  ;;  %3055 = vmatmul.bf16.vlgmr.msrb.gmra.mxu0 %v10540_v50 }
 0x174   :  { %3099 = vmatpush.bf16.msra.mxu0 %v7510_v28  ;;  %v9441_v57 = vld [vmem:[#allocation5 + $0x4d4] sm:$0xf]  ;;  %v7446_v0 = vor.u32 %v9585_v49, %v7443_v33  ;;  %v6489_v49 = vld [vmem:[#allocation5 + $0x1d8] sm:$0xf] }
 0x175   :  { %v6867_v60 = vld [vmem:[#allocation5 + $0x4f0] sm:$0xf0]  ;;  %v9350_v33 = vld [vmem:[#allocation5 + $0x1f4] sm:$0xf0] }
 0x176   :  { %3075 = vmatpush.bf16.msra.mxu3 %v6934_v35  ;;  %3088 = vmatpush.bf16.msra.mxu1 %v7190_v36  ;;  %v9505_v61 = vld [vmem:[#allocation5 + $0x6d4] sm:$0xf]  ;;  %v6870_v7 = vor.u32 %v9441_v57, %v6867_v60  ;;  %v2811_v39 = vpop.f32.mrf.mxu0 }
 0x177   :  { %3112 = vmatpush.bf16.msrb.mxu2 %v7766_v40  ;;  %v7123_v62 = vld [vmem:[#allocation5 + $0x6f0] sm:$0xf0]  ;;  %v2810_v40 = vadd.f32 %v2809_v10, %v2797_v29  ;;  %v6457_v10 = vld [vmem:[#allocation5 + $0x198] sm:$0xf] }
 0x178   :  { %3100 = vmatpush.bf16.msra.mxu0 %v7478_v45  ;;  %v9649_v1 = vld [vmem:[#allocation5 + $0xb54] sm:$0xf]  ;;  %3068 = vmatmul.bf16.vlgmr.msra.gmra.mxu2 %v10544_v63  ;;  %v7126_v8 = vor.u32 %v9505_v61, %v7123_v62  ;;  %v6969_v29 = vld [vmem:[#allocation5 + $0x598] sm:$0xf] }
 0x179   :  { %v7699_v2 = vld [vmem:[#allocation5 + $0xb70] sm:$0xf0]  ;;  %v10585_v57 = vadd.f32 %v2822_v47, %v2810_v40  ;;  %v9326_v39 = vld [vmem:[#allocation5 + $0x134] sm:$0xf0] }
 0x17a   :  { %v9577_v3 = vld [vmem:[#allocation5 + $0x914] sm:$0xf]  ;;  %3076 = vmatpush.bf16.msra.mxu3 %v6902_v55  ;;  %3089 = vmatpush.bf16.msra.mxu1 %v7158_v56  ;;  %v7702_v11 = vor.u32 %v9649_v1, %v7699_v2  ;;  %v2785_v56 = vpop.f32.mrf.mxu1  ;;  %v6490_v2 = vor.u32 %v9350_v33, %v6489_v49  ;;  %v7225_v40 = vld [vmem:[#allocation5 + $0x798] sm:$0xf] }
 0x17b   :  { %v7411_v5 = vld [vmem:[#allocation5 + $0x930] sm:$0xf0]  ;;  %3113 = vmatpush.bf16.msrb.mxu2 %v7734_v59  ;;  %v6649_v47 = vld [vmem:[#allocation5 + $0x318] sm:$0xf] }
 0x17c   :  { %v9433_v9 = vld [vmem:[#allocation5 + $0x494] sm:$0xf]  ;;  %3101 = vmatpush.bf16.msra.mxu0 %v7446_v0  ;;  %v7414_v15 = vor.u32 %v9577_v3, %v7411_v5  ;;  %v6745_v3 = vld [vmem:[#allocation5 + $0x3d8] sm:$0xf] }
 0x17d   :  { %v6835_v12 = vld [vmem:[#allocation5 + $0x4b0] sm:$0xf0]  ;;  %v9414_v5 = vld [vmem:[#allocation5 + $0x3f4] sm:$0xf0] }
 0x17e   :  { %v9497_v50 = vld [vmem:[#allocation5 + $0x694] sm:$0xf]  ;;  %3077 = vmatpush.bf16.msra.mxu3 %v6870_v7  ;;  %3090 = vmatpush.bf16.msra.mxu1 %v7126_v8  ;;  %v6838_v46 = vor.u32 %v9433_v9, %v6835_v12  ;;  %v2798_v12 = vpop.f32.mrf.mxu3  ;;  %v9318_v56 = vld [vmem:[#allocation5 + $0xf4] sm:$0xf0] }
 0x17f   :  { %v7091_v13 = vld [vmem:[#allocation5 + $0x6b0] sm:$0xf0]  ;;  %3114 = vmatpush.bf16.msrb.mxu2 %v7702_v11  ;;  %v9342_v11 = vld [vmem:[#allocation5 + $0x1b4] sm:$0xf0] }
 0x180   :  { %v9641_v17 = vld [vmem:[#allocation5 + $0xb14] sm:$0xf]  ;;  %v7094_v20 = vor.u32 %v9497_v50, %v7091_v13  ;;  %3102 = vmatpush.bf16.msra.mxu0 %v7414_v15  ;;  %v6746_v15 = vor.u32 %v9414_v5, %v6745_v3  ;;  %v6458_v18 = vor.u32 %v9342_v11, %v6457_v10  ;;  %v9454_v3 = vld [vmem:[#allocation5 + $0x534] sm:$0xf0] }
 0x181   :  { %v7667_v63 = vld [vmem:[#allocation5 + $0xb30] sm:$0xf0]  ;;  %v7161_v11 = vld [vmem:[#allocation5 + $0x718] sm:$0xf] }
 0x182   :  { %v9569_v23 = vld [vmem:[#allocation5 + $0x8d4] sm:$0xf]  ;;  %v7670_v21 = vor.u32 %v9641_v17, %v7667_v63  ;;  %3078 = vmatpush.bf16.msra.mxu3 %v6838_v46  ;;  %3091 = vmatpush.bf16.msra.mxu1 %v7094_v20  ;;  %v9478_v17 = vld [vmem:[#allocation5 + $0x5f4] sm:$0xf0]  ;;  %v10587_v20 = vpop.f32.mrf.mxu0 }
 0x183   :  { %v7379_v19 = vld [vmem:[#allocation5 + $0x8f0] sm:$0xf0]  ;;  %v7002_v52 = vor.u32 %v9478_v17, %v7001_v58  ;;  %v9518_v12 = vld [vmem:[#allocation5 + $0x734] sm:$0xf0] }
 0x184   :  { %v9425_v51 = vld [vmem:[#allocation5 + $0x454] sm:$0xf]  ;;  %v7382_v26 = vor.u32 %v9569_v23, %v7379_v19  ;;  %3115 = vmatpush.bf16.msrb.mxu2 %v7670_v21  ;;  %v6713_v23 = vld [vmem:[#allocation5 + $0x398] sm:$0xf] }
 0x185   :  { %v6803_v22 = vld [vmem:[#allocation5 + $0x470] sm:$0xf0]  ;;  %v9406_v19 = vld [vmem:[#allocation5 + $0x3b4] sm:$0xf0] }
 0x186   :  { %v9489_v4 = vld [vmem:[#allocation5 + $0x654] sm:$0xf]  ;;  %v6806_v32 = vor.u32 %v9425_v51, %v6803_v22  ;;  %3103 = vmatpush.bf16.msra.mxu0 %v7382_v26  ;;  %v6425_v22 = vld [vmem:[#allocation5 + $0x158] sm:$0xf] }
 0x187   :  { %v7059_v24 = vld [vmem:[#allocation5 + $0x670] sm:$0xf0]  ;;  %v7257_v26 = vld [vmem:[#allocation5 + $0x7d8] sm:$0xf] }
 0x188   :  { %v9633_v27 = vld [vmem:[#allocation5 + $0xad4] sm:$0xf]  ;;  %v7062_v34 = vor.u32 %v9489_v4, %v7059_v24  ;;  %3079 = vmatpush.bf16.msra.mxu3 %v6806_v32  ;;  %v9334_v4 = vld [vmem:[#allocation5 + $0x174] sm:$0xf0]  ;;  %v2824_v24 = vpop.f32.mrf.mxu2 }
 0x189   :  { %v7635_v28 = vld [vmem:[#allocation5 + $0xaf0] sm:$0xf0]  ;;  %v6426_v32 = vor.u32 %v9334_v4, %v6425_v22  ;;  %v9374_v58 = vld [vmem:[#allocation5 + $0x2b4] sm:$0xf0] }
 0x18a   :  { %v9561_v30 = vld [vmem:[#allocation5 + $0x894] sm:$0xf]  ;;  %v7638_v41 = vor.u32 %v9633_v27, %v7635_v28  ;;  %3092 = vmatpush.bf16.msra.mxu1 %v7062_v34  ;;  %v9542_v27 = vld [vmem:[#allocation5 + $0x7f4] sm:$0xf0]  ;;  %v6714_v28 = vor.u32 %v9406_v19, %v6713_v23  ;;  %v2863_v49 = vpop.f32.mrf.mxu0 }
 0x18b   :  { %v7347_v31 = vld [vmem:[#allocation5 + $0x8b0] sm:$0xf0]  ;;  %v6681_v34 = vld [vmem:[#allocation5 + $0x358] sm:$0xf] }
 0x18c   :  { %v9417_v35 = vld [vmem:[#allocation5 + $0x414] sm:$0xf]  ;;  %v7350_v48 = vor.u32 %v9561_v30, %v7347_v31  ;;  %3116 = vmatpush.bf16.msrb.mxu2 %v7638_v41  ;;  %v9470_v30 = vld [vmem:[#allocation5 + $0x5b4] sm:$0xf0] }
 0x18d   :  { %v6771_v36 = vld [vmem:[#allocation5 + $0x430] sm:$0xf0]  ;;  %v9534_v41 = vld [vmem:[#allocation5 + $0x7b4] sm:$0xf0] }
 0x18e   :  { %v9481_v38 = vld [vmem:[#allocation5 + $0x614] sm:$0xf]  ;;  %v6774_v62 = vor.u32 %v9417_v35, %v6771_v36  ;;  %3104 = vmatpush.bf16.msra.mxu0 %v7350_v48  ;;  %v9398_v35 = vld [vmem:[#allocation5 + $0x374] sm:$0xf0]  ;;  %v7258_v36 = vor.u32 %v9542_v27, %v7257_v26  ;;  %v7226_v33 = vor.u32 %v9534_v41, %v7225_v40 }
 0x18f   :  { %v7027_v43 = vld [vmem:[#allocation5 + $0x630] sm:$0xf0]  ;;  %v9390_v48 = vld [vmem:[#allocation5 + $0x334] sm:$0xf0] }
 0x190   :  { %v9625_v44 = vld [vmem:[#allocation5 + $0xa94] sm:$0xf]  ;;  %v7030_v0 = vor.u32 %v9481_v38, %v7027_v43  ;;  %3080 = vmatpush.bf16.msra.mxu3 %v6774_v62  ;;  %v6393_v38 = vld [vmem:[#allocation5 + $0x118] sm:$0xf] }
 0x191   :  { %v7603_v45 = vld [vmem:[#allocation5 + $0xab0] sm:$0xf0]  ;;  %v6937_v43 = vld [vmem:[#allocation5 + $0x558] sm:$0xf] }
 0x192   :  { %v9553_v55 = vld [vmem:[#allocation5 + $0x854] sm:$0xf]  ;;  %v7606_v1 = vor.u32 %v9625_v44, %v7603_v45  ;;  %3093 = vmatpush.bf16.msra.mxu1 %v7030_v0  ;;  %v9462_v44 = vld [vmem:[#allocation5 + $0x574] sm:$0xf0]  ;;  %v6394_v45 = vor.u32 %v9326_v39, %v6393_v38  ;;  %v2887_v17 = vpop.f32.mrf.mxu0 }
 0x193   :  { %v7315_v59 = vld [vmem:[#allocation5 + $0x870] sm:$0xf0]  ;;  %3081 = vmatmul.bf16.vlgmr.msra.gmra.mxu3 %v10549_v25  ;;  %v6970_v25 = vor.u32 %v9470_v30, %v6969_v29  ;;  %v9526_v62 = vld [vmem:[#allocation5 + $0x774] sm:$0xf0] }
 0x194   :  { %v9673_v60 = vld [vmem:[#allocation5 + $0xc14] sm:$0xf]  ;;  %v7318_v7 = vor.u32 %v9553_v55, %v7315_v59  ;;  %3117 = vmatpush.bf16.msrb.mxu2 %v7606_v1  ;;  %v6361_v55 = vld [vmem:[#allocation5 + $0xd8] sm:$0xf]  ;;  %v2835_v59 = vpop.f32.mrf.mxu1  ;;  %v6650_v1 = vor.u32 %v9390_v48, %v6649_v47 }
 0x195   :  { %v7795_v61 = vld [vmem:[#allocation5 + $0xc30] sm:$0xf0]  ;;  %3094 = vmatmul.bf16.vlgmr.msra.gmra.mxu1 %v10552_v54  ;;  %v6682_v54 = vor.u32 %v9398_v35, %v6681_v34  ;;  %v2836_v0 = vadd.f32 %v2835_v59, %v10585_v57  ;;  %v6362_v5 = vor.u32 %v9318_v56, %v6361_v55  ;;  %v6297_v23 = vld [vmem:[#allocation5 + $0x58] sm:$0xf] }
 0x196   :  { %v9617_v6 = vld [vmem:[#allocation5 + $0xa54] sm:$0xf]  ;;  %v7798_v8 = vor.u32 %v9673_v60, %v7795_v61  ;;  %3138 = vmatpush.bf16.msrb.mxu1 %v6490_v2  ;;  %3105 = vmatpush.bf16.msra.mxu0 %v7318_v7  ;;  %v6938_v60 = vor.u32 %v9462_v44, %v6937_v43  ;;  %v7193_v61 = vld [vmem:[#allocation5 + $0x758] sm:$0xf] }
 0x197   :  { %v7571_v9 = vld [vmem:[#allocation5 + $0xa70] sm:$0xf0]  ;;  %v6905_v2 = vld [vmem:[#allocation5 + $0x518] sm:$0xf] }
 0x198   :  { %v9545_v50 = vld [vmem:[#allocation5 + $0x814] sm:$0xf]  ;;  %v7574_v63 = vor.u32 %v9617_v6, %v7571_v9  ;;  %3132 = vmatpush.bf16.msrb.mxu3 %v7798_v8  ;;  %v6617_v6 = vld [vmem:[#allocation5 + $0x2d8] sm:$0xf]  ;;  %v7194_v8 = vor.u32 %v9526_v62, %v7193_v61  ;;  %v6906_v10 = vor.u32 %v9454_v3, %v6905_v2 }
 0x199   :  { %v7283_v13 = vld [vmem:[#allocation5 + $0x830] sm:$0xf0]  ;;  %v9382_v7 = vld [vmem:[#allocation5 + $0x2f4] sm:$0xf0] }
 0x19a   :  { %v9609_v46 = vld [vmem:[#allocation5 + $0xa14] sm:$0xf]  ;;  %v7286_v51 = vor.u32 %v9545_v50, %v7283_v13  ;;  %3118 = vmatpush.bf16.msrb.mxu2 %v7574_v63  ;;  %3139 = vmatpush.bf16.msrb.mxu1 %v6458_v18  ;;  %v9310_v9 = vld [vmem:[#allocation5 + $0xb4] sm:$0xf0]  ;;  %v6618_v57 = vor.u32 %v9382_v7, %v6617_v6  ;;  %v2848_v63 = vpop.f32.mrf.mxu3  ;;  %v7162_v18 = vor.u32 %v9518_v12, %v7161_v11 }
 0x19b   :  { %v7539_v21 = vld [vmem:[#allocation5 + $0xa30] sm:$0xf0]  ;;  %v6873_v50 = vld [vmem:[#allocation5 + $0x4d8] sm:$0xf] }
 0x19c   :  { %3151 = vmatpush.bf16.msra.mxu3 %v6746_v15  ;;  %v7542_v31 = vor.u32 %v9609_v46, %v7539_v21  ;;  %3106 = vmatpush.bf16.msra.mxu0 %v7286_v51  ;;  %v9446_v13 = vld [vmem:[#allocation5 + $0x4f4] sm:$0xf0]  ;;  %v10594_v46 = vld [vmem:[#allocation7] sm:$0xff]  ;;  %v2849_v21 = vadd.f32 %v2848_v63, %v2836_v0 }
 0x19d   :  { %v6585_v15 = vld [vmem:[#allocation5 + $0x298] sm:$0xf]  ;;  %v598_v51 = vperm.slane %v10594_v46, 3  ;;  %v6874_v22 = vor.u32 %v9446_v13, %v6873_v50 }
 0x19e   :  { %3119 = vmatpush.bf16.msrb.mxu2 %v7542_v31  ;;  %3140 = vmatpush.bf16.msrb.mxu1 %v6426_v32  ;;  %v9302_v19 = vld [vmem:[#allocation5 + $0x74] sm:$0xf0]  ;;  %v6586_v26 = vor.u32 %v9374_v58, %v6585_v15  ;;  %v10600_v29 = vadd.f32 %v10587_v20, %v2849_v21  ;;  %v2874_v31 = vpop.f32.mrf.mxu2  ;;  %v9410_v21 = vld [vmem:[#allocation5 + $0x3dc] sm:$0xf] }
 0x19f   :  { %3107 = vmatmul.bf16.vlgmr.msra.gmra.mxu0 %v10555_v37  ;;  %v6329_v37 = vld [vmem:[#allocation5 + $0x98] sm:$0xf]  ;;  %v6298_v30 = vor.u32 %v9302_v19, %v6297_v23  ;;  %v6491_v23 = vld [vmem:[#allocation5 + $0x1f8] sm:$0xf0] }
 0x1a0   :  { %3164 = vmatpush.bf16.msrb.mxu0 %v7002_v52  ;;  %3152 = vmatpush.bf16.msra.mxu3 %v6714_v28  ;;  %v7129_v4 = vld [vmem:[#allocation5 + $0x6d8] sm:$0xf]  ;;  %v2837_v52 = vpop.f32.mrf.mxu1  ;;  %v10604_v19 = vld.sshfl [vmem:[#allocation1] sm:$0xff pattern:$0x73625140] }
 0x1a1   :  { %3120 = vmatmul.bf16.vlgmr.msrb.gmra.mxu2 %v10558_v53  ;;  %v6330_v53 = vor.u32 %v9310_v9, %v6329_v37  ;;  %v9510_v24 = vld [vmem:[#allocation5 + $0x6f4] sm:$0xf0] }
 0x1a2   :  { %3177 = vmatpush.bf16.msra.mxu2 %v7258_v36  ;;  %3141 = vmatpush.bf16.msrb.mxu1 %v6394_v45  ;;  %v6841_v27 = vld [vmem:[#allocation5 + $0x498] sm:$0xf]  ;;  %v7130_v35 = vor.u32 %v9510_v24, %v7129_v4  ;;  %v2850_v62 = vpop.f32.mrf.mxu3 }
 0x1a3   :  { %7812 = vmatmul.msk.bf16.vlgmr.msrb.gmra.mxu3 %vm2589_vm0, %v10565_v42  ;;  %v9438_v28 = vld [vmem:[#allocation5 + $0x4b4] sm:$0xf0]  ;;  %v2875_v42 = vadd.f32 %v2874_v31, %v598_v51 }
 0x1a4   :  { %3165 = vmatpush.bf16.msrb.mxu0 %v6970_v25  ;;  %3153 = vmatpush.bf16.msra.mxu3 %v6682_v54  ;;  %v6553_v32 = vld [vmem:[#allocation5 + $0x258] sm:$0xf]  ;;  %v6842_v25 = vor.u32 %v9438_v28, %v6841_v27 }
 0x1a5   :  { %v9366_v34 = vld [vmem:[#allocation5 + $0x274] sm:$0xf0]  ;;  %v10602_v45 = vadd.f32 %v2887_v17, %v2875_v42 }
 0x1a6   :  { %3178 = vmatpush.bf16.msra.mxu2 %v7226_v33  ;;  %3142 = vmatpush.bf16.msrb.mxu1 %v6362_v5  ;;  %v6265_v36 = vld [vmem:[#allocation5 + $0x18] sm:$0xf]  ;;  %v6554_v43 = vor.u32 %v9366_v34, %v6553_v32  ;;  %v2889_v33 = vpop.f32.mrf.mxu0  ;;  %v2876_v37 = vpop.f32.mrf.mxu2  ;;  %v9338_v34 = vld [vmem:[#allocation5 + $0x19c] sm:$0xf] }
 0x1a7   :  { %v9294_v38 = vld [vmem:[#allocation5 + $0x34] sm:$0xf0]  ;;  %v6651_v37 = vld [vmem:[#allocation5 + $0x338] sm:$0xf0] }
 0x1a8   :  { %3166 = vmatpush.bf16.msrb.mxu0 %v6938_v60  ;;  %3154 = vmatpush.bf16.msra.mxu3 %v6650_v1  ;;  %v7097_v39 = vld [vmem:[#allocation5 + $0x698] sm:$0xf]  ;;  %v6266_v47 = vor.u32 %v9294_v38, %v6265_v36  ;;  %v9402_v36 = vld [vmem:[#allocation5 + $0x39c] sm:$0xf] }
 0x1a9   :  { %v9502_v40 = vld [vmem:[#allocation5 + $0x6b4] sm:$0xf0]  ;;  %v6715_v38 = vld [vmem:[#allocation5 + $0x3b8] sm:$0xf0] }
 0x1aa   :  { %3179 = vmatpush.bf16.msra.mxu2 %v7194_v8  ;;  %3143 = vmatpush.bf16.msrb.mxu1 %v6330_v53  ;;  %v7513_v41 = vld [vmem:[#allocation5 + $0x9d8] sm:$0xf]  ;;  %v7098_v55 = vor.u32 %v9502_v40, %v7097_v39 }
 0x1ab   :  { %v9606_v54 = vld [vmem:[#allocation5 + $0x9f4] sm:$0xf0] }
 0x1ac   :  { %3167 = vmatpush.bf16.msrb.mxu0 %v6906_v10  ;;  %3155 = vmatpush.bf16.msra.mxu3 %v6618_v57  ;;  %v6809_v20 = vld [vmem:[#allocation5 + $0x458] sm:$0xf]  ;;  %v7514_v56 = vor.u32 %v9606_v54, %v7513_v41 }
 0x1ad   :  { %v9430_v44 = vld [vmem:[#allocation5 + $0x474] sm:$0xf0] }
 0x1ae   :  { %3180 = vmatpush.bf16.msra.mxu2 %v7162_v18  ;;  %3144 = vmatpush.bf16.msrb.mxu1 %v6298_v30  ;;  %v6521_v48 = vld [vmem:[#allocation5 + $0x218] sm:$0xf]  ;;  %v6810_v0 = vor.u32 %v9430_v44, %v6809_v20  ;;  %v9346_v18 = vld [vmem:[#allocation5 + $0x1dc] sm:$0xf]  ;;  %v2900_v44 = vpop.f32.mrf.mxu1 }
 0x1af   :  { %v9358_v49 = vld [vmem:[#allocation5 + $0x234] sm:$0xf0]  ;;  %v6494_v28 = vor.u32 %v9346_v18, %v6491_v23  ;;  %v2901_v33 = vadd.f32 %v2900_v44, %v10602_v45  ;;  %v6395_v45 = vld [vmem:[#allocation5 + $0x138] sm:$0xf0]  ;;  %v2926_v23 = vpop.f32.mrf.mxu2 }
 0x1b0   :  { %3168 = vmatpush.bf16.msrb.mxu0 %v6874_v22  ;;  %3156 = vmatpush.bf16.msra.mxu3 %v6586_v26  ;;  %v7769_v59 = vld [vmem:[#allocation5 + $0xbd8] sm:$0xf]  ;;  %v6522_v5 = vor.u32 %v9358_v49, %v6521_v48  ;;  %v6747_v22 = vld [vmem:[#allocation5 + $0x3f8] sm:$0xf0] }
 0x1b1   :  { %v9670_v60 = vld [vmem:[#allocation5 + $0xbf4] sm:$0xf0]  ;;  %v6750_v32 = vor.u32 %v9410_v21, %v6747_v22  ;;  %v9330_v48 = vld [vmem:[#allocation5 + $0x15c] sm:$0xf] }
 0x1b2   :  { %3181 = vmatpush.bf16.msra.mxu2 %v7130_v35  ;;  %v7065_v61 = vld [vmem:[#allocation5 + $0x658] sm:$0xf]  ;;  %3145 = vmatpush.bf16.msrb.mxu1 %v6266_v47  ;;  %v7770_v8 = vor.u32 %v9670_v60, %v7769_v59  ;;  %v6459_v35 = vld [vmem:[#allocation5 + $0x1b8] sm:$0xf0]  ;;  %v6718_v47 = vor.u32 %v9402_v36, %v6715_v38 }
 0x1b3   :  { %v9494_v1 = vld [vmem:[#allocation5 + $0x674] sm:$0xf0]  ;;  %v6462_v54 = vor.u32 %v9338_v34, %v6459_v35  ;;  %v6427_v49 = vld [vmem:[#allocation5 + $0x178] sm:$0xf0] }
 0x1b4   :  { %3169 = vmatpush.bf16.msrb.mxu0 %v6842_v25  ;;  %v7481_v2 = vld [vmem:[#allocation5 + $0x998] sm:$0xf]  ;;  %3157 = vmatpush.bf16.msra.mxu3 %v6554_v43  ;;  %v7066_v11 = vor.u32 %v9494_v1, %v7065_v61  ;;  %v9394_v59 = vld [vmem:[#allocation5 + $0x35c] sm:$0xf]  ;;  %v6430_v1 = vor.u32 %v9330_v48, %v6427_v49 }
 0x1b5   :  { %v9598_v3 = vld [vmem:[#allocation5 + $0x9b4] sm:$0xf0]  ;;  %3146 = vmatmul.bf16.vlgmr.msrb.gmra.mxu1 %v10604_v19  ;;  %v6683_v60 = vld [vmem:[#allocation5 + $0x378] sm:$0xf0] }
 0x1b6   :  { %v6777_v6 = vld [vmem:[#allocation5 + $0x418] sm:$0xf]  ;;  %3182 = vmatpush.bf16.msra.mxu2 %v7098_v55  ;;  %3190 = vmatpush.bf16.msra.mxu1 %v7514_v56  ;;  %v7482_v12 = vor.u32 %v9598_v3, %v7481_v2  ;;  %v10614_v55 = vld.sshfl [vmem:[#allocation1 + $0x18] sm:$0xff pattern:$0x73625140]  ;;  %v2902_v18 = vpop.f32.mrf.mxu1 }
 0x1b7   :  { %v9422_v7 = vld [vmem:[#allocation5 + $0x434] sm:$0xf0]  ;;  %v9378_v21 = vld [vmem:[#allocation5 + $0x2dc] sm:$0xf] }
 0x1b8   :  { %v7801_v9 = vld [vmem:[#allocation5 + $0xc18] sm:$0xf]  ;;  %3170 = vmatpush.bf16.msrb.mxu0 %v6810_v0  ;;  %v6778_v53 = vor.u32 %v9422_v7, %v6777_v6  ;;  %3158 = vmatpush.bf16.msra.mxu3 %v6522_v5  ;;  %v6686_v5 = vor.u32 %v9394_v59, %v6683_v60  ;;  %v9322_v6 = vld [vmem:[#allocation5 + $0x11c] sm:$0xf] }
 0x1b9   :  { %v9678_v10 = vld [vmem:[#allocation5 + $0xc34] sm:$0xf0]  ;;  %v6619_v22 = vld [vmem:[#allocation5 + $0x2f8] sm:$0xf0] }
 0x1ba   :  { %v7737_v57 = vld [vmem:[#allocation5 + $0xb98] sm:$0xf]  ;;  %v7802_v63 = vor.u32 %v9678_v10, %v7801_v9  ;;  %3183 = vmatpush.bf16.msra.mxu2 %v7066_v11  ;;  %3191 = vmatpush.bf16.msra.mxu1 %v7482_v12  ;;  %v2913_v12 = vpop.f32.mrf.mxu3  ;;  %v6622_v35 = vor.u32 %v9378_v21, %v6619_v22  ;;  %v9474_v36 = vld [vmem:[#allocation5 + $0x5dc] sm:$0xf] }
 0x1bb   :  { %v9662_v50 = vld [vmem:[#allocation5 + $0xbb4] sm:$0xf0]  ;;  %v7003_v38 = vld [vmem:[#allocation5 + $0x5f8] sm:$0xf0] }
 0x1bc   :  { %v7033_v13 = vld [vmem:[#allocation5 + $0x618] sm:$0xf]  ;;  %3203 = vmatpush.bf16.msrb.mxu3 %v7770_v8  ;;  %v7738_v51 = vor.u32 %v9662_v50, %v7737_v57  ;;  %3171 = vmatpush.bf16.msrb.mxu0 %v6778_v53  ;;  %v9386_v8 = vld [vmem:[#allocation5 + $0x31c] sm:$0xf]  ;;  %v6398_v57 = vor.u32 %v9322_v6, %v6395_v45  ;;  %v2939_v50 = vpop.f32.mrf.mxu0 }
 0x1bd   :  { %v9486_v15 = vld [vmem:[#allocation5 + $0x634] sm:$0xf0]  ;;  %v9538_v48 = vld [vmem:[#allocation5 + $0x7dc] sm:$0xf] }
 0x1be   :  { %v7449_v58 = vld [vmem:[#allocation5 + $0x958] sm:$0xf]  ;;  %v7034_v4 = vor.u32 %v9486_v15, %v7033_v13  ;;  %v2914_v15 = vadd.f32 %v2913_v12, %v2901_v33  ;;  %v7259_v49 = vld [vmem:[#allocation5 + $0x7f8] sm:$0xf0] }
 0x1bf   :  { %v9590_v17 = vld [vmem:[#allocation5 + $0x974] sm:$0xf0]  ;;  %v9298_v33 = vld [vmem:[#allocation5 + $0x5c] sm:$0xf]  ;;  %v7262_v45 = vor.u32 %v9538_v48, %v7259_v49 }
 0x1c0   :  { %v7450_v24 = vor.u32 %v9590_v17, %v7449_v58  ;;  %v7705_v52 = vld [vmem:[#allocation5 + $0xb58] sm:$0xf]  ;;  %3223 = vmatpush.bf16.msra.mxu0 %v7802_v63  ;;  %3204 = vmatpush.bf16.msrb.mxu3 %v7738_v51  ;;  %v6654_v58 = vor.u32 %v9386_v8, %v6651_v37  ;;  %v9314_v17 = vld [vmem:[#allocation5 + $0xdc] sm:$0xf] }
 0x1c1   :  { %v9654_v26 = vld [vmem:[#allocation5 + $0xb74] sm:$0xf0]  ;;  %3184 = vmatpush.bf16.msra.mxu2 %v7034_v4  ;;  %v6363_v63 = vld [vmem:[#allocation5 + $0xf8] sm:$0xf0]  ;;  %v2927_v4 = vadd.f32 %v2926_v23, %v2914_v15 }
 0x1c2   :  { %v10607_v27 = vld.sshfl [vmem:[#allocation1 + $0x8] sm:$0xff pattern:$0x73625140]  ;;  %v7706_v42 = vor.u32 %v9654_v26, %v7705_v52  ;;  %3192 = vmatpush.bf16.msra.mxu1 %v7450_v24  ;;  %v10610_v41 = vld.sshfl [vmem:[#allocation1 + $0x10] sm:$0xff pattern:$0x73625140]  ;;  %v2915_v59 = vpop.f32.mrf.mxu3 }
 0x1c3   :  { %3159 = vmatmul.bf16.vlgmr.msra.gmra.mxu3 %v10607_v27  ;;  %v7417_v30 = vld [vmem:[#allocation5 + $0x918] sm:$0xf]  ;;  %3172 = vmatmul.bf16.vlgmr.msrb.gmra.mxu0 %v10610_v41  ;;  %v10617_v34 = vadd.f32 %v2939_v50, %v2927_v4  ;;  %v6555_v6 = vld [vmem:[#allocation5 + $0x278] sm:$0xf0] }
 0x1c4   :  { %v9582_v31 = vld [vmem:[#allocation5 + $0x934] sm:$0xf0]  ;;  %3242 = vmatpush.bf16.msrb.mxu0 %v6750_v32  ;;  %3205 = vmatpush.bf16.msrb.mxu3 %v7706_v42  ;;  %v9306_v32 = vld [vmem:[#allocation5 + $0x9c] sm:$0xf]  ;;  %v2941_v60 = vpop.f32.mrf.mxu0 }
 0x1c5   :  { %v7418_v39 = vor.u32 %v9582_v31, %v7417_v30  ;;  %v7673_v25 = vld [vmem:[#allocation5 + $0xb18] sm:$0xf]  ;;  %3229 = vmatpush.bf16.msrb.mxu2 %v6494_v28  ;;  %v6366_v28 = vor.u32 %v9314_v17, %v6363_v63  ;;  %v6331_v42 = vld [vmem:[#allocation5 + $0xb8] sm:$0xf0] }
 0x1c6   :  { %v9646_v40 = vld [vmem:[#allocation5 + $0xb34] sm:$0xf0]  ;;  %3185 = vmatmul.bf16.vlgmr.msra.gmra.mxu2 %v10614_v55  ;;  %v6334_v44 = vor.u32 %v9306_v32, %v6331_v42  ;;  %v9458_v50 = vld [vmem:[#allocation5 + $0x55c] sm:$0xf] }
 0x1c7   :  { %v7385_v43 = vld [vmem:[#allocation5 + $0x8d8] sm:$0xf]  ;;  %v7674_v56 = vor.u32 %v9646_v40, %v7673_v25  ;;  %3193 = vmatpush.bf16.msra.mxu1 %v7418_v39  ;;  %v9370_v25 = vld [vmem:[#allocation5 + $0x29c] sm:$0xf] }
 0x1c8   :  { %v9574_v20 = vld [vmem:[#allocation5 + $0x8f4] sm:$0xf0]  ;;  %3243 = vmatpush.bf16.msrb.mxu0 %v6718_v47  ;;  %v6587_v40 = vld [vmem:[#allocation5 + $0x2b8] sm:$0xf0]  ;;  %v7006_v47 = vor.u32 %v9474_v36, %v7003_v38 }
 0x1c9   :  { %v7386_v61 = vor.u32 %v9574_v20, %v7385_v43  ;;  %v7641_v62 = vld [vmem:[#allocation5 + $0xad8] sm:$0xf]  ;;  %3230 = vmatpush.bf16.msrb.mxu2 %v6462_v54  ;;  %3206 = vmatpush.bf16.msrb.mxu3 %v7674_v56  ;;  %v6523_v15 = vld [vmem:[#allocation5 + $0x238] sm:$0xf0] }
 0x1ca   :  { %v9638_v0 = vld [vmem:[#allocation5 + $0xaf4] sm:$0xf0]  ;;  %v7515_v17 = vld [vmem:[#allocation5 + $0x9f8] sm:$0xf0] }
 0x1cb   :  { %v7353_v2 = vld [vmem:[#allocation5 + $0x898] sm:$0xf]  ;;  %v7642_v7 = vor.u32 %v9638_v0, %v7641_v62  ;;  %3194 = vmatpush.bf16.msra.mxu1 %v7386_v61  ;;  %v6590_v61 = vor.u32 %v9370_v25, %v6587_v40  ;;  %v6299_v62 = vld [vmem:[#allocation5 + $0x78] sm:$0xf0] }
 0x1cc   :  { %v9566_v3 = vld [vmem:[#allocation5 + $0x8b4] sm:$0xf0]  ;;  %3244 = vmatpush.bf16.msrb.mxu0 %v6686_v5  ;;  %v9466_v0 = vld [vmem:[#allocation5 + $0x59c] sm:$0xf]  ;;  %v6302_v8 = vor.u32 %v9298_v33, %v6299_v62  ;;  %v10631_v33 = vpop.f32.mrf.mxu1 }
 0x1cd   :  { %v7354_v9 = vor.u32 %v9566_v3, %v7353_v2  ;;  %v7609_v10 = vld [vmem:[#allocation5 + $0xa98] sm:$0xf]  ;;  %3231 = vmatpush.bf16.msrb.mxu2 %v6430_v1  ;;  %3207 = vmatpush.bf16.msrb.mxu3 %v7642_v7  ;;  %v6971_v1 = vld [vmem:[#allocation5 + $0x5b8] sm:$0xf0]  ;;  %v2928_v2 = vpop.f32.mrf.mxu2 }
 0x1ce   :  { %v9630_v11 = vld [vmem:[#allocation5 + $0xab4] sm:$0xf0]  ;;  %v9362_v5 = vld [vmem:[#allocation5 + $0x25c] sm:$0xf]  ;;  %v6974_v37 = vor.u32 %v9466_v0, %v6971_v1 }
 0x1cf   :  { %v7321_v13 = vld [vmem:[#allocation5 + $0x858] sm:$0xf]  ;;  %v7610_v51 = vor.u32 %v9630_v11, %v7609_v10  ;;  %3195 = vmatpush.bf16.msra.mxu1 %v7354_v9  ;;  %v9530_v7 = vld [vmem:[#allocation5 + $0x79c] sm:$0xf]  ;;  %v6558_v12 = vor.u32 %v9362_v5, %v6555_v6 }
 0x1d0   :  { %v9558_v53 = vld [vmem:[#allocation5 + $0x874] sm:$0xf0]  ;;  %3245 = vmatpush.bf16.msrb.mxu0 %v6654_v58  ;;  %v7227_v9 = vld [vmem:[#allocation5 + $0x7b8] sm:$0xf0] }
 0x1d1   :  { %v7322_v24 = vor.u32 %v9558_v53, %v7321_v13  ;;  %v7577_v52 = vld [vmem:[#allocation5 + $0xa58] sm:$0xf]  ;;  %3232 = vmatpush.bf16.msrb.mxu2 %v6398_v57  ;;  %3208 = vmatpush.bf16.msrb.mxu3 %v7610_v51  ;;  %v9290_v10 = vld [vmem:[#allocation5 + $0x1c] sm:$0xf]  ;;  %v7230_v63 = vor.u32 %v9530_v7, %v7227_v9 }
 0x1d2   :  { %v9622_v26 = vld [vmem:[#allocation5 + $0xa74] sm:$0xf0]  ;;  %v6267_v11 = vld [vmem:[#allocation5 + $0x38] sm:$0xf0] }
 0x1d3   :  { %v7289_v30 = vld [vmem:[#allocation5 + $0x818] sm:$0xf]  ;;  %v7578_v39 = vor.u32 %v9622_v26, %v7577_v52  ;;  %3196 = vmatpush.bf16.msra.mxu1 %v7322_v24  ;;  %v9354_v57 = vld [vmem:[#allocation5 + $0x21c] sm:$0xf]  ;;  %v6270_v51 = vor.u32 %v9290_v10, %v6267_v11 }
 0x1d4   :  { %v9550_v31 = vld [vmem:[#allocation5 + $0x834] sm:$0xf0]  ;;  %3246 = vmatpush.bf16.msrb.mxu0 %v6622_v35  ;;  %v6939_v13 = vld [vmem:[#allocation5 + $0x578] sm:$0xf0]  ;;  %v6526_v52 = vor.u32 %v9354_v57, %v6523_v15  ;;  %v10635_v57 = vpop.f32.mrf.mxu3 }
 0x1d5   :  { %v7290_v54 = vor.u32 %v9550_v31, %v7289_v30  ;;  %v7545_v43 = vld [vmem:[#allocation5 + $0xa18] sm:$0xf]  ;;  %3233 = vmatpush.bf16.msrb.mxu2 %v6366_v28  ;;  %3209 = vmatpush.bf16.msrb.mxu3 %v7578_v39  ;;  %v10623_v53 = vld.sshfl [vmem:[#allocation1 + $0x20] sm:$0xff pattern:$0x73625140]  ;;  %v6942_v21 = vor.u32 %v9458_v50, %v6939_v13  ;;  %v10629_v31 = vpop.f32.mrf.mxu2 }
 0x1d6   :  { %v9614_v20 = vld [vmem:[#allocation5 + $0xa34] sm:$0xf0]  ;;  %v9602_v58 = vld [vmem:[#allocation5 + $0x9dc] sm:$0xf] }
 0x1d7   :  { %v10619_v56 = vld.sshfl [vmem:[#allocation1 + $0x30] sm:$0xff pattern:$0x73625140]  ;;  %v7546_v3 = vor.u32 %v9614_v20, %v7545_v43  ;;  %3197 = vmatpush.bf16.msra.mxu1 %v7290_v54  ;;  %v10626_v24 = vld.sshfl [vmem:[#allocation1 + $0x28] sm:$0xff pattern:$0x73625140]  ;;  %v7518_v26 = vor.u32 %v9602_v58, %v7515_v17 }
 0x1d8   :  { %7813 = vmatmul.msk.bf16.vlgmr.msra.gmra.mxu0 %vm2589_vm0, %v10619_v56  ;;  %v9666_v18 = vld [vmem:[#allocation5 + $0xbdc] sm:$0xf] }
 0x1d9   :  { %3234 = vmatpush.bf16.msrb.mxu2 %v6334_v44  ;;  %3247 = vmatpush.bf16.msrb.mxu0 %v6590_v61  ;;  %v7771_v23 = vld [vmem:[#allocation5 + $0xbf8] sm:$0xf0] }
 0x1da   :  { %3198 = vmatmul.bf16.vlgmr.msra.gmra.mxu1 %v10623_v53  ;;  %3210 = vmatpush.bf16.msrb.mxu3 %v7546_v3  ;;  %v9522_v22 = vld [vmem:[#allocation5 + $0x75c] sm:$0xf]  ;;  %v7774_v32 = vor.u32 %v9666_v18, %v7771_v23  ;;  %v2980_v18 = vpop.f32.mrf.mxu1 }
 0x1db   :  { %3255 = vmatpush.bf16.msrb.mxu1 %v7006_v47  ;;  %v7195_v4 = vld [vmem:[#allocation5 + $0x778] sm:$0xf0]  ;;  %v9773_v18 = vld [vmem:[#allocation8 + $0x2ec] sm:$0xf0] }
 0x1dc   :  { %v9450_v28 = vld [vmem:[#allocation5 + $0x51c] sm:$0xf]  ;;  %v7198_v36 = vor.u32 %v9522_v22, %v7195_v4 }
 0x1dd   :  { %3235 = vmatpush.bf16.msrb.mxu2 %v6302_v8  ;;  %3248 = vmatpush.bf16.msrb.mxu0 %v6558_v12  ;;  %v6907_v30 = vld [vmem:[#allocation5 + $0x538] sm:$0xf0]  ;;  %v2954_v6 = vpop.f32.mrf.mxu2 }
 0x1de   :  { %3268 = vmatpush.bf16.msra.mxu3 %v7262_v45  ;;  %v9594_v35 = vld [vmem:[#allocation5 + $0x99c] sm:$0xf]  ;;  %v6910_v25 = vor.u32 %v9450_v28, %v6907_v30 }
 0x1df   :  { %3256 = vmatpush.bf16.msrb.mxu1 %v6974_v37  ;;  %3211 = vmatmul.bf16.vlgmr.msrb.gmra.mxu3 %v10626_v24  ;;  %v7483_v42 = vld [vmem:[#allocation5 + $0x9b8] sm:$0xf0] }
 0x1e0   :  { %v9658_v38 = vld [vmem:[#allocation5 + $0xb9c] sm:$0xf]  ;;  %v7486_v43 = vor.u32 %v9594_v35, %v7483_v42 }
 0x1e1   :  { %v7739_v39 = vld [vmem:[#allocation5 + $0xbb8] sm:$0xf0]  ;;  %3236 = vmatpush.bf16.msrb.mxu2 %v6270_v51  ;;  %3249 = vmatpush.bf16.msrb.mxu0 %v6526_v52 }
 0x1e2   :  { %3269 = vmatpush.bf16.msra.mxu3 %v7230_v63  ;;  %v9514_v40 = vld [vmem:[#allocation5 + $0x71c] sm:$0xf]  ;;  %v7742_v47 = vor.u32 %v9658_v38, %v7739_v39  ;;  %v10637_v63 = vpop.f32.mrf.mxu0 }
 0x1e3   :  { %3257 = vmatpush.bf16.msrb.mxu1 %v6942_v21  ;;  %v7163_v54 = vld [vmem:[#allocation5 + $0x738] sm:$0xf0] }
 0x1e4   :  { %v9442_v20 = vld [vmem:[#allocation5 + $0x4dc] sm:$0xf]  ;;  %v7166_v59 = vor.u32 %v9514_v40, %v7163_v54  ;;  %3237 = vmatmul.bf16.vlgmr.msrb.gmra.mxu2 %v10604_v19 }
 0x1e5   :  { %3281 = vmatpush.bf16.msra.mxu2 %v7518_v26  ;;  %v6875_v44 = vld [vmem:[#allocation5 + $0x4f8] sm:$0xf0]  ;;  %3294 = vmatpush.bf16.msra.mxu0 %v7774_v32  ;;  %v10639_v35 = vpop.f32.mrf.mxu2 }
 0x1e6   :  { %v9586_v48 = vld [vmem:[#allocation5 + $0x95c] sm:$0xf]  ;;  %3270 = vmatpush.bf16.msra.mxu3 %v7198_v36  ;;  %v6878_v62 = vor.u32 %v9442_v20, %v6875_v44 }
 0x1e7   :  { %v7451_v49 = vld [vmem:[#allocation5 + $0x978] sm:$0xf0]  ;;  %3258 = vmatpush.bf16.msrb.mxu1 %v6910_v25 }
 0x1e8   :  { %v9650_v60 = vld [vmem:[#allocation5 + $0xb5c] sm:$0xf]  ;;  %3250 = vmatmul.bf16.vlgmr.msrb.gmra.mxu0 %v10607_v27  ;;  %v7454_v2 = vor.u32 %v9586_v48, %v7451_v49 }
 0x1e9   :  { %v7707_v61 = vld [vmem:[#allocation5 + $0xb78] sm:$0xf0]  ;;  %3282 = vmatpush.bf16.msra.mxu2 %v7486_v43  ;;  %3295 = vmatpush.bf16.msra.mxu0 %v7742_v47  ;;  %v7929_v47 = vld [vmem:[#allocation8 + $0xe0] sm:$0xf] }
 0x1ea   :  { %v9506_v0 = vld [vmem:[#allocation5 + $0x6dc] sm:$0xf]  ;;  %v7710_v45 = vor.u32 %v9650_v60, %v7707_v61  ;;  %3271 = vmatpush.bf16.msra.mxu3 %v7166_v59  ;;  %v9709_v59 = vld [vmem:[#allocation8 + $0xec] sm:$0xf0]  ;;  %v8057_v60 = vld [vmem:[#allocation8 + $0x1e0] sm:$0xf] }
 0x1eb   :  { %v7131_v1 = vld [vmem:[#allocation5 + $0x6f8] sm:$0xf0]  ;;  %3259 = vmatpush.bf16.msrb.mxu1 %v6878_v62  ;;  %v9741_v61 = vld [vmem:[#allocation8 + $0x1ec] sm:$0xf0]  ;;  %v2967_v62 = vpop.f32.mrf.mxu3 }
 0x1ec   :  { %v9434_v3 = vld [vmem:[#allocation5 + $0x49c] sm:$0xf]  ;;  %v7134_v37 = vor.u32 %v9506_v0, %v7131_v1 }
 0x1ed   :  { %v6843_v5 = vld [vmem:[#allocation5 + $0x4b8] sm:$0xf0]  ;;  %3283 = vmatpush.bf16.msra.mxu2 %v7454_v2  ;;  %3296 = vmatpush.bf16.msra.mxu0 %v7710_v45 }
 0x1ee   :  { %v9578_v7 = vld [vmem:[#allocation5 + $0x91c] sm:$0xf]  ;;  %v6846_v10 = vor.u32 %v9434_v3, %v6843_v5  ;;  %3272 = vmatpush.bf16.msra.mxu3 %v7134_v37  ;;  %v3006_v3 = vpop.f32.mrf.mxu0  ;;  %v7913_v37 = vld [vmem:[#allocation8 + $0xc0] sm:$0xf] }
 0x1ef   :  { %v7419_v8 = vld [vmem:[#allocation5 + $0x938] sm:$0xf0]  ;;  %v7865_v3 = vld [vmem:[#allocation8 + $0x60] sm:$0xf] }
 0x1f0   :  { %v9642_v19 = vld [vmem:[#allocation5 + $0xb1c] sm:$0xf]  ;;  %v7422_v27 = vor.u32 %v9578_v7, %v7419_v8  ;;  %3260 = vmatpush.bf16.msrb.mxu1 %v6846_v10  ;;  %v7930_v7 = vor.u32 %v9709_v59, %v7929_v47  ;;  %v8058_v8 = vor.u32 %v9741_v61, %v8057_v60  ;;  %v8041_v10 = vld [vmem:[#allocation8 + $0x1c0] sm:$0xf]  ;;  %v9729_v47 = vld [vmem:[#allocation8 + $0x18c] sm:$0xf0]  ;;  %v10645_v61 = vpop.f32.mrf.mxu1 }
 0x1f1   :  { %v7675_v9 = vld [vmem:[#allocation5 + $0xb38] sm:$0xf0]  ;;  %v8153_v59 = vld [vmem:[#allocation8 + $0x2a0] sm:$0xf]  ;;  %v9765_v60 = vld [vmem:[#allocation8 + $0x2ac] sm:$0xf0] }
 0x1f2   :  { %v9498_v11 = vld [vmem:[#allocation5 + $0x69c] sm:$0xf]  ;;  %v7678_v15 = vor.u32 %v9642_v19, %v7675_v9  ;;  %3284 = vmatpush.bf16.msra.mxu2 %v7422_v27  ;;  %v9705_v9 = vld [vmem:[#allocation8 + $0xcc] sm:$0xf0] }
 0x1f3   :  { %v7099_v12 = vld [vmem:[#allocation5 + $0x6b8] sm:$0xf0] }
 0x1f4   :  { %v9426_v50 = vld [vmem:[#allocation5 + $0x45c] sm:$0xf]  ;;  %v7102_v23 = vor.u32 %v9498_v11, %v7099_v12  ;;  %3297 = vmatpush.bf16.msra.mxu0 %v7678_v15  ;;  %v9737_v11 = vld [vmem:[#allocation8 + $0x1cc] sm:$0xf0]  ;;  %v2993_v12 = vpop.f32.mrf.mxu2 }
 0x1f5   :  { %v6811_v13 = vld [vmem:[#allocation5 + $0x478] sm:$0xf0]  ;;  %v7849_v12 = vld [vmem:[#allocation8 + $0x40] sm:$0xf] }
 0x1f6   :  { %v9570_v58 = vld [vmem:[#allocation5 + $0x8dc] sm:$0xf]  ;;  %v6814_v22 = vor.u32 %v9426_v50, %v6811_v13  ;;  %3273 = vmatpush.bf16.msra.mxu3 %v7102_v23  ;;  %v7914_v23 = vor.u32 %v9705_v9, %v7913_v37  ;;  %v8137_v37 = vld [vmem:[#allocation8 + $0x280] sm:$0xf] }
 0x1f7   :  { %v7387_v17 = vld [vmem:[#allocation5 + $0x8f8] sm:$0xf0]  ;;  %v8265_v9 = vld [vmem:[#allocation8 + $0x380] sm:$0xf] }
 0x1f8   :  { %v9634_v51 = vld [vmem:[#allocation5 + $0xadc] sm:$0xf]  ;;  %v7390_v26 = vor.u32 %v9570_v58, %v7387_v17  ;;  %3261 = vmatpush.bf16.msrb.mxu1 %v6814_v22  ;;  %v8185_v17 = vld [vmem:[#allocation8 + $0x2e0] sm:$0xf]  ;;  %v9805_v22 = vld [vmem:[#allocation8 + $0x3ec] sm:$0xf0] }
 0x1f9   :  { %v7643_v21 = vld [vmem:[#allocation5 + $0xaf8] sm:$0xf0] }
 0x1fa   :  { %v9490_v4 = vld [vmem:[#allocation5 + $0x65c] sm:$0xf]  ;;  %v7646_v42 = vor.u32 %v9634_v51, %v7643_v21  ;;  %3285 = vmatpush.bf16.msra.mxu2 %v7390_v26  ;;  %v8042_v51 = vor.u32 %v9737_v11, %v8041_v10  ;;  %v8313_v21 = vld [vmem:[#allocation8 + $0x3e0] sm:$0xf]  ;;  %v9701_v26 = vld [vmem:[#allocation8 + $0xac] sm:$0xf0] }
 0x1fb   :  { %v7067_v52 = vld [vmem:[#allocation5 + $0x678] sm:$0xf0]  ;;  %v9793_v10 = vld [vmem:[#allocation8 + $0x38c] sm:$0xf0] }
 0x1fc   :  { %v9418_v28 = vld [vmem:[#allocation5 + $0x41c] sm:$0xf]  ;;  %v7070_v25 = vor.u32 %v9490_v4, %v7067_v52  ;;  %3298 = vmatpush.bf16.msra.mxu0 %v7646_v42  ;;  %v7897_v52 = vld [vmem:[#allocation8 + $0xa0] sm:$0xf]  ;;  %v8314_v42 = vor.u32 %v9805_v22, %v8313_v21  ;;  %v3032_v21 = vpop.f32.mrf.mxu1 }
 0x1fd   :  { %v6779_v30 = vld [vmem:[#allocation5 + $0x438] sm:$0xf0]  ;;  %v8697_v21 = vld [vmem:[#allocation8 + $0x6e0] sm:$0xf] }
 0x1fe   :  { %v9562_v32 = vld [vmem:[#allocation5 + $0x89c] sm:$0xf]  ;;  %v6782_v43 = vor.u32 %v9418_v28, %v6779_v30  ;;  %3274 = vmatpush.bf16.msra.mxu3 %v7070_v25  ;;  %v8186_v30 = vor.u32 %v9773_v18, %v8185_v17  ;;  %v8297_v25 = vld [vmem:[#allocation8 + $0x3c0] sm:$0xf]  ;;  %v8266_v17 = vor.u32 %v9793_v10, %v8265_v9 }
 0x1ff   :  { %v7355_v36 = vld [vmem:[#allocation5 + $0x8b8] sm:$0xf0]  ;;  %v8121_v18 = vld [vmem:[#allocation8 + $0x260] sm:$0xf] }
 0x200   :  { %v9674_v38 = vld [vmem:[#allocation5 + $0xc1c] sm:$0xf]  ;;  %v7358_v48 = vor.u32 %v9562_v32, %v7355_v36  ;;  %3262 = vmatpush.bf16.msrb.mxu1 %v6782_v43  ;;  %v9733_v32 = vld [vmem:[#allocation8 + $0x1ac] sm:$0xf0]  ;;  %v8169_v36 = vld [vmem:[#allocation8 + $0x2c0] sm:$0xf] }
 0x201   :  { %v7803_v39 = vld [vmem:[#allocation5 + $0xc38] sm:$0xf0]  ;;  %v7881_v43 = vld [vmem:[#allocation8 + $0x80] sm:$0xf] }
 0x202   :  { %v9626_v40 = vld [vmem:[#allocation5 + $0xa9c] sm:$0xf]  ;;  %v7806_v49 = vor.u32 %v9674_v38, %v7803_v39  ;;  %3286 = vmatpush.bf16.msra.mxu2 %v7358_v48  ;;  %v9769_v38 = vld [vmem:[#allocation8 + $0x2cc] sm:$0xf0]  ;;  %v7898_v39 = vor.u32 %v9701_v26, %v7897_v52  ;;  %v10643_v48 = vpop.f32.mrf.mxu2 }
 0x203   :  { %v7611_v54 = vld [vmem:[#allocation5 + $0xab8] sm:$0xf0]  ;;  %3263 = vmatmul.bf16.vlgmr.msrb.gmra.mxu1 %v10610_v41  ;;  %v8025_v41 = vld [vmem:[#allocation8 + $0x1a0] sm:$0xf]  ;;  %v9789_v52 = vld [vmem:[#allocation8 + $0x36c] sm:$0xf0] }
 0x204   :  { %v9482_v20 = vld [vmem:[#allocation5 + $0x61c] sm:$0xf]  ;;  %v7614_v0 = vor.u32 %v9626_v40, %v7611_v54  ;;  %3314 = vmatpush.bf16.msra.mxu1 %v7806_v49  ;;  %v9801_v40 = vld [vmem:[#allocation8 + $0x3cc] sm:$0xf0]  ;;  %v8026_v54 = vor.u32 %v9733_v32, %v8025_v41  ;;  %v7961_v32 = vld [vmem:[#allocation8 + $0x120] sm:$0xf] }
 0x205   :  { %v7035_v44 = vld [vmem:[#allocation5 + $0x638] sm:$0xf0]  ;;  %v8298_v49 = vor.u32 %v9801_v40, %v8297_v25  ;;  %v8233_v25 = vld [vmem:[#allocation8 + $0x340] sm:$0xf]  ;;  %v9785_v40 = vld [vmem:[#allocation8 + $0x34c] sm:$0xf0] }
 0x206   :  { %v9554_v1 = vld [vmem:[#allocation5 + $0x85c] sm:$0xf]  ;;  %v7038_v5 = vor.u32 %v9482_v20, %v7035_v44  ;;  %3299 = vmatpush.bf16.msra.mxu0 %v7614_v0  ;;  %v9697_v20 = vld [vmem:[#allocation8 + $0x8c] sm:$0xf0]  ;;  %v8170_v44 = vor.u32 %v9769_v38, %v8169_v36  ;;  %v8281_v0 = vld [vmem:[#allocation8 + $0x3a0] sm:$0xf] }
 0x207   :  { %v7323_v2 = vld [vmem:[#allocation5 + $0x878] sm:$0xf0]  ;;  %v7882_v62 = vor.u32 %v9697_v20, %v7881_v43  ;;  %v8105_v36 = vld [vmem:[#allocation8 + $0x240] sm:$0xf]  ;;  %v9753_v38 = vld [vmem:[#allocation8 + $0x24c] sm:$0xf0] }
 0x208   :  { %v9618_v6 = vld [vmem:[#allocation5 + $0xa5c] sm:$0xf]  ;;  %v7326_v19 = vor.u32 %v9554_v1, %v7323_v2  ;;  %3275 = vmatpush.bf16.msra.mxu3 %v7038_v5  ;;  %4895 = vmatpush.bf16.msrb.mxu1 %v8058_v8  ;;  %v9797_v1 = vld [vmem:[#allocation8 + $0x3ac] sm:$0xf0] }
 0x209   :  { %v7579_v45 = vld [vmem:[#allocation5 + $0xa78] sm:$0xf0]  ;;  %v9693_v5 = vld [vmem:[#allocation8 + $0x6c] sm:$0xf0]  ;;  %v8282_v8 = vor.u32 %v9797_v1, %v8281_v0  ;;  %v8234_v1 = vor.u32 %v9785_v40, %v8233_v25  ;;  %v8681_v25 = vld [vmem:[#allocation8 + $0x6c0] sm:$0xf] }
 0x20a   :  { %v7582_v27 = vor.u32 %v9618_v6, %v7579_v45  ;;  %v9546_v50 = vld [vmem:[#allocation5 + $0x81c] sm:$0xf]  ;;  %3287 = vmatpush.bf16.msra.mxu2 %v7326_v19  ;;  %v8154_v6 = vor.u32 %v9765_v60, %v8153_v59  ;;  %v7993_v45 = vld [vmem:[#allocation8 + $0x160] sm:$0xf]  ;;  %v9761_v19 = vld [vmem:[#allocation8 + $0x28c] sm:$0xf0] }
 0x20b   :  { %v7291_v13 = vld [vmem:[#allocation5 + $0x838] sm:$0xf0]  ;;  %3276 = vmatmul.bf16.vlgmr.msra.gmra.mxu3 %v10614_v55  ;;  %v8009_v55 = vld [vmem:[#allocation8 + $0x180] sm:$0xf]  ;;  %v9681_v20 = vld [vmem:[#allocation8 + $0xc] sm:$0xf0] }
 0x20c   :  { %v9610_v15 = vld [vmem:[#allocation5 + $0xa1c] sm:$0xf]  ;;  %4882 = vmatpush.bf16.msrb.mxu3 %v7930_v7  ;;  %v7294_v4 = vor.u32 %v9546_v50, %v7291_v13  ;;  %3300 = vmatpush.bf16.msra.mxu0 %v7582_v27  ;;  %v8010_v2 = vor.u32 %v9729_v47, %v8009_v55  ;;  %v9725_v7 = vld [vmem:[#allocation8 + $0x16c] sm:$0xf0]  ;;  %v10649_v27 = vpop.f32.mrf.mxu3  ;;  %v8138_v50 = vor.u32 %v9761_v19, %v8137_v37  ;;  %v7977_v13 = vld [vmem:[#allocation8 + $0x140] sm:$0xf] }
 0x20d   :  { %v7547_v58 = vld [vmem:[#allocation5 + $0xa38] sm:$0xf0]  ;;  %4896 = vmatpush.bf16.msrb.mxu1 %v8042_v51  ;;  %v7994_v11 = vor.u32 %v9725_v7, %v7993_v45  ;;  %v10653_v51 = vpop.f32.mrf.mxu0  ;;  %v9713_v55 = vld [vmem:[#allocation8 + $0x10c] sm:$0xf0]  ;;  %v8106_v47 = vor.u32 %v9753_v38, %v8105_v36  ;;  %v8569_v60 = vld [vmem:[#allocation8 + $0x5e0] sm:$0xf] }
 0x20e   :  { %v7550_v28 = vor.u32 %v9610_v15, %v7547_v58  ;;  %3288 = vmatpush.bf16.msra.mxu2 %v7294_v4  ;;  %v9721_v15 = vld [vmem:[#allocation8 + $0x14c] sm:$0xf0]  ;;  %v3045_v58 = vpop.f32.mrf.mxu2  ;;  %v8249_v4 = vld [vmem:[#allocation8 + $0x360] sm:$0xf]  ;;  %v599_v45 = vperm.slane %v10594_v46, 4  ;;  %v3320_v19 = vmax.f32 %v10562_v16, 0.0  ;;  %v2953_v16 = vadd.f32 %v10629_v31, %v10617_v34 }
 0x20f   :  { %v7978_v26 = vor.u32 %v9721_v15, %v7977_v13  ;;  %v9837_v59 = vld [vmem:[#allocation8 + $0x4ec] sm:$0xf0]  ;;  %v8553_v13 = vld [vmem:[#allocation8 + $0x5c0] sm:$0xf]  ;;  %v3322_v31 = vmax.f32 %v10600_v29, 0.0 }
 0x210   :  { %4883 = vmatpush.bf16.msrb.mxu3 %v7914_v23  ;;  %3301 = vmatpush.bf16.msra.mxu0 %v7550_v28  ;;  %v9757_v23 = vld [vmem:[#allocation8 + $0x26c] sm:$0xf0]  ;;  %v7833_v28 = vld [vmem:[#allocation8 + $0x20] sm:$0xf]  ;;  %v3323_v38 = vmax.f32 %v2953_v16, 0.0 }
 0x211   :  { %3289 = vmatmul.bf16.vlgmr.msra.gmra.mxu2 %v10623_v53  ;;  %4897 = vmatpush.bf16.msrb.mxu1 %v8026_v54  ;;  %v7866_v53 = vor.u32 %v9693_v5, %v7865_v3  ;;  %v8122_v41 = vor.u32 %v9757_v23, %v8121_v18  ;;  %v7817_v54 = vld [vmem:[#allocation8] sm:$0xf]  ;;  %v9749_v5 = vld [vmem:[#allocation8 + $0x22c] sm:$0xf0] }
 0x212   :  { %4908 = vmatpush.bf16.msrb.mxu2 %v8186_v30  ;;  %v9685_v30 = vld [vmem:[#allocation8 + $0x2c] sm:$0xf0]  ;;  %v8089_v3 = vld [vmem:[#allocation8 + $0x220] sm:$0xf]  ;;  %v7818_v7 = vor.u32 %v9681_v20, %v7817_v54 }
 0x213   :  { %3302 = vmatmul.bf16.vlgmr.msra.gmra.mxu0 %v10626_v24  ;;  %v9689_v24 = vld [vmem:[#allocation8 + $0x4c] sm:$0xf0]  ;;  %7814 = vmatmul.msk.bf16.vlgmr.msra.gmra.mxu1 %vm2589_vm0, %v10619_v56  ;;  %v8250_v56 = vor.u32 %v9789_v52, %v8249_v4  ;;  %v8073_v58 = vld [vmem:[#allocation8 + $0x200] sm:$0xf]  ;;  %v10663_v4 = vpack.c.bf16 %v3320_v19, %v3320_v19 }
 0x214   :  { %4921 = vmatpush.bf16.msrb.mxu0 %v8314_v42  ;;  %4884 = vmatpush.bf16.msrb.mxu3 %v7898_v39  ;;  %v7850_v22 = vor.u32 %v9689_v24, %v7849_v12  ;;  %v9717_v42 = vld [vmem:[#allocation8 + $0x12c] sm:$0xf0]  ;;  %v7834_v39 = vor.u32 %v9685_v30, %v7833_v28  ;;  %v8090_v24 = vor.u32 %v9749_v5, %v8089_v3  ;;  %v8201_v18 = vld [vmem:[#allocation8 + $0x300] sm:$0xf]  ;;  %v3095_v5 = vpop.f32.mrf.mxu1 }
 0x215   :  { %4898 = vmatpush.bf16.msrb.mxu1 %v8010_v2  ;;  %v7962_v43 = vor.u32 %v9717_v42, %v7961_v32  ;;  %v9869_v2 = vld [vmem:[#allocation8 + $0x5ec] sm:$0xf0]  ;;  %v8537_v42 = vld [vmem:[#allocation8 + $0x5a0] sm:$0xf] }
 0x216   :  { %4909 = vmatpush.bf16.msrb.mxu2 %v8170_v44  ;;  %v7945_v44 = vld [vmem:[#allocation8 + $0x100] sm:$0xf]  ;;  %v10655_v0 = vpop.f32.mrf.mxu2  ;;  %v9781_v37 = vld [vmem:[#allocation8 + $0x32c] sm:$0xf0]  ;;  %v8570_v12 = vor.u32 %v9869_v2, %v8569_v60  ;;  %v10676_v60 = vpack.c.bf16 %v3323_v38, %v3323_v38 }
 0x217   :  { %v7946_v9 = vor.u32 %v9713_v55, %v7945_v44  ;;  %v9865_v15 = vld [vmem:[#allocation8 + $0x5cc] sm:$0xf0]  ;;  %v8393_v44 = vld [vmem:[#allocation8 + $0x480] sm:$0xf] }
 0x218   :  { %4922 = vmatpush.bf16.msrb.mxu0 %v8298_v49  ;;  %4885 = vmatpush.bf16.msrb.mxu3 %v7882_v62  ;;  %v8441_v49 = vld [vmem:[#allocation8 + $0x4e0] sm:$0xf]  ;;  %v3019_v62 = vpop.f32.mrf.mxu3  ;;  %v9777_v23 = vld [vmem:[#allocation8 + $0x30c] sm:$0xf0]  ;;  %v8554_v28 = vor.u32 %v9865_v15, %v8553_v13 }
 0x219   :  { %4899 = vmatpush.bf16.msrb.mxu1 %v7994_v11  ;;  %v8442_v10 = vor.u32 %v9837_v59, %v8441_v49  ;;  %v8425_v11 = vld [vmem:[#allocation8 + $0x4c0] sm:$0xf]  ;;  %v9829_v32 = vld [vmem:[#allocation8 + $0x4ac] sm:$0xf0] }
 0x21a   :  { %4910 = vmatpush.bf16.msrb.mxu2 %v8154_v6  ;;  %v3058_v6 = vpop.f32.mrf.mxu0  ;;  %v9897_v40 = vld [vmem:[#allocation8 + $0x6cc] sm:$0xf0]  ;;  %v8521_v49 = vld [vmem:[#allocation8 + $0x580] sm:$0xf] }
 0x21b   :  { %v9825_v55 = vld [vmem:[#allocation8 + $0x48c] sm:$0xf0]  ;;  %v8682_v59 = vor.u32 %v9897_v40, %v8681_v25  ;;  %v8633_v16 = vld [vmem:[#allocation8 + $0x660] sm:$0xf]  ;;  %v9707_v40 = vld [vmem:[#allocation8 + $0xe4] sm:$0xf] }
 0x21c   :  { %4923 = vmatpush.bf16.msrb.mxu0 %v8282_v8  ;;  %4886 = vmatpush.bf16.msrb.mxu3 %v7866_v53  ;;  %v8217_v8 = vld [vmem:[#allocation8 + $0x320] sm:$0xf]  ;;  %v3321_v53 = vmax.f32 %v10578_v14, 0.0  ;;  %v2966_v14 = vadd.f32 %v10635_v57, %v599_v45  ;;  %v8202_v57 = vor.u32 %v9777_v23, %v8201_v18  ;;  %v9893_v2 = vld [vmem:[#allocation8 + $0x6ac] sm:$0xf0]  ;;  %v8394_v3 = vor.u32 %v9825_v55, %v8393_v44  ;;  %v3097_v23 = vpop.f32.mrf.mxu1 }
 0x21d   :  { %4900 = vmatpush.bf16.msrb.mxu1 %v7978_v26  ;;  %v8218_v46 = vor.u32 %v9781_v37, %v8217_v8  ;;  %v9821_v8 = vld [vmem:[#allocation8 + $0x46c] sm:$0xf0]  ;;  %v8505_v37 = vld [vmem:[#allocation8 + $0x560] sm:$0xf]  ;;  %v8059_v55 = vld [vmem:[#allocation8 + $0x1f0] sm:$0xf0] }
 0x21e   :  { %4911 = vmatpush.bf16.msrb.mxu2 %v8138_v50  ;;  %v9833_v50 = vld [vmem:[#allocation8 + $0x4cc] sm:$0xf0]  ;;  %v10665_v26 = vpack.c.bf16 %v3321_v53, %v3321_v53  ;;  %v3071_v34 = vpop.f32.mrf.mxu2  ;;  %v8457_v38 = vld [vmem:[#allocation8 + $0x500] sm:$0xf] }
 0x21f   :  { %v8426_v52 = vor.u32 %v9833_v50, %v8425_v11  ;;  %v9853_v19 = vld [vmem:[#allocation8 + $0x56c] sm:$0xf0]  ;;  %v8361_v50 = vld [vmem:[#allocation8 + $0x440] sm:$0xf] }
 0x220   :  { %4924 = vmatpush.bf16.msrb.mxu0 %v8266_v17  ;;  %4887 = vmatpush.bf16.msrb.mxu3 %v7850_v22  ;;  %v9745_v17 = vld [vmem:[#allocation8 + $0x20c] sm:$0xf0]  ;;  %v3082_v15 = vpop.f32.mrf.mxu3 }
 0x221   :  { %4901 = vmatpush.bf16.msrb.mxu1 %v7962_v43  ;;  %v9901_v22 = vld [vmem:[#allocation8 + $0x6ec] sm:$0xf0]  ;;  %v8074_v30 = vor.u32 %v9745_v17, %v8073_v58  ;;  %v10671_v43 = vld [vmem:[#allocation7] sm:$0xff] }
 0x222   :  { %4912 = vmatpush.bf16.msrb.mxu2 %v8122_v41  ;;  %v8409_v41 = vld [vmem:[#allocation8 + $0x4a0] sm:$0xf]  ;;  %v8698_v36 = vor.u32 %v9901_v22, %v8697_v21  ;;  %v600_v29 = vperm.slane %v10671_v43, 5  ;;  %v9817_v13 = vld [vmem:[#allocation8 + $0x44c] sm:$0xf0]  ;;  %v3108_v18 = vpop.f32.mrf.mxu0 }
 0x223   :  { %v8410_v54 = vor.u32 %v9829_v32, %v8409_v41  ;;  %v9849_v58 = vld [vmem:[#allocation8 + $0x54c] sm:$0xf0]  ;;  %v8345_v22 = vld [vmem:[#allocation8 + $0x420] sm:$0xf] }
 0x224   :  { %4925 = vmatpush.bf16.msrb.mxu0 %v8250_v56  ;;  %4888 = vmatpush.bf16.msrb.mxu3 %v7834_v39  ;;  %v9861_v56 = vld [vmem:[#allocation8 + $0x5ac] sm:$0xf0]  ;;  %v2979_v39 = vadd.f32 %v10631_v33, %v2966_v14  ;;  %v3057_v6 = vadd.f32 %v10653_v51, %v600_v29  ;;  %v8362_v14 = vor.u32 %v9817_v13, %v8361_v50  ;;  %v8617_v32 = vld [vmem:[#allocation8 + $0x640] sm:$0xf]  ;;  %v9739_v29 = vld [vmem:[#allocation8 + $0x1e4] sm:$0xf] }
 0x225   :  { %4902 = vmatpush.bf16.msrb.mxu1 %v7946_v9  ;;  %v8538_v20 = vor.u32 %v9861_v56, %v8537_v42  ;;  %v9857_v33 = vld [vmem:[#allocation8 + $0x58c] sm:$0xf0]  ;;  %v8649_v9 = vld [vmem:[#allocation8 + $0x680] sm:$0xf] }
 0x226   :  { %4913 = vmatpush.bf16.msrb.mxu2 %v8106_v47  ;;  %v10674_v47 = vpack.c.bf16 %v3322_v31, %v3322_v31  ;;  %v2992_v62 = vadd.f32 %v10639_v35, %v2979_v39  ;;  %v8522_v45 = vor.u32 %v9857_v33, %v8521_v49  ;;  %v3070_v51 = vadd.f32 %v10655_v0, %v3057_v6  ;;  %v9881_v34 = vld [vmem:[#allocation8 + $0x64c] sm:$0xf0]  ;;  %v3121_v44 = vpop.f32.mrf.mxu2  ;;  %v8601_v33 = vld [vmem:[#allocation8 + $0x620] sm:$0xf]  ;;  %v9703_v6 = vld [vmem:[#allocation8 + $0xc4] sm:$0xf] }
 0x227   :  { %v9841_v39 = vld [vmem:[#allocation8 + $0x50c] sm:$0xf0] }
 0x228   :  { %4926 = vmatpush.bf16.msrb.mxu0 %v8234_v1  ;;  %4889 = vmatpush.bf16.msrb.mxu3 %v7818_v7  ;;  %v8665_v1 = vld [vmem:[#allocation8 + $0x6a0] sm:$0xf]  ;;  %v3005_v35 = vadd.f32 %v10637_v63, %v2992_v62  ;;  %v9885_v63 = vld [vmem:[#allocation8 + $0x66c] sm:$0xf0]  ;;  %v3084_v25 = vpop.f32.mrf.mxu3 }
 0x229   :  { %4947 = vmatpush.bf16.msra.mxu1 %v8570_v12  ;;  %v8377_v7 = vld [vmem:[#allocation8 + $0x460] sm:$0xf]  ;;  %v8666_v53 = vor.u32 %v9893_v2, %v8665_v1  ;;  %v8634_v41 = vor.u32 %v9885_v63, %v8633_v16  ;;  %v8458_v2 = vor.u32 %v9841_v39, %v8457_v38  ;;  %v9731_v16 = vld [vmem:[#allocation8 + $0x1a4] sm:$0xf]  ;;  %v8027_v63 = vld [vmem:[#allocation8 + $0x1b0] sm:$0xf0] }
 0x22a   :  { %4914 = vmatpush.bf16.msrb.mxu2 %v8090_v24  ;;  %4903 = vmatmul.bf16.vlgmr.msrb.gmra.mxu1 %v10665_v26  ;;  %v8378_v11 = vor.u32 %v9821_v8, %v8377_v7  ;;  %v3018_v12 = vadd.f32 %v10649_v27, %v3005_v35  ;;  %v8506_v24 = vor.u32 %v9853_v19, %v8505_v37  ;;  %v3110_v49 = vpop.f32.mrf.mxu0  ;;  %v9735_v7 = vld [vmem:[#allocation8 + $0x1c4] sm:$0xf]  ;;  %v8043_v37 = vld [vmem:[#allocation8 + $0x1d0] sm:$0xf0]  ;;  %v8585_v19 = vld [vmem:[#allocation8 + $0x600] sm:$0xf] }
 0x22b   :  { %4890 = vmatmul.bf16.vlgmr.msrb.gmra.mxu3 %v10663_v4  ;;  %v3083_v27 = vadd.f32 %v3082_v15, %v3070_v51  ;;  %v9771_v35 = vld [vmem:[#allocation8 + $0x2e4] sm:$0xf]  ;;  %v8825_v51 = vld [vmem:[#allocation8 + $0x7e0] sm:$0xf]  ;;  %v8046_v13 = vor.u32 %v9735_v7, %v8043_v37  ;;  %v7979_v37 = vld [vmem:[#allocation8 + $0x150] sm:$0xf0] }
 0x22c   :  { %4934 = vmatpush.bf16.msra.mxu3 %v8442_v10  ;;  %4927 = vmatpush.bf16.msrb.mxu0 %v8218_v46  ;;  %v9889_v10 = vld [vmem:[#allocation8 + $0x68c] sm:$0xf0]  ;;  %v8489_v46 = vld [vmem:[#allocation8 + $0x540] sm:$0xf]  ;;  %v3031_v21 = vadd.f32 %v10645_v61, %v3018_v12  ;;  %v9699_v15 = vld [vmem:[#allocation8 + $0xa4] sm:$0xf] }
 0x22d   :  { %4948 = vmatpush.bf16.msra.mxu1 %v8554_v28  ;;  %v8650_v17 = vor.u32 %v9889_v10, %v8649_v9  ;;  %v8490_v0 = vor.u32 %v9849_v58, %v8489_v46  ;;  %v8473_v28 = vld [vmem:[#allocation8 + $0x520] sm:$0xf]  ;;  %v3096_v56 = vadd.f32 %v3095_v5, %v3083_v27  ;;  %v9809_v61 = vld [vmem:[#allocation8 + $0x40c] sm:$0xf0]  ;;  %v8062_v5 = vor.u32 %v9739_v29, %v8059_v55  ;;  %v8187_v9 = vld [vmem:[#allocation8 + $0x2f0] sm:$0xf0] }
 0x22e   :  { %4915 = vmatpush.bf16.msrb.mxu2 %v8074_v30  ;;  %v9845_v30 = vld [vmem:[#allocation8 + $0x52c] sm:$0xf0]  ;;  %v3044_v42 = vadd.f32 %v10643_v48, %v3031_v21  ;;  %v7899_v46 = vld [vmem:[#allocation8 + $0xb0] sm:$0xf0]  ;;  %v8190_v23 = vor.u32 %v9771_v35, %v8187_v9  ;;  %v9767_v21 = vld [vmem:[#allocation8 + $0x2c4] sm:$0xf] }
 0x22f   :  { %v3109_v1 = vadd.f32 %v3108_v18, %v3096_v56  ;;  %v8171_v27 = vld [vmem:[#allocation8 + $0x2d0] sm:$0xf0]  ;;  %v8793_v25 = vld [vmem:[#allocation8 + $0x7a0] sm:$0xf]  ;;  %v9723_v49 = vld [vmem:[#allocation8 + $0x164] sm:$0xf] }
 0x230   :  { %4935 = vmatpush.bf16.msra.mxu3 %v8426_v52  ;;  %4928 = vmatpush.bf16.msrb.mxu0 %v8202_v57  ;;  %v9813_v52 = vld [vmem:[#allocation8 + $0x42c] sm:$0xf0]  ;;  %v8329_v57 = vld [vmem:[#allocation8 + $0x400] sm:$0xf]  ;;  %v3324_v48 = vmax.f32 %v3044_v42, 0.0  ;;  %v3134_v50 = vpop.f32.mrf.mxu3  ;;  %v8174_v42 = vor.u32 %v9767_v21, %v8171_v27 }
 0x231   :  { %4916 = vmatmul.bf16.vlgmr.msrb.gmra.mxu2 %v10674_v47  ;;  %4949 = vmatpush.bf16.msra.mxu1 %v8538_v20  ;;  %v8346_v31 = vor.u32 %v9813_v52, %v8345_v22  ;;  %v8618_v20 = vor.u32 %v9881_v34, %v8617_v32  ;;  %v8330_v62 = vor.u32 %v9809_v61, %v8329_v57  ;;  %v8809_v52 = vld [vmem:[#allocation8 + $0x7c0] sm:$0xf]  ;;  %v9929_v32 = vld [vmem:[#allocation8 + $0x7cc] sm:$0xf0]  ;;  %v8011_v57 = vld [vmem:[#allocation8 + $0x190] sm:$0xf0] }
 0x232   :  { %4960 = vmatpush.bf16.msra.mxu2 %v8698_v36  ;;  %v8474_v36 = vor.u32 %v9845_v30, %v8473_v28  ;;  %v10687_v10 = vpack.c.bf16 %v3324_v48, %v3324_v48  ;;  %v7902_v22 = vor.u32 %v9699_v15, %v7899_v46  ;;  %v8030_v28 = vor.u32 %v9731_v16, %v8027_v63  ;;  %v9695_v30 = vld [vmem:[#allocation8 + $0x84] sm:$0xf]  ;;  %v8155_v61 = vld [vmem:[#allocation8 + $0x2b0] sm:$0xf0]  ;;  %v10693_v39 = vpop.f32.mrf.mxu1  ;;  %v8745_v27 = vld [vmem:[#allocation8 + $0x740] sm:$0xf] }
 0x233   :  { %4929 = vmatmul.bf16.vlgmr.msrb.gmra.mxu0 %v10676_v60  ;;  %v8810_v56 = vor.u32 %v9929_v32, %v8809_v52  ;;  %v8139_v48 = vld [vmem:[#allocation8 + $0x290] sm:$0xf0]  ;;  %v9755_v35 = vld [vmem:[#allocation8 + $0x264] sm:$0xf] }
 0x234   :  { %4936 = vmatpush.bf16.msra.mxu3 %v8410_v54  ;;  %v7931_v54 = vld [vmem:[#allocation8 + $0xf0] sm:$0xf0]  ;;  %v9683_v15 = vld [vmem:[#allocation8 + $0x24] sm:$0xf] }
 0x235   :  { %4950 = vmatpush.bf16.msra.mxu1 %v8522_v45  ;;  %v7915_v45 = vld [vmem:[#allocation8 + $0xd0] sm:$0xf0]  ;;  %v9751_v63 = vld [vmem:[#allocation8 + $0x244] sm:$0xf] }
 0x236   :  { %4961 = vmatpush.bf16.msra.mxu2 %v8682_v59  ;;  %v9877_v59 = vld [vmem:[#allocation8 + $0x62c] sm:$0xf0]  ;;  %v7918_v12 = vor.u32 %v9703_v6, %v7915_v45  ;;  %v9687_v6 = vld [vmem:[#allocation8 + $0x44] sm:$0xf]  ;;  %v7851_v45 = vld [vmem:[#allocation8 + $0x50] sm:$0xf0] }
 0x237   :  { %v8602_v8 = vor.u32 %v9877_v59, %v8601_v33  ;;  %v7995_v33 = vld [vmem:[#allocation8 + $0x170] sm:$0xf0]  ;;  %v9679_v21 = vld [vmem:[#allocation8 + $0x4] sm:$0xf] }
 0x238   :  { %4937 = vmatpush.bf16.msra.mxu3 %v8394_v3  ;;  %v7934_v3 = vor.u32 %v9707_v40, %v7931_v54  ;;  %v9925_v40 = vld [vmem:[#allocation8 + $0x7ac] sm:$0xf0]  ;;  %v3136_v29 = vpop.f32.mrf.mxu3  ;;  %v8123_v9 = vld [vmem:[#allocation8 + $0x270] sm:$0xf0]  ;;  %v9835_v32 = vld [vmem:[#allocation8 + $0x4e4] sm:$0xf] }
 0x239   :  { %4951 = vmatpush.bf16.msra.mxu1 %v8506_v24  ;;  %v9933_v24 = vld [vmem:[#allocation8 + $0x7ec] sm:$0xf0]  ;;  %v8794_v55 = vor.u32 %v9925_v40, %v8793_v25  ;;  %v7835_v46 = vld [vmem:[#allocation8 + $0x30] sm:$0xf0]  ;;  %v8126_v16 = vor.u32 %v9755_v35, %v8123_v9  ;;  %v601_v29 = vperm.slane %v10671_v43, 6 }
 0x23a   :  { %4962 = vmatpush.bf16.msra.mxu2 %v8666_v53  ;;  %v9873_v53 = vld [vmem:[#allocation8 + $0x60c] sm:$0xf0]  ;;  %v7819_v52 = vld [vmem:[#allocation8 + $0x10] sm:$0xf0] }
 0x23b   :  { %v8586_v58 = vor.u32 %v9873_v53, %v8585_v19  ;;  %v8091_v25 = vld [vmem:[#allocation8 + $0x230] sm:$0xf0]  ;;  %v7822_v40 = vor.u32 %v9679_v21, %v7819_v52 }
 0x23c   :  { %4938 = vmatpush.bf16.msra.mxu3 %v8378_v11  ;;  %v3122_v11 = vadd.f32 %v3121_v44, %v3109_v1  ;;  %v7867_v44 = vld [vmem:[#allocation8 + $0x70] sm:$0xf0] }
 0x23d   :  { %4952 = vmatpush.bf16.msra.mxu1 %v8490_v0  ;;  %v8411_v35 = vld [vmem:[#allocation8 + $0x4b0] sm:$0xf0] }
 0x23e   :  { %4963 = vmatpush.bf16.msra.mxu2 %v8650_v17  ;;  %v8826_v17 = vor.u32 %v9933_v24, %v8825_v51  ;;  %v3135_v18 = vadd.f32 %v3134_v50, %v3122_v11  ;;  %v7854_v11 = vor.u32 %v9687_v6, %v7851_v45  ;;  %v8761_v51 = vld [vmem:[#allocation8 + $0x760] sm:$0xf]  ;;  %v9917_v24 = vld [vmem:[#allocation8 + $0x76c] sm:$0xf0] }
 0x23f   :  { %v8713_v45 = vld [vmem:[#allocation8 + $0x700] sm:$0xf] }
 0x240   :  { %4939 = vmatpush.bf16.msra.mxu3 %v8362_v14  ;;  %v3123_v14 = vpop.f32.mrf.mxu2  ;;  %4973 = vmatpush.bf16.msra.mxu0 %v8826_v17  ;;  %v3325_v0 = vmax.f32 %v3135_v18, 0.0  ;;  %v10695_v53 = vpop.f32.mrf.mxu0  ;;  %v9715_v17 = vld [vmem:[#allocation8 + $0x124] sm:$0xf]  ;;  %v7963_v18 = vld [vmem:[#allocation8 + $0x130] sm:$0xf0] }
 0x241   :  { %4953 = vmatpush.bf16.msra.mxu1 %v8474_v36  ;;  %v9763_v36 = vld [vmem:[#allocation8 + $0x2a4] sm:$0xf]  ;;  %v8107_v14 = vld [vmem:[#allocation8 + $0x250] sm:$0xf0] }
 0x242   :  { %4964 = vmatpush.bf16.msra.mxu2 %v8634_v41  ;;  %v7883_v41 = vld [vmem:[#allocation8 + $0x90] sm:$0xf0]  ;;  %v10690_v34 = vpack.c.bf16 %v3325_v0, %v3325_v0  ;;  %v8158_v59 = vor.u32 %v9763_v36, %v8155_v61  ;;  %v9913_v0 = vld [vmem:[#allocation8 + $0x74c] sm:$0xf0] }
 0x243   :  { %v7886_v38 = vor.u32 %v9695_v30, %v7883_v41  ;;  %v7947_v30 = vld [vmem:[#allocation8 + $0x110] sm:$0xf0]  ;;  %v8746_v41 = vor.u32 %v9913_v0, %v8745_v27  ;;  %v9855_v27 = vld [vmem:[#allocation8 + $0x584] sm:$0xf] }
 0x244   :  { %4940 = vmatpush.bf16.msra.mxu3 %v8346_v31  ;;  %v9727_v31 = vld [vmem:[#allocation8 + $0x184] sm:$0xf]  ;;  %4974 = vmatpush.bf16.msra.mxu0 %v8810_v56  ;;  %v8571_v61 = vld [vmem:[#allocation8 + $0x5f0] sm:$0xf0] }
 0x245   :  { %4954 = vmatpush.bf16.msra.mxu1 %v8458_v2  ;;  %v8014_v54 = vor.u32 %v9727_v31, %v8011_v57  ;;  %v8777_v2 = vld [vmem:[#allocation8 + $0x780] sm:$0xf]  ;;  %v8443_v31 = vld [vmem:[#allocation8 + $0x4f0] sm:$0xf0]  ;;  %v9867_v57 = vld [vmem:[#allocation8 + $0x5e4] sm:$0xf] }
 0x246   :  { %4965 = vmatpush.bf16.msra.mxu2 %v8618_v20  ;;  %v9691_v20 = vld [vmem:[#allocation8 + $0x64] sm:$0xf]  ;;  %v8523_v0 = vld [vmem:[#allocation8 + $0x590] sm:$0xf0] }
 0x247   :  { %v7870_v1 = vor.u32 %v9691_v20, %v7867_v44  ;;  %v8446_v44 = vor.u32 %v9835_v32, %v8443_v31  ;;  %v8526_v32 = vor.u32 %v9855_v27, %v8523_v0  ;;  %v9819_v31 = vld [vmem:[#allocation8 + $0x464] sm:$0xf]  ;;  %v9742_v27 = vld [vmem:[#allocation8 + $0x1f4] sm:$0xf0] }
 0x248   :  { %4941 = vmatpush.bf16.msra.mxu3 %v8330_v62  ;;  %4955 = vmatmul.bf16.vlgmr.msra.gmra.mxu1 %v10690_v34  ;;  %v9759_v62 = vld [vmem:[#allocation8 + $0x284] sm:$0xf]  ;;  %v3175_v56 = vpop.f32.mrf.mxu0 }
 0x249   :  { %4999 = vmatpush.bf16.msrb.mxu1 %v8062_v5  ;;  %v7998_v5 = vor.u32 %v9723_v49, %v7995_v33  ;;  %4975 = vmatpush.bf16.msra.mxu0 %v8794_v55  ;;  %v8142_v19 = vor.u32 %v9759_v62, %v8139_v48  ;;  %v10699_v36 = vpop.f32.mrf.mxu2  ;;  %v9909_v49 = vld [vmem:[#allocation8 + $0x72c] sm:$0xf0]  ;;  %v8574_v33 = vor.u32 %v9867_v57, %v8571_v61  ;;  %v8427_v62 = vld [vmem:[#allocation8 + $0x4d0] sm:$0xf0]  ;;  %v9863_v48 = vld [vmem:[#allocation8 + $0x5c4] sm:$0xf] }
 0x24a   :  { %4966 = vmatpush.bf16.msra.mxu2 %v8602_v8  ;;  %v9719_v8 = vld [vmem:[#allocation8 + $0x144] sm:$0xf]  ;;  %v8379_v57 = vld [vmem:[#allocation8 + $0x470] sm:$0xf0] }
 0x24b   :  { %4942 = vmatmul.bf16.vlgmr.msra.gmra.mxu3 %v10687_v10  ;;  %v7982_v50 = vor.u32 %v9719_v8, %v7979_v37  ;;  %v9827_v37 = vld [vmem:[#allocation8 + $0x4a4] sm:$0xf]  ;;  %v8507_v61 = vld [vmem:[#allocation8 + $0x570] sm:$0xf0] }
 0x24c   :  { %4986 = vmatpush.bf16.msrb.mxu3 %v7934_v3  ;;  %v9921_v3 = vld [vmem:[#allocation8 + $0x78c] sm:$0xf0]  ;;  %v9851_v56 = vld [vmem:[#allocation8 + $0x564] sm:$0xf] }
 0x24d   :  { %5000 = vmatpush.bf16.msrb.mxu1 %v8046_v13  ;;  %v8778_v7 = vor.u32 %v9921_v3, %v8777_v2  ;;  %v10697_v13 = vpop.f32.mrf.mxu3  ;;  %v8555_v2 = vld [vmem:[#allocation8 + $0x5d0] sm:$0xf0]  ;;  %v9743_v3 = vld [vmem:[#allocation8 + $0x204] sm:$0xf] }
 0x24e   :  { %4967 = vmatpush.bf16.msra.mxu2 %v8586_v58  ;;  %v8762_v58 = vor.u32 %v9917_v24, %v8761_v51  ;;  %v3148_v51 = vadd.f32 %v10693_v39, %v601_v29  ;;  %v9859_v24 = vld [vmem:[#allocation8 + $0x5a4] sm:$0xf]  ;;  %v8395_v39 = vld [vmem:[#allocation8 + $0x490] sm:$0xf0]  ;;  %v8510_v29 = vor.u32 %v9851_v56, %v8507_v61  ;;  %v7921_v56 = vld [vmem:[#allocation8 + $0xc8] sm:$0xf] }
 0x24f   :  { %4976 = vmatpush.bf16.msra.mxu0 %v8778_v7  ;;  %v9905_v7 = vld [vmem:[#allocation8 + $0x70c] sm:$0xf0]  ;;  %v9706_v61 = vld [vmem:[#allocation8 + $0xd4] sm:$0xf0] }
 0x250   :  { %4987 = vmatpush.bf16.msrb.mxu3 %v7918_v12  ;;  %v3149_v12 = vpop.f32.mrf.mxu1  ;;  %v3161_v21 = vadd.f32 %v10697_v13, %v3148_v51  ;;  %v9807_v51 = vld [vmem:[#allocation8 + $0x404] sm:$0xf] }
 0x251   :  { %5001 = vmatpush.bf16.msrb.mxu1 %v8030_v28  ;;  %v9711_v28 = vld [vmem:[#allocation8 + $0x104] sm:$0xf]  ;;  %v8315_v12 = vld [vmem:[#allocation8 + $0x3f0] sm:$0xf0] }
 0x252   :  { %5012 = vmatpush.bf16.msrb.mxu2 %v8190_v23  ;;  %v7838_v23 = vor.u32 %v9683_v15, %v7835_v46  ;;  %v7950_v20 = vor.u32 %v9711_v28, %v7947_v30  ;;  %v3188_v46 = vpop.f32.mrf.mxu2  ;;  %v9795_v30 = vld [vmem:[#allocation8 + $0x3a4] sm:$0xf] }
 0x253   :  { %4977 = vmatpush.bf16.msra.mxu0 %v8762_v58  ;;  %v8714_v58 = vor.u32 %v9905_v7, %v8713_v45  ;;  %v8347_v45 = vld [vmem:[#allocation8 + $0x430] sm:$0xf0] }
 0x254   :  { %4988 = vmatpush.bf16.msrb.mxu3 %v7902_v22  ;;  %v7966_v22 = vor.u32 %v9715_v17, %v7963_v18  ;;  %v8414_v18 = vor.u32 %v9827_v37, %v8411_v35  ;;  %v8475_v37 = vld [vmem:[#allocation8 + $0x530] sm:$0xf0] }
 0x255   :  { %5002 = vmatpush.bf16.msrb.mxu1 %v8014_v54  ;;  %v8729_v54 = vld [vmem:[#allocation8 + $0x720] sm:$0xf]  ;;  %v3162_v55 = vpop.f32.mrf.mxu3  ;;  %v10704_v15 = vpop.f32.mrf.mxu0  ;;  %v8699_v35 = vld [vmem:[#allocation8 + $0x6f0] sm:$0xf0] }
 0x256   :  { %5013 = vmatpush.bf16.msrb.mxu2 %v8174_v42  ;;  %v8110_v42 = vor.u32 %v9751_v63, %v8107_v14  ;;  %v8730_v6 = vor.u32 %v9909_v49, %v8729_v54  ;;  %v8299_v63 = vld [vmem:[#allocation8 + $0x3d0] sm:$0xf0]  ;;  %v9847_v49 = vld [vmem:[#allocation8 + $0x544] sm:$0xf] }
 0x257   :  { %4978 = vmatpush.bf16.msra.mxu0 %v8746_v41  ;;  %v8283_v41 = vld [vmem:[#allocation8 + $0x3b0] sm:$0xf0] }
 0x258   :  { %4989 = vmatpush.bf16.msrb.mxu3 %v7886_v38  ;;  %v9747_v38 = vld [vmem:[#allocation8 + $0x224] sm:$0xf]  ;;  %v3199_v52 = vpop.f32.mrf.mxu1  ;;  %v8286_v13 = vor.u32 %v9795_v30, %v8283_v41  ;;  %v8267_v54 = vld [vmem:[#allocation8 + $0x390] sm:$0xf0] }
 0x259   :  { %5003 = vmatpush.bf16.msrb.mxu1 %v7998_v5  ;;  %v8075_v5 = vld [vmem:[#allocation8 + $0x210] sm:$0xf0] }
 0x25a   :  { %5014 = vmatpush.bf16.msrb.mxu2 %v8158_v59  ;;  %v9831_v59 = vld [vmem:[#allocation8 + $0x4c4] sm:$0xf]  ;;  %v8078_v9 = vor.u32 %v9743_v3, %v8075_v5 }
 0x25b   :  { %v8430_v8 = vor.u32 %v9831_v59, %v8427_v62  ;;  %4979 = vmatpush.bf16.msra.mxu0 %v8730_v6  ;;  %v9811_v6 = vld [vmem:[#allocation8 + $0x424] sm:$0xf] }
 0x25c   :  { %4990 = vmatpush.bf16.msrb.mxu3 %v7870_v1  ;;  %v8094_v1 = vor.u32 %v9747_v38, %v8091_v25  ;;  %v8382_v25 = vor.u32 %v9819_v31, %v8379_v57  ;;  %v9779_v31 = vld [vmem:[#allocation8 + $0x324] sm:$0xf]  ;;  %v8219_v57 = vld [vmem:[#allocation8 + $0x330] sm:$0xf0] }
 0x25d   :  { %5004 = vmatpush.bf16.msrb.mxu1 %v7982_v50  ;;  %v8539_v50 = vld [vmem:[#allocation8 + $0x5b0] sm:$0xf0]  ;;  %v3227_v38 = vpop.f32.mrf.mxu0 }
 0x25e   :  { %5015 = vmatpush.bf16.msrb.mxu2 %v8142_v19  ;;  %v8558_v19 = vor.u32 %v9863_v48, %v8555_v2  ;;  %v8542_v14 = vor.u32 %v9859_v24, %v8539_v50  ;;  %v8251_v2 = vld [vmem:[#allocation8 + $0x370] sm:$0xf0]  ;;  %v9783_v24 = vld [vmem:[#allocation8 + $0x344] sm:$0xf] }
 0x25f   :  { %4980 = vmatpush.bf16.msra.mxu0 %v8714_v58  ;;  %v8235_v50 = vld [vmem:[#allocation8 + $0x350] sm:$0xf0] }
 0x260   :  { %4991 = vmatpush.bf16.msrb.mxu3 %v7854_v11  ;;  %v9803_v11 = vld [vmem:[#allocation8 + $0x3e4] sm:$0xf]  ;;  %v3201_v48 = vpop.f32.mrf.mxu1  ;;  %v8331_v58 = vld [vmem:[#allocation8 + $0x410] sm:$0xf0] }
 0x261   :  { %5005 = vmatpush.bf16.msrb.mxu1 %v7966_v22  ;;  %v8318_v17 = vor.u32 %v9803_v11, %v8315_v12  ;;  %v8350_v12 = vor.u32 %v9811_v6, %v8347_v45 }
 0x262   :  { %5016 = vmatpush.bf16.msrb.mxu2 %v8126_v16  ;;  %v9799_v16 = vld [vmem:[#allocation8 + $0x3c4] sm:$0xf]  ;;  %v3212_v3 = vpop.f32.mrf.mxu3 }
 0x263   :  { %5025 = vmatpush.bf16.msrb.mxu0 %v8318_v17  ;;  %v8302_v22 = vor.u32 %v9799_v16, %v8299_v63  ;;  %v9839_v17 = vld [vmem:[#allocation8 + $0x504] sm:$0xf]  ;;  %v7937_v63 = vld [vmem:[#allocation8 + $0xe8] sm:$0xf] }
 0x264   :  { %4992 = vmatpush.bf16.msrb.mxu3 %v7838_v23  ;;  %v9823_v23 = vld [vmem:[#allocation8 + $0x484] sm:$0xf] }
 0x265   :  { %5006 = vmatpush.bf16.msrb.mxu1 %v7950_v20  ;;  %v8398_v28 = vor.u32 %v9823_v23, %v8395_v39  ;;  %v9815_v20 = vld [vmem:[#allocation8 + $0x444] sm:$0xf] }
 0x266   :  { %5017 = vmatpush.bf16.msrb.mxu2 %v8110_v42  ;;  %v3174_v42 = vadd.f32 %v10695_v53, %v3161_v21  ;;  %v8065_v21 = vld [vmem:[#allocation8 + $0x1e8] sm:$0xf] }
 0x267   :  { %5026 = vmatpush.bf16.msrb.mxu0 %v8302_v22  ;;  %v10713_v39 = vpop.f32.mrf.mxu2  ;;  %v8334_v22 = vor.u32 %v9807_v51, %v8331_v58  ;;  %v602_v51 = vperm.slane %v10671_v43, 7  ;;  %v7873_v58 = vld [vmem:[#allocation8 + $0x68] sm:$0xf] }
 0x268   :  { %4993 = vmatpush.bf16.msrb.mxu3 %v7822_v40  ;;  %5007 = vmatmul.bf16.vlgmr.msrb.gmra.mxu1 %v10665_v26  ;;  %v9791_v40 = vld [vmem:[#allocation8 + $0x384] sm:$0xf]  ;;  %v3187_v55 = vadd.f32 %v10699_v36, %v3174_v42  ;;  %v8066_v42 = vor.u32 %v9742_v27, %v8065_v21 }
 0x269   :  { %5051 = vmatpush.bf16.msra.mxu1 %v8574_v33  ;;  %v8491_v33 = vld [vmem:[#allocation8 + $0x550] sm:$0xf0]  ;;  %v8270_v59 = vor.u32 %v9791_v40, %v8267_v54  ;;  %v9899_v36 = vld [vmem:[#allocation8 + $0x6e4] sm:$0xf]  ;;  %v9738_v40 = vld [vmem:[#allocation8 + $0x1d4] sm:$0xf0]  ;;  %v3239_v21 = vadd.f32 %v10713_v39, %v602_v51 }
 0x26a   :  { %5018 = vmatpush.bf16.msrb.mxu2 %v8094_v1  ;;  %v3200_v53 = vadd.f32 %v3199_v52, %v3187_v55  ;;  %v9787_v1 = vld [vmem:[#allocation8 + $0x364] sm:$0xf]  ;;  %v8494_v5 = vor.u32 %v9847_v49, %v8491_v33  ;;  %v8702_v23 = vor.u32 %v9899_v36, %v8699_v35  ;;  %v8203_v49 = vld [vmem:[#allocation8 + $0x310] sm:$0xf0]  ;;  %v8017_v35 = vld [vmem:[#allocation8 + $0x188] sm:$0xf] }
 0x26b   :  { %4994 = vmatmul.bf16.vlgmr.msrb.gmra.mxu3 %v10663_v4  ;;  %5027 = vmatpush.bf16.msrb.mxu0 %v8286_v13  ;;  %v9895_v52 = vld [vmem:[#allocation8 + $0x6c4] sm:$0xf] }
 0x26c   :  { %5038 = vmatpush.bf16.msra.mxu3 %v8446_v44  ;;  %v8363_v44 = vld [vmem:[#allocation8 + $0x450] sm:$0xf0]  ;;  %v3213_v7 = vadd.f32 %v3212_v3, %v3200_v53  ;;  %v9891_v54 = vld [vmem:[#allocation8 + $0x6a4] sm:$0xf]  ;;  %v9702_v53 = vld [vmem:[#allocation8 + $0xb4] sm:$0xf0] }
 0x26d   :  { %5052 = vmatpush.bf16.msra.mxu1 %v8558_v19  ;;  %v8366_v62 = vor.u32 %v9815_v20, %v8363_v44  ;;  %v10710_v19 = vpop.f32.mrf.mxu0  ;;  %v8222_v20 = vor.u32 %v9779_v31, %v8219_v57  ;;  %v7922_v44 = vor.u32 %v9706_v61, %v7921_v56  ;;  %v9775_v55 = vld [vmem:[#allocation8 + $0x304] sm:$0xf]  ;;  %v7841_v61 = vld [vmem:[#allocation8 + $0x28] sm:$0xf] }
 0x26e   :  { %5019 = vmatpush.bf16.msrb.mxu2 %v8078_v9  ;;  %v8254_v9 = vor.u32 %v9787_v1, %v8251_v2  ;;  %v3226_v11 = vadd.f32 %v10704_v15, %v3213_v7  ;;  %v8238_v15 = vor.u32 %v9783_v24, %v8235_v50  ;;  %v8033_v1 = vld [vmem:[#allocation8 + $0x1a8] sm:$0xf]  ;;  %v9734_v2 = vld [vmem:[#allocation8 + $0x1b4] sm:$0xf0]  ;;  %v9887_v3 = vld [vmem:[#allocation8 + $0x684] sm:$0xf]  ;;  %v8206_v6 = vor.u32 %v9775_v55, %v8203_v49 }
 0x26f   :  { %5028 = vmatpush.bf16.msrb.mxu0 %v8270_v59  ;;  %v7905_v59 = vld [vmem:[#allocation8 + $0xa8] sm:$0xf]  ;;  %v3240_v48 = vpop.f32.mrf.mxu2  ;;  %v8034_v7 = vor.u32 %v9734_v2, %v8033_v1  ;;  %v3252_v31 = vadd.f32 %v10710_v19, %v3239_v21  ;;  %v9774_v19 = vld [vmem:[#allocation8 + $0x2f4] sm:$0xf0] }
 0x270   :  { %5039 = vmatpush.bf16.msra.mxu3 %v8430_v8  ;;  %v9843_v8 = vld [vmem:[#allocation8 + $0x524] sm:$0xf]  ;;  %v3326_v16 = vmax.f32 %v3226_v11, 0.0  ;;  %v7906_v45 = vor.u32 %v9702_v53, %v7905_v59  ;;  %v8193_v49 = vld [vmem:[#allocation8 + $0x2e8] sm:$0xf] }
 0x271   :  { %5053 = vmatpush.bf16.msra.mxu1 %v8542_v14  ;;  %v8478_v46 = vor.u32 %v9843_v8, %v8475_v37  ;;  %v9710_v14 = vld [vmem:[#allocation8 + $0xf4] sm:$0xf0]  ;;  %v7889_v8 = vld [vmem:[#allocation8 + $0x88] sm:$0xf]  ;;  %v9883_v11 = vld [vmem:[#allocation8 + $0x664] sm:$0xf] }
 0x272   :  { %v10715_v0 = vpack.c.bf16 %v3326_v16, %v3326_v16  ;;  %v7938_v41 = vor.u32 %v9710_v14, %v7937_v63  ;;  %v9698_v37 = vld [vmem:[#allocation8 + $0x94] sm:$0xf0]  ;;  %v8001_v16 = vld [vmem:[#allocation8 + $0x168] sm:$0xf]  ;;  %v9879_v14 = vld [vmem:[#allocation8 + $0x644] sm:$0xf] }
 0x273   :  { %5029 = vmatpush.bf16.msrb.mxu0 %v8254_v9  ;;  %v9730_v9 = vld [vmem:[#allocation8 + $0x194] sm:$0xf0]  ;;  %v7890_v50 = vor.u32 %v9698_v37, %v7889_v8  ;;  %v7825_v59 = vld [vmem:[#allocation8 + $0x8] sm:$0xf] }
 0x274   :  { %5040 = vmatpush.bf16.msra.mxu3 %v8414_v18  ;;  %v8459_v18 = vld [vmem:[#allocation8 + $0x510] sm:$0xf0]  ;;  %4968 = vmatmul.bf16.vlgmr.msra.gmra.mxu2 %v10715_v0  ;;  %v9726_v63 = vld [vmem:[#allocation8 + $0x174] sm:$0xf0]  ;;  %v7953_v1 = vld [vmem:[#allocation8 + $0x108] sm:$0xf] }
 0x275   :  { %5054 = vmatpush.bf16.msra.mxu1 %v8526_v32  ;;  %v8462_v30 = vor.u32 %v9839_v17, %v8459_v18  ;;  %v3214_v32 = vpop.f32.mrf.mxu3  ;;  %v3253_v38 = vpop.f32.mrf.mxu0  ;;  %5064 = vmatpush.bf16.msra.mxu2 %v8702_v23  ;;  %v9694_v17 = vld [vmem:[#allocation8 + $0x74] sm:$0xf0]  ;;  %v8619_v23 = vld [vmem:[#allocation8 + $0x650] sm:$0xf0]  ;;  %v8002_v43 = vor.u32 %v9726_v63, %v8001_v16  ;;  %v8561_v63 = vld [vmem:[#allocation8 + $0x5c8] sm:$0xf] }
 0x276   :  { %v7874_v27 = vor.u32 %v9694_v17, %v7873_v58  ;;  %v8603_v32 = vld [vmem:[#allocation8 + $0x630] sm:$0xf0]  ;;  %v9686_v38 = vld [vmem:[#allocation8 + $0x34] sm:$0xf0]  ;;  %v8433_v17 = vld [vmem:[#allocation8 + $0x4c8] sm:$0xf] }
 0x277   :  { %5030 = vmatpush.bf16.msrb.mxu0 %v8238_v15  ;;  %v7857_v15 = vld [vmem:[#allocation8 + $0x48] sm:$0xf]  ;;  %v7842_v55 = vor.u32 %v9686_v38, %v7841_v61  ;;  %v9682_v53 = vld [vmem:[#allocation8 + $0x14] sm:$0xf0] }
 0x278   :  { %5041 = vmatpush.bf16.msra.mxu3 %v8398_v28  ;;  %v8683_v28 = vld [vmem:[#allocation8 + $0x6d0] sm:$0xf0]  ;;  %v9714_v2 = vld [vmem:[#allocation8 + $0x114] sm:$0xf0]  ;;  %v8161_v21 = vld [vmem:[#allocation8 + $0x2a8] sm:$0xf] }
 0x279   :  { %5055 = vmatpush.bf16.msra.mxu1 %v8510_v29  ;;  %v8686_v13 = vor.u32 %v9895_v52, %v8683_v28  ;;  %v8667_v29 = vld [vmem:[#allocation8 + $0x6b0] sm:$0xf0]  ;;  %v8622_v52 = vor.u32 %v9879_v14, %v8619_v23  ;;  %v7985_v28 = vld [vmem:[#allocation8 + $0x148] sm:$0xf]  ;;  %v9870_v8 = vld [vmem:[#allocation8 + $0x5f4] sm:$0xf0]  ;;  %v7954_v51 = vor.u32 %v9714_v2, %v7953_v1 }
 0x27a   :  { %v9834_v16 = vld [vmem:[#allocation8 + $0x4d4] sm:$0xf0]  ;;  %v8145_v38 = vld [vmem:[#allocation8 + $0x288] sm:$0xf] }
 0x27b   :  { %5065 = vmatpush.bf16.msra.mxu2 %v8686_v13  ;;  %5031 = vmatpush.bf16.msrb.mxu0 %v8222_v20  ;;  %v8587_v20 = vld [vmem:[#allocation8 + $0x610] sm:$0xf0]  ;;  %v9866_v14 = vld [vmem:[#allocation8 + $0x5d4] sm:$0xf0] }
 0x27c   :  { %5042 = vmatpush.bf16.msra.mxu3 %v8382_v25  ;;  %v8049_v25 = vld [vmem:[#allocation8 + $0x1c8] sm:$0xf] }
 0x27d   :  { %5056 = vmatpush.bf16.msra.mxu1 %v8494_v5  ;;  %v8050_v33 = vor.u32 %v9738_v40, %v8049_v25  ;;  %v8651_v5 = vld [vmem:[#allocation8 + $0x690] sm:$0xf0]  ;;  %v7969_v40 = vld [vmem:[#allocation8 + $0x128] sm:$0xf] }
 0x27e   :  { %v8654_v36 = vor.u32 %v9887_v3, %v8651_v5  ;;  %v8449_v3 = vld [vmem:[#allocation8 + $0x4e8] sm:$0xf] }
 0x27f   :  { %5032 = vmatpush.bf16.msrb.mxu0 %v8206_v6  ;;  %v8194_v6 = vor.u32 %v9774_v19, %v8193_v49  ;;  %v8529_v49 = vld [vmem:[#allocation8 + $0x588] sm:$0xf]  ;;  %v9858_v19 = vld [vmem:[#allocation8 + $0x594] sm:$0xf0] }
 0x280   :  { %5043 = vmatpush.bf16.msra.mxu3 %v8366_v62  ;;  %v8670_v62 = vor.u32 %v9891_v54, %v8667_v29  ;;  %v3264_v24 = vpop.f32.mrf.mxu1  ;;  %v9718_v54 = vld [vmem:[#allocation8 + $0x134] sm:$0xf0]  ;;  %v9871_v29 = vld [vmem:[#allocation8 + $0x604] sm:$0xf]  ;;  %v8530_v2 = vor.u32 %v9858_v19, %v8529_v49 }
 0x281   :  { %5057 = vmatpush.bf16.msra.mxu1 %v8478_v46  ;;  %v8018_v46 = vor.u32 %v9730_v9, %v8017_v35  ;;  %v8590_v48 = vor.u32 %v9871_v29, %v8587_v20  ;;  %v7826_v35 = vor.u32 %v9682_v53, %v7825_v59  ;;  %v8177_v9 = vld [vmem:[#allocation8 + $0x2c8] sm:$0xf]  ;;  %v9758_v53 = vld [vmem:[#allocation8 + $0x274] sm:$0xf0] }
 0x282   :  { %5066 = vmatpush.bf16.msra.mxu2 %v8670_v62  ;;  %v8401_v20 = vld [vmem:[#allocation8 + $0x488] sm:$0xf]  ;;  %v9810_v19 = vld [vmem:[#allocation8 + $0x414] sm:$0xf0] }
 0x283   :  { %v8129_v59 = vld [vmem:[#allocation8 + $0x268] sm:$0xf] }
 0x284   :  { %5044 = vmatpush.bf16.msra.mxu3 %v8350_v12  ;;  %v8635_v12 = vld [vmem:[#allocation8 + $0x670] sm:$0xf0]  ;;  %5020 = vmatmul.bf16.vlgmr.msrb.gmra.mxu2 %v10674_v47 }
 0x285   :  { %5058 = vmatpush.bf16.msra.mxu1 %v8462_v30  ;;  %v8638_v18 = vor.u32 %v9883_v11, %v8635_v12  ;;  %v9722_v30 = vld [vmem:[#allocation8 + $0x154] sm:$0xf0] }
 0x286   :  { %5067 = vmatpush.bf16.msra.mxu2 %v8654_v36  ;;  %v7986_v56 = vor.u32 %v9722_v30, %v7985_v28  ;;  %v9770_v11 = vld [vmem:[#allocation8 + $0x2d4] sm:$0xf0]  ;;  %v8562_v28 = vor.u32 %v9866_v14, %v8561_v63  ;;  %v8417_v30 = vld [vmem:[#allocation8 + $0x4a8] sm:$0xf] }
 0x287   :  { %v8097_v14 = vld [vmem:[#allocation8 + $0x228] sm:$0xf] }
 0x288   :  { %5045 = vmatpush.bf16.msra.mxu3 %v8334_v22  ;;  %5059 = vmatmul.bf16.vlgmr.msra.gmra.mxu1 %v10690_v34  ;;  %v9690_v22 = vld [vmem:[#allocation8 + $0x54] sm:$0xf0]  ;;  %v3266_v57 = vpop.f32.mrf.mxu1 }
 0x289   :  { %5103 = vmatpush.bf16.msrb.mxu1 %v8066_v42  ;;  %v7858_v42 = vor.u32 %v9690_v22, %v7857_v15  ;;  %v8827_v15 = vld [vmem:[#allocation8 + $0x7f0] sm:$0xf0]  ;;  %v8545_v57 = vld [vmem:[#allocation8 + $0x5a8] sm:$0xf] }
 0x28a   :  { %5068 = vmatpush.bf16.msra.mxu2 %v8638_v18  ;;  %v8178_v18 = vor.u32 %v9770_v11, %v8177_v9  ;;  %v9919_v11 = vld [vmem:[#allocation8 + $0x784] sm:$0xf] }
 0x28b   :  { %5046 = vmatmul.bf16.vlgmr.msra.gmra.mxu3 %v10687_v10 }
 0x28c   :  { %5090 = vmatpush.bf16.msrb.mxu3 %v7938_v41  ;;  %v9875_v41 = vld [vmem:[#allocation8 + $0x624] sm:$0xf] }
 0x28d   :  { %5104 = vmatpush.bf16.msrb.mxu1 %v8050_v33  ;;  %v8606_v25 = vor.u32 %v9875_v41, %v8603_v32  ;;  %v7970_v33 = vor.u32 %v9718_v54, %v7969_v40  ;;  %v8811_v40 = vld [vmem:[#allocation8 + $0x7d0] sm:$0xf0] }
 0x28e   :  { %v3277_v39 = vpop.f32.mrf.mxu3  ;;  %5069 = vmatpush.bf16.msra.mxu2 %v8622_v52  ;;  %v8434_v52 = vor.u32 %v9834_v16, %v8433_v17  ;;  %v9818_v17 = vld [vmem:[#allocation8 + $0x454] sm:$0xf0] }
 0x28f   :  { %v9850_v16 = vld [vmem:[#allocation8 + $0x554] sm:$0xf0] }
 0x290   :  { %5091 = vmatpush.bf16.msrb.mxu3 %v7922_v44  ;;  %v3303_v13 = vpop.f32.mrf.mxu0  ;;  %v3265_v44 = vadd.f32 %v3264_v24, %v3252_v31  ;;  %v3316_v36 = vpop.f32.mrf.mxu1  ;;  %v9830_v31 = vld [vmem:[#allocation8 + $0x4b4] sm:$0xf0] }
 0x291   :  { %5105 = vmatpush.bf16.msrb.mxu1 %v8034_v7  ;;  %v8577_v7 = vld [vmem:[#allocation8 + $0x5e8] sm:$0xf]  ;;  %v8418_v54 = vor.u32 %v9830_v31, %v8417_v30 }
 0x292   :  { %v3278_v62 = vadd.f32 %v3277_v39, %v3265_v44  ;;  %5070 = vmatpush.bf16.msra.mxu2 %v8606_v25  ;;  %v8578_v58 = vor.u32 %v9870_v8, %v8577_v7  ;;  %v9927_v25 = vld [vmem:[#allocation8 + $0x7c4] sm:$0xf]  ;;  %v9854_v7 = vld [vmem:[#allocation8 + $0x574] sm:$0xf0]  ;;  %v10730_v8 = vld [vmem:[#allocation10] sm:$0xf] }
 0x293   :  { %v8481_v31 = vld [vmem:[#allocation8 + $0x528] sm:$0xf] }
 0x294   :  { %5092 = vmatpush.bf16.msrb.mxu3 %v7906_v45  ;;  %v3290_v5 = vpop.f32.mrf.mxu2  ;;  %v9838_v45 = vld [vmem:[#allocation8 + $0x4f4] sm:$0xf0] }
 0x295   :  { %5106 = vmatpush.bf16.msrb.mxu1 %v8018_v46  ;;  %v3291_v37 = vadd.f32 %v3290_v5, %v3278_v62  ;;  %v8450_v46 = vor.u32 %v9838_v45, %v8449_v3  ;;  %v9923_v62 = vld [vmem:[#allocation8 + $0x7a4] sm:$0xf]  ;;  %v8385_v3 = vld [vmem:[#allocation8 + $0x468] sm:$0xf]  ;;  %v9822_v5 = vld [vmem:[#allocation8 + $0x474] sm:$0xf0] }
 0x296   :  { %v3279_v12 = vpop.f32.mrf.mxu3  ;;  %5071 = vmatpush.bf16.msra.mxu2 %v8590_v48  ;;  %v8795_v48 = vld [vmem:[#allocation8 + $0x7b0] sm:$0xf0]  ;;  %v8513_v45 = vld [vmem:[#allocation8 + $0x568] sm:$0xf] }
 0x297   :  { %v3304_v24 = vadd.f32 %v3303_v13, %v3291_v37  ;;  %v9762_v13 = vld [vmem:[#allocation8 + $0x294] sm:$0xf0]  ;;  %v8798_v37 = vor.u32 %v9923_v62, %v8795_v48  ;;  %v8779_v12 = vld [vmem:[#allocation8 + $0x790] sm:$0xf0] }
 0x298   :  { %5093 = vmatpush.bf16.msrb.mxu3 %v7890_v50  ;;  %v3305_v50 = vpop.f32.mrf.mxu0  ;;  %v8146_v44 = vor.u32 %v9762_v13, %v8145_v38  ;;  %v8782_v63 = vor.u32 %v9919_v11, %v8779_v12  ;;  %v9746_v38 = vld [vmem:[#allocation8 + $0x214] sm:$0xf0] }
 0x299   :  { %5107 = vmatpush.bf16.msrb.mxu1 %v8002_v43  ;;  %v3317_v23 = vadd.f32 %v3316_v36, %v3304_v24  ;;  %5072 = vmatmul.bf16.vlgmr.msra.gmra.mxu2 %v10715_v0  ;;  %v9931_v43 = vld [vmem:[#allocation8 + $0x7e4] sm:$0xf]  ;;  %v8113_v36 = vld [vmem:[#allocation8 + $0x248] sm:$0xf]  ;;  %v8514_v24 = vor.u32 %v9854_v7, %v8513_v45  ;;  %v3594_v50 = vperm.slane %v10730_v8, 0 }
 0x29a   :  { %5116 = vmatpush.bf16.msrb.mxu2 %v8194_v6  ;;  %v8830_v61 = vor.u32 %v9931_v43, %v8827_v15  ;;  %v8130_v6 = vor.u32 %v9758_v53, %v8129_v59  ;;  %v9842_v59 = vld [vmem:[#allocation8 + $0x514] sm:$0xf0]  ;;  %v9740_v45 = vld [vmem:[#allocation8 + $0x1ec] sm:$0xf]  ;;  %v8067_v7 = vld [vmem:[#allocation8 + $0x1f8] sm:$0xf0] }
 0x29b   :  { %v3327_v22 = vmax.f32 %v3317_v23, 0.0  ;;  %v9750_v23 = vld [vmem:[#allocation8 + $0x234] sm:$0xf0] }
 0x29c   :  { %5094 = vmatpush.bf16.msrb.mxu3 %v7874_v27  ;;  %v9766_v27 = vld [vmem:[#allocation8 + $0x2b4] sm:$0xf0]  ;;  %v3292_v41 = vpop.f32.mrf.mxu2 }
 0x29d   :  { %5108 = vmatpush.bf16.msrb.mxu1 %v7986_v56  ;;  %v8162_v32 = vor.u32 %v9766_v27, %v8161_v21  ;;  %v10726_v39 = vpack.c.bf16 %v3327_v22, %v3327_v22  ;;  %v3318_v56 = vpop.f32.mrf.mxu1  ;;  %v9915_v21 = vld [vmem:[#allocation8 + $0x764] sm:$0xf]  ;;  %v8763_v27 = vld [vmem:[#allocation8 + $0x770] sm:$0xf0]  ;;  %v8098_v41 = vor.u32 %v9750_v23, %v8097_v14  ;;  %v9736_v14 = vld [vmem:[#allocation8 + $0x1cc] sm:$0xf] }
 0x29e   :  { %5117 = vmatpush.bf16.msrb.mxu2 %v8178_v18  ;;  %v8497_v18 = vld [vmem:[#allocation8 + $0x548] sm:$0xf]  ;;  %v9911_v56 = vld [vmem:[#allocation8 + $0x744] sm:$0xf]  ;;  %v8051_v23 = vld [vmem:[#allocation8 + $0x1d8] sm:$0xf0] }
 0x29f   :  { %4981 = vmatmul.bf16.vlgmr.msra.gmra.mxu0 %v10726_v39  ;;  %v8498_v22 = vor.u32 %v9850_v16, %v8497_v18  ;;  %v9704_v18 = vld [vmem:[#allocation8 + $0xcc] sm:$0xf]  ;;  %v7923_v16 = vld [vmem:[#allocation8 + $0xd8] sm:$0xf0] }
 0x2a0   :  { %5095 = vmatpush.bf16.msrb.mxu3 %v7858_v42  ;;  %v9862_v42 = vld [vmem:[#allocation8 + $0x5b4] sm:$0xf0]  ;;  %5077 = vmatpush.bf16.msra.mxu0 %v8830_v61  ;;  %v8081_v61 = vld [vmem:[#allocation8 + $0x208] sm:$0xf] }
 0x2a1   :  { %5109 = vmatpush.bf16.msrb.mxu1 %v7970_v33  ;;  %v8546_v29 = vor.u32 %v9862_v42, %v8545_v57  ;;  %v8814_v33 = vor.u32 %v9927_v25, %v8811_v40  ;;  %v9846_v57 = vld [vmem:[#allocation8 + $0x534] sm:$0xf0]  ;;  %v8766_v42 = vor.u32 %v9915_v21, %v8763_v27  ;;  %v8747_v40 = vld [vmem:[#allocation8 + $0x750] sm:$0xf0]  ;;  %v8082_v49 = vor.u32 %v9746_v38, %v8081_v61  ;;  %v8321_v21 = vld [vmem:[#allocation8 + $0x3e8] sm:$0xf] }
 0x2a2   :  { %5118 = vmatpush.bf16.msrb.mxu2 %v8162_v32  ;;  %v9814_v32 = vld [vmem:[#allocation8 + $0x434] sm:$0xf0]  ;;  %v8750_v62 = vor.u32 %v9911_v56, %v8747_v40  ;;  %v8035_v56 = vld [vmem:[#allocation8 + $0x1b8] sm:$0xf0]  ;;  %v8305_v61 = vld [vmem:[#allocation8 + $0x3c8] sm:$0xf] }
 0x2a3   :  { %v9806_v27 = vld [vmem:[#allocation8 + $0x3f4] sm:$0xf0] }
 0x2a4   :  { %5096 = vmatpush.bf16.msrb.mxu3 %v7842_v55  ;;  %v9826_v55 = vld [vmem:[#allocation8 + $0x494] sm:$0xf0]  ;;  %5078 = vmatpush.bf16.msra.mxu0 %v8814_v33  ;;  %v8465_v33 = vld [vmem:[#allocation8 + $0x508] sm:$0xf] }
 0x2a5   :  { %5110 = vmatpush.bf16.msrb.mxu1 %v7954_v51  ;;  %v8402_v1 = vor.u32 %v9826_v55, %v8401_v20  ;;  %v8386_v51 = vor.u32 %v9822_v5, %v8385_v3  ;;  %v8337_v55 = vld [vmem:[#allocation8 + $0x408] sm:$0xf]  ;;  %v7939_v3 = vld [vmem:[#allocation8 + $0xf8] sm:$0xf0]  ;;  %v8466_v12 = vor.u32 %v9842_v59, %v8465_v33  ;;  %v9802_v38 = vld [vmem:[#allocation8 + $0x3d4] sm:$0xf0] }
 0x2a6   :  { %5119 = vmatpush.bf16.msrb.mxu2 %v8146_v44  ;;  %v8482_v44 = vor.u32 %v9846_v57, %v8481_v31  ;;  %v8322_v31 = vor.u32 %v9806_v27, %v8321_v21  ;;  %v8289_v33 = vld [vmem:[#allocation8 + $0x3a8] sm:$0xf]  ;;  %v9798_v59 = vld [vmem:[#allocation8 + $0x3b4] sm:$0xf0] }
 0x2a7   :  { %v4904_v9 = vpop.f32.mrf.mxu1 }
 0x2a8   :  { %5097 = vmatpush.bf16.msrb.mxu3 %v7826_v35  ;;  %5111 = vmatmul.bf16.vlgmr.msrb.gmra.mxu1 %v10665_v26  ;;  %v9754_v35 = vld [vmem:[#allocation8 + $0x254] sm:$0xf0] }
 0x2a9   :  { %5155 = vmatpush.bf16.msra.mxu1 %v8578_v58  ;;  %v8114_v58 = vor.u32 %v9754_v35, %v8113_v36  ;;  %5079 = vmatpush.bf16.msra.mxu0 %v8798_v37  ;;  %v8338_v36 = vor.u32 %v9810_v19, %v8337_v55  ;;  %v8689_v35 = vld [vmem:[#allocation8 + $0x6c8] sm:$0xf]  ;;  %v8019_v19 = vld [vmem:[#allocation8 + $0x198] sm:$0xf0] }
 0x2aa   :  { %5120 = vmatpush.bf16.msrb.mxu2 %v8130_v6  ;;  %v8731_v6 = vld [vmem:[#allocation8 + $0x730] sm:$0xf0] }
 0x2ab   :  { %5098 = vmatmul.bf16.vlgmr.msrb.gmra.mxu3 %v10663_v4 }
 0x2ac   :  { %5142 = vmatpush.bf16.msra.mxu3 %v8450_v46  ;;  %v8369_v46 = vld [vmem:[#allocation8 + $0x448] sm:$0xf] }
 0x2ad   :  { %5156 = vmatpush.bf16.msra.mxu1 %v8562_v28  ;;  %v8370_v15 = vor.u32 %v9818_v17, %v8369_v46  ;;  %5080 = vmatpush.bf16.msra.mxu0 %v8782_v63  ;;  %v8715_v17 = vld [vmem:[#allocation8 + $0x710] sm:$0xf0] }
 0x2ae   :  { %v4891_v43 = vpop.f32.mrf.mxu3  ;;  %5121 = vmatpush.bf16.msrb.mxu2 %v8114_v58  ;;  %v8070_v58 = vor.u32 %v9740_v45, %v8067_v7  ;;  %v9724_v45 = vld [vmem:[#allocation8 + $0x16c] sm:$0xf]  ;;  %v8003_v7 = vld [vmem:[#allocation8 + $0x178] sm:$0xf0] }
 0x2af   :  { %v4892_v28 = vadd.f32 %v4891_v43, %v3594_v50  ;;  %v4906_v13 = vpop.f32.mrf.mxu1  ;;  %5033 = vmatmul.bf16.vlgmr.msrb.gmra.mxu0 %v10676_v60  ;;  %v8673_v43 = vld [vmem:[#allocation8 + $0x6a8] sm:$0xf] }
 0x2b0   :  { %5143 = vmatpush.bf16.msra.mxu3 %v8434_v52  ;;  %v8353_v52 = vld [vmem:[#allocation8 + $0x428] sm:$0xf]  ;;  %v4930_v30 = vpop.f32.mrf.mxu0 }
 0x2b1   :  { %5157 = vmatpush.bf16.msra.mxu1 %v8546_v29  ;;  %v4905_v25 = vadd.f32 %v4904_v9, %v4892_v28  ;;  %v9902_v29 = vld [vmem:[#allocation8 + $0x6f4] sm:$0xf0]  ;;  %v8354_v20 = vor.u32 %v9814_v32, %v8353_v52  ;;  %5081 = vmatpush.bf16.msra.mxu0 %v8766_v42  ;;  %v7907_v32 = vld [vmem:[#allocation8 + $0xb8] sm:$0xf0]  ;;  %v9732_v42 = vld [vmem:[#allocation8 + $0x1ac] sm:$0xf] }
 0x2b2   :  { %5122 = vmatpush.bf16.msrb.mxu2 %v8098_v41  ;;  %v9898_v9 = vld [vmem:[#allocation8 + $0x6d4] sm:$0xf0]  ;;  %v9700_v41 = vld [vmem:[#allocation8 + $0xac] sm:$0xf]  ;;  %v8657_v13 = vld [vmem:[#allocation8 + $0x688] sm:$0xf] }
 0x2b3   :  { %v8690_v63 = vor.u32 %v9898_v9, %v8689_v35  ;;  %v7910_v40 = vor.u32 %v9700_v41, %v7907_v32  ;;  %v8625_v35 = vld [vmem:[#allocation8 + $0x648] sm:$0xf]  ;;  %v9882_v9 = vld [vmem:[#allocation8 + $0x654] sm:$0xf0]  ;;  %v9716_v32 = vld [vmem:[#allocation8 + $0x12c] sm:$0xf] }
 0x2b4   :  { %5144 = vmatpush.bf16.msra.mxu3 %v8418_v54  ;;  %v8705_v54 = vld [vmem:[#allocation8 + $0x6e8] sm:$0xf]  ;;  %v4917_v53 = vpop.f32.mrf.mxu2 }
 0x2b5   :  { %5158 = vmatpush.bf16.msra.mxu1 %v8530_v2  ;;  %v8706_v48 = vor.u32 %v9902_v29, %v8705_v54  ;;  %v9708_v2 = vld [vmem:[#allocation8 + $0xec] sm:$0xf]  ;;  %v4918_v5 = vadd.f32 %v4917_v53, %v4905_v25  ;;  %5082 = vmatpush.bf16.msra.mxu0 %v8750_v62  ;;  %v9890_v25 = vld [vmem:[#allocation8 + $0x694] sm:$0xf0]  ;;  %v8038_v54 = vor.u32 %v9732_v42, %v8035_v56  ;;  %v8641_v53 = vld [vmem:[#allocation8 + $0x668] sm:$0xf] }
 0x2b6   :  { %v4893_v37 = vpop.f32.mrf.mxu3  ;;  %5123 = vmatpush.bf16.msrb.mxu2 %v8082_v49  ;;  %v9696_v29 = vld [vmem:[#allocation8 + $0x8c] sm:$0xf]  ;;  %v8658_v55 = vor.u32 %v9890_v25, %v8657_v13  ;;  %v9886_v62 = vld [vmem:[#allocation8 + $0x674] sm:$0xf0] }
 0x2b7   :  { %v10734_v50 = vadd.f32 %v4930_v30, %v4918_v5  ;;  %v8054_v30 = vor.u32 %v9736_v14, %v8051_v23  ;;  %v9728_v49 = vld [vmem:[#allocation8 + $0x18c] sm:$0xf]  ;;  %v8290_v5 = vor.u32 %v9798_v59, %v8289_v33  ;;  %v8273_v37 = vld [vmem:[#allocation8 + $0x388] sm:$0xf]  ;;  %v9878_v23 = vld [vmem:[#allocation8 + $0x634] sm:$0xf0] }
 0x2b8   :  { %5145 = vmatpush.bf16.msra.mxu3 %v8402_v1  ;;  %v9907_v1 = vld [vmem:[#allocation8 + $0x724] sm:$0xf]  ;;  %v4932_v11 = vpop.f32.mrf.mxu0  ;;  %v8609_v14 = vld [vmem:[#allocation8 + $0x628] sm:$0xf]  ;;  %v9786_v56 = vld [vmem:[#allocation8 + $0x354] sm:$0xf0] }
 0x2b9   :  { %5159 = vmatpush.bf16.msra.mxu1 %v8514_v24  ;;  %v9903_v24 = vld [vmem:[#allocation8 + $0x704] sm:$0xf]  ;;  %v8734_v46 = vor.u32 %v9907_v1, %v8731_v6  ;;  %5124 = vmatmul.bf16.vlgmr.msrb.gmra.mxu2 %v10674_v47  ;;  %v8022_v1 = vor.u32 %v9728_v49, %v8019_v19  ;;  %v8642_v6 = vor.u32 %v9886_v62, %v8641_v53  ;;  %v9772_v25 = vld [vmem:[#allocation8 + $0x2ec] sm:$0xf]  ;;  %v7955_v49 = vld [vmem:[#allocation8 + $0x118] sm:$0xf0] }
 0x2ba   :  { %5168 = vmatpush.bf16.msra.mxu2 %v8706_v48  ;;  %v8718_v28 = vor.u32 %v9903_v24, %v8715_v17  ;;  %v7859_v24 = vld [vmem:[#allocation8 + $0x58] sm:$0xf0]  ;;  %v9720_v17 = vld [vmem:[#allocation8 + $0x14c] sm:$0xf]  ;;  %v8610_v41 = vor.u32 %v9878_v23, %v8609_v14  ;;  %v8225_v19 = vld [vmem:[#allocation8 + $0x328] sm:$0xf] }
 0x2bb   :  { %5083 = vmatpush.bf16.msra.mxu0 %v8734_v46  ;;  %v9782_v33 = vld [vmem:[#allocation8 + $0x334] sm:$0xf0]  ;;  %v9836_v53 = vld [vmem:[#allocation8 + $0x4ec] sm:$0xf]  ;;  %v8451_v62 = vld [vmem:[#allocation8 + $0x4f8] sm:$0xf0] }
 0x2bc   :  { %5146 = vmatpush.bf16.msra.mxu3 %v8386_v51  ;;  %v7942_v51 = vor.u32 %v9708_v2, %v7939_v3  ;;  %v4919_v52 = vpop.f32.mrf.mxu2  ;;  %v9692_v2 = vld [vmem:[#allocation8 + $0x6c] sm:$0xf]  ;;  %v7875_v3 = vld [vmem:[#allocation8 + $0x78] sm:$0xf0] }
 0x2bd   :  { %5160 = vmatpush.bf16.msra.mxu1 %v8498_v22  ;;  %v7926_v22 = vor.u32 %v9704_v18, %v7923_v16  ;;  %v7878_v11 = vor.u32 %v9692_v2, %v7875_v3  ;;  %v7987_v18 = vld [vmem:[#allocation8 + $0x158] sm:$0xf0]  ;;  %v8257_v16 = vld [vmem:[#allocation8 + $0x368] sm:$0xf]  ;;  %v9684_v52 = vld [vmem:[#allocation8 + $0x2c] sm:$0xf] }
 0x2be   :  { %5169 = vmatpush.bf16.msra.mxu2 %v8690_v63  ;;  %v9790_v63 = vld [vmem:[#allocation8 + $0x374] sm:$0xf0] }
 0x2bf   :  { %5084 = vmatpush.bf16.msra.mxu0 %v8718_v28  ;;  %v7843_v28 = vld [vmem:[#allocation8 + $0x38] sm:$0xf0] }
 0x2c0   :  { %5147 = vmatpush.bf16.msra.mxu3 %v8370_v15  ;;  %v9894_v15 = vld [vmem:[#allocation8 + $0x6b4] sm:$0xf0]  ;;  %v7846_v13 = vor.u32 %v9684_v52, %v7843_v28  ;;  %v8547_v28 = vld [vmem:[#allocation8 + $0x5b8] sm:$0xf0] }
 0x2c1   :  { %5161 = vmatpush.bf16.msra.mxu1 %v8482_v44  ;;  %v8674_v57 = vor.u32 %v9894_v15, %v8673_v43  ;;  %v8306_v44 = vor.u32 %v9802_v38, %v8305_v61  ;;  %v8593_v61 = vld [vmem:[#allocation8 + $0x608] sm:$0xf]  ;;  %v9874_v38 = vld [vmem:[#allocation8 + $0x614] sm:$0xf0] }
 0x2c2   :  { %5085 = vmatmul.bf16.vlgmr.msra.gmra.mxu0 %v10726_v39 }
 0x2c3   :  { %5129 = vmatpush.bf16.msrb.mxu0 %v8322_v31  ;;  %5170 = vmatpush.bf16.msra.mxu2 %v8674_v57  ;;  %v7971_v31 = vld [vmem:[#allocation8 + $0x138] sm:$0xf0]  ;;  %v8241_v57 = vld [vmem:[#allocation8 + $0x348] sm:$0xf] }
 0x2c4   :  { %5148 = vmatpush.bf16.msra.mxu3 %v8354_v20  ;;  %v7891_v20 = vld [vmem:[#allocation8 + $0x98] sm:$0xf0] }
 0x2c5   :  { %5162 = vmatpush.bf16.msra.mxu1 %v8466_v12  ;;  %v7894_v48 = vor.u32 %v9696_v29, %v7891_v20  ;;  %v8006_v12 = vor.u32 %v9724_v45, %v8003_v7  ;;  %v4956_v27 = vpop.f32.mrf.mxu1  ;;  %v7827_v29 = vld [vmem:[#allocation8 + $0x18] sm:$0xf0]  ;;  %v9712_v20 = vld [vmem:[#allocation8 + $0x10c] sm:$0xf] }
 0x2c6   :  { %v8179_v45 = vld [vmem:[#allocation8 + $0x2d8] sm:$0xf0]  ;;  %v7958_v7 = vor.u32 %v9712_v20, %v7955_v49  ;;  %v9820_v49 = vld [vmem:[#allocation8 + $0x46c] sm:$0xf] }
 0x2c7   :  { %5130 = vmatpush.bf16.msrb.mxu0 %v8306_v44  ;;  %5171 = vmatpush.bf16.msra.mxu2 %v8658_v55  ;;  %v8242_v44 = vor.u32 %v9786_v56, %v8241_v57  ;;  %v8594_v55 = vor.u32 %v9874_v38, %v8593_v61  ;;  %v9824_v38 = vld [vmem:[#allocation8 + $0x48c] sm:$0xf] }
 0x2c8   :  { %5149 = vmatpush.bf16.msra.mxu3 %v8338_v36  ;;  %5163 = vmatmul.bf16.vlgmr.msra.gmra.mxu1 %v10690_v34  ;;  %v9794_v36 = vld [vmem:[#allocation8 + $0x394] sm:$0xf0] }
 0x2c9   :  { %5207 = vmatpush.bf16.msrb.mxu1 %v8070_v58  ;;  %v8274_v46 = vor.u32 %v9794_v36, %v8273_v37  ;;  %v8626_v58 = vor.u32 %v9882_v9, %v8625_v35  ;;  %v8226_v37 = vor.u32 %v9782_v33, %v8225_v19  ;;  %v8454_v36 = vor.u32 %v9836_v53, %v8451_v62  ;;  %v8209_v35 = vld [vmem:[#allocation8 + $0x308] sm:$0xf]  ;;  %v9778_v9 = vld [vmem:[#allocation8 + $0x314] sm:$0xf0]  ;;  %v8387_v19 = vld [vmem:[#allocation8 + $0x478] sm:$0xf0] }
 0x2ca   :  { %v8210_v14 = vor.u32 %v9778_v9, %v8209_v35  ;;  %v9852_v33 = vld [vmem:[#allocation8 + $0x56c] sm:$0xf]  ;;  %v8515_v62 = vld [vmem:[#allocation8 + $0x578] sm:$0xf0] }
 0x2cb   :  { %5150 = vmatmul.bf16.vlgmr.msra.gmra.mxu3 %v10687_v10  ;;  %5131 = vmatpush.bf16.msrb.mxu0 %v8290_v5  ;;  %v8579_v5 = vld [vmem:[#allocation8 + $0x5f8] sm:$0xf0]  ;;  %v9848_v35 = vld [vmem:[#allocation8 + $0x54c] sm:$0xf] }
 0x2cc   :  { %5194 = vmatpush.bf16.msrb.mxu3 %v7942_v51  ;;  %v9688_v51 = vld [vmem:[#allocation8 + $0x4c] sm:$0xf]  ;;  %5172 = vmatpush.bf16.msra.mxu2 %v8642_v6 }
 0x2cd   :  { %5208 = vmatpush.bf16.msrb.mxu1 %v8054_v30  ;;  %v7862_v43 = vor.u32 %v9688_v51, %v7859_v24  ;;  %v8258_v30 = vor.u32 %v9790_v63, %v8257_v16  ;;  %v4958_v2 = vpop.f32.mrf.mxu1  ;;  %v9768_v6 = vld [vmem:[#allocation8 + $0x2cc] sm:$0xf]  ;;  %v8435_v24 = vld [vmem:[#allocation8 + $0x4d8] sm:$0xf0] }
 0x2ce   :  { %v4943_v21 = vpop.f32.mrf.mxu3  ;;  %v9832_v51 = vld [vmem:[#allocation8 + $0x4cc] sm:$0xf]  ;;  %v8163_v63 = vld [vmem:[#allocation8 + $0x2b8] sm:$0xf0] }
 0x2cf   :  { %v4944_v15 = vadd.f32 %v4943_v21, %v10734_v50  ;;  %5132 = vmatpush.bf16.msrb.mxu0 %v8274_v46  ;;  %v7974_v50 = vor.u32 %v9716_v32, %v7971_v31  ;;  %v9864_v46 = vld [vmem:[#allocation8 + $0x5cc] sm:$0xf]  ;;  %v8438_v23 = vor.u32 %v9832_v51, %v8435_v24  ;;  %v8147_v31 = vld [vmem:[#allocation8 + $0x298] sm:$0xf0]  ;;  %v9918_v51 = vld [vmem:[#allocation8 + $0x774] sm:$0xf0] }
 0x2d0   :  { %5195 = vmatpush.bf16.msrb.mxu3 %v7926_v22  ;;  %v7990_v22 = vor.u32 %v9720_v17, %v7987_v18  ;;  %5173 = vmatpush.bf16.msra.mxu2 %v8626_v58  ;;  %v8563_v58 = vld [vmem:[#allocation8 + $0x5d8] sm:$0xf0]  ;;  %v8833_v17 = vld [vmem:[#allocation8 + $0x7e8] sm:$0xf]  ;;  %v9934_v18 = vld [vmem:[#allocation8 + $0x7f4] sm:$0xf0] }
 0x2d1   :  { %5209 = vmatpush.bf16.msrb.mxu1 %v8038_v54  ;;  %v10741_v42 = vadd.f32 %v4956_v27, %v4944_v15  ;;  %v9680_v54 = vld [vmem:[#allocation8 + $0xc] sm:$0xf]  ;;  %v8566_v21 = vor.u32 %v9864_v46, %v8563_v58  ;;  %v8834_v27 = vor.u32 %v9934_v18, %v8833_v17  ;;  %v8419_v15 = vld [vmem:[#allocation8 + $0x4b8] sm:$0xf0] }
 0x2d2   :  { %v7830_v3 = vor.u32 %v9680_v54, %v7827_v29  ;;  %v9764_v16 = vld [vmem:[#allocation8 + $0x2ac] sm:$0xf]  ;;  %v8131_v29 = vld [vmem:[#allocation8 + $0x278] sm:$0xf0] }
 0x2d3   :  { %5133 = vmatpush.bf16.msrb.mxu0 %v8258_v30  ;;  %v8166_v52 = vor.u32 %v9764_v16, %v8163_v63  ;;  %v8817_v30 = vld [vmem:[#allocation8 + $0x7c8] sm:$0xf]  ;;  %v9760_v32 = vld [vmem:[#allocation8 + $0x28c] sm:$0xf]  ;;  %v8099_v58 = vld [vmem:[#allocation8 + $0x238] sm:$0xf0] }
 0x2d4   :  { %5196 = vmatpush.bf16.msrb.mxu3 %v7910_v40  ;;  %v8195_v40 = vld [vmem:[#allocation8 + $0x2f8] sm:$0xf0]  ;;  %5174 = vmatpush.bf16.msra.mxu2 %v8610_v41  ;;  %v9930_v41 = vld [vmem:[#allocation8 + $0x7d4] sm:$0xf0]  ;;  %v9756_v54 = vld [vmem:[#allocation8 + $0x26c] sm:$0xf] }
 0x2d5   :  { %5210 = vmatpush.bf16.msrb.mxu1 %v8022_v1  ;;  %v8198_v59 = vor.u32 %v9772_v25, %v8195_v40  ;;  %v8818_v61 = vor.u32 %v9930_v41, %v8817_v30  ;;  %v9856_v25 = vld [vmem:[#allocation8 + $0x58c] sm:$0xf]  ;;  %v8531_v40 = vld [vmem:[#allocation8 + $0x598] sm:$0xf0]  ;;  %v8134_v53 = vor.u32 %v9756_v54, %v8131_v29  ;;  %v9910_v54 = vld [vmem:[#allocation8 + $0x734] sm:$0xf0] }
 0x2d6   :  { %v4945_v1 = vpop.f32.mrf.mxu3  ;;  %v9752_v2 = vld [vmem:[#allocation8 + $0x24c] sm:$0xf]  ;;  %v8083_v30 = vld [vmem:[#allocation8 + $0x218] sm:$0xf0]  ;;  %v8897_v29 = vld [vmem:[#allocation11 + $0x70] sm:$0xf] }
 0x2d7   :  { %5134 = vmatpush.bf16.msrb.mxu0 %v8242_v44  ;;  %v8534_v44 = vor.u32 %v9856_v25, %v8531_v40  ;;  %v9922_v1 = vld [vmem:[#allocation8 + $0x794] sm:$0xf0]  ;;  %v9748_v46 = vld [vmem:[#allocation8 + $0x22c] sm:$0xf]  ;;  %v8737_v40 = vld [vmem:[#allocation8 + $0x728] sm:$0xf] }
 0x2d8   :  { %5197 = vmatpush.bf16.msrb.mxu3 %v7894_v48  ;;  %v9868_v48 = vld [vmem:[#allocation8 + $0x5ec] sm:$0xf]  ;;  %5175 = vmatpush.bf16.msra.mxu2 %v8594_v55 }
 0x2d9   :  { %5211 = vmatpush.bf16.msrb.mxu1 %v8006_v12  ;;  %v8182_v12 = vor.u32 %v9768_v6, %v8179_v45  ;;  %v3595_v6 = vperm.slane %v10730_v8, 1  ;;  %v8518_v45 = vor.u32 %v9852_v33, %v8515_v62  ;;  %v9812_v63 = vld [vmem:[#allocation8 + $0x42c] sm:$0xf]  ;;  %v8738_v33 = vor.u32 %v9910_v54, %v8737_v40  ;;  %v9962_v40 = vld [vmem:[#allocation11 + $0xd4] sm:$0xf0] }
 0x2da   :  { %v9840_v25 = vld [vmem:[#allocation8 + $0x50c] sm:$0xf] }
 0x2db   :  { %5176 = vmatmul.bf16.vlgmr.msra.gmra.mxu2 %v10715_v0  ;;  %5135 = vmatpush.bf16.msrb.mxu0 %v8226_v37  ;;  %v9816_v37 = vld [vmem:[#allocation8 + $0x44c] sm:$0xf] }
 0x2dc   :  { %5198 = vmatpush.bf16.msrb.mxu3 %v7878_v11  ;;  %5220 = vmatpush.bf16.msrb.mxu2 %v8198_v59  ;;  %v8582_v11 = vor.u32 %v9868_v48, %v8579_v5  ;;  %v8785_v48 = vld [vmem:[#allocation8 + $0x788] sm:$0xf]  ;;  %v8390_v5 = vor.u32 %v9820_v49, %v8387_v19  ;;  %v8691_v49 = vld [vmem:[#allocation8 + $0x6d8] sm:$0xf0]  ;;  %v9788_v54 = vld [vmem:[#allocation8 + $0x36c] sm:$0xf] }
 0x2dd   :  { %5212 = vmatpush.bf16.msrb.mxu1 %v7990_v22  ;;  %v9860_v22 = vld [vmem:[#allocation8 + $0x5ac] sm:$0xf] }
 0x2de   :  { %v8550_v56 = vor.u32 %v9860_v22, %v8547_v28  ;;  %v9914_v22 = vld [vmem:[#allocation8 + $0x754] sm:$0xf0]  ;;  %v9744_v28 = vld [vmem:[#allocation8 + $0x20c] sm:$0xf] }
 0x2df   :  { %5136 = vmatpush.bf16.msrb.mxu0 %v8210_v14  ;;  %v8355_v14 = vld [vmem:[#allocation8 + $0x438] sm:$0xf0] }
 0x2e0   :  { %5199 = vmatpush.bf16.msrb.mxu3 %v7862_v43  ;;  %5221 = vmatpush.bf16.msrb.mxu2 %v8182_v12  ;;  %v9828_v43 = vld [vmem:[#allocation8 + $0x4ac] sm:$0xf]  ;;  %v8769_v12 = vld [vmem:[#allocation8 + $0x768] sm:$0xf]  ;;  %v8358_v41 = vor.u32 %v9812_v63, %v8355_v14 }
 0x2e1   :  { %5213 = vmatpush.bf16.msrb.mxu1 %v7974_v50  ;;  %v8422_v57 = vor.u32 %v9828_v43, %v8419_v15  ;;  %v9926_v50 = vld [vmem:[#allocation8 + $0x7b4] sm:$0xf0]  ;;  %v8770_v16 = vor.u32 %v9918_v51, %v8769_v12  ;;  %v8483_v43 = vld [vmem:[#allocation8 + $0x538] sm:$0xf0]  ;;  %v8753_v15 = vld [vmem:[#allocation8 + $0x748] sm:$0xf] }
 0x2e2   :  { %5137 = vmatmul.bf16.vlgmr.msrb.gmra.mxu0 %v10676_v60  ;;  %v9946_v12 = vld [vmem:[#allocation11 + $0x54] sm:$0xf0]  ;;  %v9944_v63 = vld [vmem:[#allocation11 + $0x44] sm:$0xf0] }
 0x2e3   :  { %5181 = vmatpush.bf16.msra.mxu0 %v8834_v27  ;;  %v8102_v27 = vor.u32 %v9748_v46, %v8099_v58  ;;  %v8307_v51 = vld [vmem:[#allocation8 + $0x3d8] sm:$0xf0]  ;;  %v8961_v58 = vld [vmem:[#allocation11 + $0xf0] sm:$0xf] }
 0x2e4   :  { %5200 = vmatpush.bf16.msrb.mxu3 %v7846_v13  ;;  %v8403_v13 = vld [vmem:[#allocation8 + $0x498] sm:$0xf0]  ;;  %5222 = vmatpush.bf16.msrb.mxu2 %v8166_v52 }
 0x2e5   :  { %5214 = vmatpush.bf16.msrb.mxu1 %v7958_v7  ;;  %v8406_v20 = vor.u32 %v9824_v38, %v8403_v13  ;;  %v5008_v59 = vpop.f32.mrf.mxu1  ;;  %v8786_v7 = vor.u32 %v9922_v1, %v8785_v48  ;;  %v8339_v38 = vld [vmem:[#allocation8 + $0x418] sm:$0xf0]  ;;  %v8086_v13 = vor.u32 %v9744_v28, %v8083_v30  ;;  %v9804_v1 = vld [vmem:[#allocation8 + $0x3ec] sm:$0xf] }
 0x2e6   :  { %v8659_v46 = vld [vmem:[#allocation8 + $0x698] sm:$0xf0] }
 0x2e7   :  { %5182 = vmatpush.bf16.msra.mxu0 %v8818_v61  ;;  %v9808_v61 = vld [vmem:[#allocation8 + $0x40c] sm:$0xf] }
 0x2e8   :  { %5201 = vmatpush.bf16.msrb.mxu3 %v7830_v3  ;;  %5215 = vmatmul.bf16.vlgmr.msrb.gmra.mxu1 %v10665_v26  ;;  %v8801_v26 = vld [vmem:[#allocation8 + $0x7a8] sm:$0xf]  ;;  %v8115_v3 = vld [vmem:[#allocation8 + $0x258] sm:$0xf0] }
 0x2e9   :  { %5259 = vmatpush.bf16.msra.mxu1 %v8582_v11  ;;  %v8802_v55 = vor.u32 %v9926_v50, %v8801_v26  ;;  %v8118_v9 = vor.u32 %v9752_v2, %v8115_v3  ;;  %v8499_v11 = vld [vmem:[#allocation8 + $0x558] sm:$0xf0]  ;;  %v8889_v2 = vld [vmem:[#allocation11 + $0x60] sm:$0xf]  ;;  %v9948_v3 = vld [vmem:[#allocation11 + $0x64] sm:$0xf0] }
 0x2ea   :  { %v8502_v8 = vor.u32 %v9848_v35, %v8499_v11  ;;  %v8881_v11 = vld [vmem:[#allocation11 + $0x50] sm:$0xf] }
 0x2eb   :  { %5202 = vmatmul.bf16.vlgmr.msrb.gmra.mxu3 %v10663_v4  ;;  %v8150_v4 = vor.u32 %v9760_v32, %v8147_v31  ;;  %5183 = vmatpush.bf16.msra.mxu0 %v8802_v55  ;;  %v9900_v32 = vld [vmem:[#allocation8 + $0x6ec] sm:$0xf]  ;;  %v8707_v31 = vld [vmem:[#allocation8 + $0x6f8] sm:$0xf0] }
 0x2ec   :  { %5246 = vmatpush.bf16.msra.mxu3 %v8454_v36  ;;  %v8371_v36 = vld [vmem:[#allocation8 + $0x458] sm:$0xf0]  ;;  %v8710_v50 = vor.u32 %v9900_v32, %v8707_v31  ;;  %v9896_v55 = vld [vmem:[#allocation8 + $0x6cc] sm:$0xf] }
 0x2ed   :  { %5260 = vmatpush.bf16.msra.mxu1 %v8566_v21  ;;  %5223 = vmatpush.bf16.msrb.mxu2 %v8150_v4  ;;  %v8374_v18 = vor.u32 %v9816_v37, %v8371_v36  ;;  %v5010_v21 = vpop.f32.mrf.mxu1  ;;  %v8467_v4 = vld [vmem:[#allocation8 + $0x518] sm:$0xf0]  ;;  %v8694_v48 = vor.u32 %v9896_v55, %v8691_v49  ;;  %v8890_v37 = vor.u32 %v9948_v3, %v8889_v2  ;;  %v9792_v31 = vld [vmem:[#allocation8 + $0x38c] sm:$0xf] }
 0x2ee   :  { %v4995_v24 = vpop.f32.mrf.mxu3  ;;  %v8470_v19 = vor.u32 %v9840_v25, %v8467_v4  ;;  %v9884_v21 = vld [vmem:[#allocation8 + $0x66c] sm:$0xf]  ;;  %v8945_v25 = vld [vmem:[#allocation11 + $0xd0] sm:$0xf]  ;;  %v8259_v49 = vld [vmem:[#allocation8 + $0x378] sm:$0xf0] }
 0x2ef   :  { %v4996_v17 = vadd.f32 %v4995_v24, %v3595_v6  ;;  %5184 = vmatpush.bf16.msra.mxu0 %v8786_v7  ;;  %v9892_v6 = vld [vmem:[#allocation8 + $0x6ac] sm:$0xf]  ;;  %v8262_v3 = vor.u32 %v9788_v54, %v8259_v49  ;;  %v8819_v54 = vld [vmem:[#allocation8 + $0x7d8] sm:$0xf0]  ;;  %v9965_v49 = vld [vmem:[#allocation11 + $0xf4] sm:$0xf] }
 0x2f0   :  { %5247 = vmatpush.bf16.msra.mxu3 %v8438_v23  ;;  %v9844_v23 = vld [vmem:[#allocation8 + $0x52c] sm:$0xf] }
 0x2f1   :  { %5261 = vmatpush.bf16.msra.mxu1 %v8550_v56  ;;  %5224 = vmatpush.bf16.msrb.mxu2 %v8134_v53  ;;  %v10748_v52 = vadd.f32 %v5008_v59, %v4996_v17  ;;  %v8754_v56 = vor.u32 %v9914_v22, %v8753_v15  ;;  %v8721_v59 = vld [vmem:[#allocation8 + $0x708] sm:$0xf]  ;;  %v9906_v53 = vld [vmem:[#allocation8 + $0x714] sm:$0xf0]  ;;  %v9888_v24 = vld [vmem:[#allocation8 + $0x68c] sm:$0xf] }
 0x2f2   :  { %v8722_v7 = vor.u32 %v9906_v53, %v8721_v59  ;;  %v9966_v17 = vld [vmem:[#allocation11 + $0xf4] sm:$0xf0]  ;;  %v8937_v59 = vld [vmem:[#allocation11 + $0xc0] sm:$0xf]  ;;  %v9960_v53 = vld [vmem:[#allocation11 + $0xc4] sm:$0xf0] }
 0x2f3   :  { %5185 = vmatpush.bf16.msra.mxu0 %v8770_v16  ;;  %v8873_v16 = vld [vmem:[#allocation11 + $0x40] sm:$0xf]  ;;  %v8962_v14 = vor.u32 %v9966_v17, %v8961_v58 }
 0x2f4   :  { %5248 = vmatpush.bf16.msra.mxu3 %v8422_v57  ;;  %v8486_v57 = vor.u32 %v9844_v23, %v8483_v43  ;;  %v8291_v23 = vld [vmem:[#allocation8 + $0x3b8] sm:$0xf0]  ;;  %v9964_v43 = vld [vmem:[#allocation11 + $0xe4] sm:$0xf0]  ;;  %v8874_v15 = vor.u32 %v9944_v63, %v8873_v16  ;;  %v8841_v58 = vld [vmem:[#allocation11] sm:$0xf] }
 0x2f5   :  { %5262 = vmatpush.bf16.msra.mxu1 %v8534_v44  ;;  %5225 = vmatpush.bf16.msrb.mxu2 %v8118_v9  ;;  %v8342_v44 = vor.u32 %v9808_v61, %v8339_v38  ;;  %v9800_v9 = vld [vmem:[#allocation8 + $0x3cc] sm:$0xf]  ;;  %v8275_v61 = vld [vmem:[#allocation8 + $0x398] sm:$0xf0]  ;;  %v8899_v16 = vld [vmem:[#allocation11 + $0x78] sm:$0xf0] }
 0x2f6   :  { %v4997_v26 = vpop.f32.mrf.mxu3  ;;  %v9880_v38 = vld [vmem:[#allocation8 + $0x64c] sm:$0xf]  ;;  %v8921_v63 = vld [vmem:[#allocation11 + $0xa0] sm:$0xf] }
 0x2f7   :  { %5186 = vmatpush.bf16.msra.mxu0 %v8754_v56  ;;  %v10756_v30 = vpop.f32.mrf.mxu2  ;;  %v9942_v56 = vld [vmem:[#allocation11 + $0x34] sm:$0xf0]  ;;  %v8278_v26 = vor.u32 %v9792_v31, %v8275_v61  ;;  %v9932_v31 = vld [vmem:[#allocation8 + $0x7ec] sm:$0xf] }
 0x2f8   :  { %5249 = vmatpush.bf16.msra.mxu3 %v8406_v20  ;;  %v9950_v20 = vld [vmem:[#allocation11 + $0x74] sm:$0xf0] }
 0x2f9   :  { %5263 = vmatpush.bf16.msra.mxu1 %v8518_v45  ;;  %5226 = vmatpush.bf16.msrb.mxu2 %v8102_v27  ;;  %v8898_v62 = vor.u32 %v9950_v20, %v8897_v29  ;;  %v8675_v45 = vld [vmem:[#allocation8 + $0x6b8] sm:$0xf0]  ;;  %v8857_v29 = vld [vmem:[#allocation11 + $0x20] sm:$0xf]  ;;  %v9940_v20 = vld [vmem:[#allocation11 + $0x24] sm:$0xf0] }
 0x2fa   :  { %v8678_v35 = vor.u32 %v9892_v6, %v8675_v45  ;;  %v8643_v27 = vld [vmem:[#allocation8 + $0x678] sm:$0xf0]  ;;  %v9784_v6 = vld [vmem:[#allocation8 + $0x34c] sm:$0xf]  ;;  %v8849_v45 = vld [vmem:[#allocation11 + $0x10] sm:$0xf] }
 0x2fb   :  { %5187 = vmatpush.bf16.msra.mxu0 %v8738_v33  ;;  %v8646_v32 = vor.u32 %v9884_v21, %v8643_v27  ;;  %v8611_v33 = vld [vmem:[#allocation8 + $0x638] sm:$0xf0] }
 0x2fc   :  { %5250 = vmatpush.bf16.msra.mxu3 %v8390_v5  ;;  %v8323_v5 = vld [vmem:[#allocation8 + $0x3f8] sm:$0xf0] }
 0x2fd   :  { %5264 = vmatpush.bf16.msra.mxu1 %v8502_v8  ;;  %5227 = vmatpush.bf16.msrb.mxu2 %v8086_v13  ;;  %v8326_v36 = vor.u32 %v9804_v1, %v8323_v5  ;;  %v8662_v8 = vor.u32 %v9888_v24, %v8659_v46  ;;  %v8627_v13 = vld [vmem:[#allocation8 + $0x658] sm:$0xf0]  ;;  %v9780_v46 = vld [vmem:[#allocation8 + $0x32c] sm:$0xf] }
 0x2fe   :  { %v9954_v61 = vld [vmem:[#allocation11 + $0x94] sm:$0xf0] }
 0x2ff   :  { %5188 = vmatpush.bf16.msra.mxu0 %v8722_v7  ;;  %v4971_v2 = vpop.f32.mrf.mxu2  ;;  %v9938_v7 = vld [vmem:[#allocation11 + $0x14] sm:$0xf0] }
 0x300   :  { %5251 = vmatpush.bf16.msra.mxu3 %v8374_v18  ;;  %5228 = vmatmul.bf16.vlgmr.msrb.gmra.mxu2 %v10674_v47  ;;  %v8882_v47 = vor.u32 %v9946_v12, %v8881_v11  ;;  %v8310_v18 = vor.u32 %v9800_v9, %v8307_v51  ;;  %v8929_v9 = vld [vmem:[#allocation11 + $0xb0] sm:$0xf]  ;;  %v8850_v11 = vor.u32 %v9938_v7, %v8849_v45  ;;  %v9958_v12 = vld [vmem:[#allocation11 + $0xb4] sm:$0xf0] }
 0x301   :  { %5265 = vmatpush.bf16.msra.mxu1 %v8486_v57  ;;  %5272 = vmatpush.bf16.msra.mxu2 %v8710_v50  ;;  %v8865_v57 = vld [vmem:[#allocation11 + $0x30] sm:$0xf]  ;;  %v8630_v50 = vor.u32 %v9880_v38, %v8627_v13  ;;  %v8930_v17 = vor.u32 %v9958_v12, %v8929_v9  ;;  %v8803_v2 = vld [vmem:[#allocation8 + $0x7b8] sm:$0xf0]  ;;  %v9920_v9 = vld [vmem:[#allocation8 + $0x78c] sm:$0xf]  ;;  %v4970_v12 = vadd.f32 %v10756_v30, %v10741_v42 }
 0x302   :  { %5189 = vmatmul.bf16.vlgmr.msra.gmra.mxu0 %v10726_v39  ;;  %v8866_v4 = vor.u32 %v9942_v56, %v8865_v57  ;;  %v8835_v57 = vld [vmem:[#allocation8 + $0x7f8] sm:$0xf0]  ;;  %v8913_v56 = vld [vmem:[#allocation11 + $0x90] sm:$0xf]  ;;  %v9916_v42 = vld [vmem:[#allocation8 + $0x76c] sm:$0xf] }
 0x303   :  { %5233 = vmatpush.bf16.msrb.mxu0 %v8326_v36  ;;  %v9872_v36 = vld [vmem:[#allocation8 + $0x60c] sm:$0xf]  ;;  %v8771_v30 = vld [vmem:[#allocation8 + $0x778] sm:$0xf0] }
 0x304   :  { %5252 = vmatpush.bf16.msra.mxu3 %v8358_v41 }
 0x305   :  { %5266 = vmatpush.bf16.msra.mxu1 %v8470_v19  ;;  %5273 = vmatpush.bf16.msra.mxu2 %v8694_v48  ;;  %v10754_v28 = vpop.f32.mrf.mxu1  ;;  %v9876_v19 = vld [vmem:[#allocation8 + $0x62c] sm:$0xf]  ;;  %v8938_v48 = vor.u32 %v9960_v53, %v8937_v59 }
 0x306   :  { %v8614_v5 = vor.u32 %v9876_v19, %v8611_v33  ;;  %v8963_v19 = vld [vmem:[#allocation11 + $0xf8] sm:$0xf0] }
 0x307   :  { %5234 = vmatpush.bf16.msrb.mxu0 %v8310_v18  ;;  %v10760_v27 = vpop.f32.mrf.mxu2  ;;  %v8966_v59 = vor.u32 %v9965_v49, %v8963_v19  ;;  %v8843_v19 = vld [vmem:[#allocation11 + $0x8] sm:$0xf0] }
 0x308   :  { %5253 = vmatpush.bf16.msra.mxu3 %v8342_v44  ;;  %5267 = vmatmul.bf16.vlgmr.msra.gmra.mxu1 %v10690_v34  ;;  %v8953_v34 = vld [vmem:[#allocation11 + $0xe0] sm:$0xf]  ;;  %v8946_v44 = vor.u32 %v9962_v40, %v8945_v25  ;;  %v8914_v25 = vor.u32 %v9954_v61, %v8913_v56  ;;  %v9928_v40 = vld [vmem:[#allocation8 + $0x7cc] sm:$0xf]  ;;  %v8851_v56 = vld [vmem:[#allocation11 + $0x18] sm:$0xf0] }
 0x309   :  { %5274 = vmatpush.bf16.msra.mxu2 %v8678_v35  ;;  %5709 = vmatpush.bf16.msrb.mxu1 %v8962_v14  ;;  %v8954_v22 = vor.u32 %v9964_v43, %v8953_v34  ;;  %v8595_v35 = vld [vmem:[#allocation8 + $0x618] sm:$0xf0]  ;;  %v9956_v14 = vld [vmem:[#allocation11 + $0xa4] sm:$0xf0]  ;;  %v8822_v53 = vor.u32 %v9928_v40, %v8819_v54  ;;  %v9935_v54 = vld [vmem:[#allocation11 + $0x4] sm:$0xf] }
 0x30a   :  { %v8598_v24 = vor.u32 %v9872_v36, %v8595_v35  ;;  %v8922_v21 = vor.u32 %v9956_v14, %v8921_v63  ;;  %v9776_v43 = vld [vmem:[#allocation8 + $0x30c] sm:$0xf]  ;;  %v9941_v36 = vld [vmem:[#allocation11 + $0x34] sm:$0xf]  ;;  %v8867_v35 = vld [vmem:[#allocation11 + $0x38] sm:$0xf0] }
 0x30b   :  { %5254 = vmatmul.bf16.vlgmr.msra.gmra.mxu3 %v10687_v10  ;;  %v9796_v10 = vld [vmem:[#allocation8 + $0x3ac] sm:$0xf]  ;;  %v8859_v63 = vld [vmem:[#allocation11 + $0x28] sm:$0xf0] }
 0x30c   :  { %5696 = vmatpush.bf16.msrb.mxu3 %v8898_v62  ;;  %v8294_v41 = vor.u32 %v9796_v10, %v8291_v23  ;;  %v8858_v62 = vor.u32 %v9940_v20, %v8857_v29  ;;  %v9949_v10 = vld [vmem:[#allocation11 + $0x74] sm:$0xf]  ;;  %v8905_v29 = vld [vmem:[#allocation11 + $0x80] sm:$0xf]  ;;  %v9952_v20 = vld [vmem:[#allocation11 + $0x84] sm:$0xf0] }
 0x30d   :  { %5275 = vmatpush.bf16.msra.mxu2 %v8662_v8  ;;  %5710 = vmatpush.bf16.msrb.mxu1 %v8954_v22  ;;  %v5062_v1 = vpop.f32.mrf.mxu1  ;;  %v8227_v8 = vld [vmem:[#allocation8 + $0x338] sm:$0xf0] }
 0x30e   :  { %5235 = vmatpush.bf16.msrb.mxu0 %v8294_v41  ;;  %v10758_v55 = vpop.f32.mrf.mxu3  ;;  %v8230_v34 = vor.u32 %v9780_v46, %v8227_v8  ;;  %v8211_v22 = vld [vmem:[#allocation8 + $0x318] sm:$0xf0]  ;;  %v9947_v41 = vld [vmem:[#allocation11 + $0x64] sm:$0xf]  ;;  %v9924_v1 = vld [vmem:[#allocation8 + $0x7ac] sm:$0xf] }
 0x30f   :  { %v8214_v38 = vor.u32 %v9776_v43, %v8211_v22  ;;  %v8947_v46 = vld [vmem:[#allocation11 + $0xd8] sm:$0xf0]  ;;  %v8939_v43 = vld [vmem:[#allocation11 + $0xc8] sm:$0xf0] }
 0x310   :  { %5697 = vmatpush.bf16.msrb.mxu3 %v8890_v37  ;;  %v8243_v37 = vld [vmem:[#allocation8 + $0x358] sm:$0xf0] }
 0x311   :  { %5276 = vmatpush.bf16.msra.mxu2 %v8646_v32  ;;  %5711 = vmatpush.bf16.msrb.mxu1 %v8946_v44  ;;  %v8246_v51 = vor.u32 %v9784_v6, %v8243_v37  ;;  %v8891_v32 = vld [vmem:[#allocation11 + $0x68] sm:$0xf0]  ;;  %v8906_v44 = vor.u32 %v9952_v20, %v8905_v29  ;;  %v8806_v37 = vor.u32 %v9924_v1, %v8803_v2  ;;  %v9955_v20 = vld [vmem:[#allocation11 + $0xa4] sm:$0xf] }
 0x312   :  { %5236 = vmatpush.bf16.msrb.mxu0 %v8278_v26  ;;  %v8894_v13 = vor.u32 %v9947_v41, %v8891_v32  ;;  %v9945_v26 = vld [vmem:[#allocation11 + $0x54] sm:$0xf]  ;;  %v8846_v2 = vor.u32 %v9935_v54, %v8843_v19  ;;  %v9019_v19 = vld [vmem:[#allocation11 + $0x168] sm:$0xf0] }
 0x313   :  { %v9981_v54 = vld [vmem:[#allocation11 + $0x174] sm:$0xf] }
 0x314   :  { %5698 = vmatpush.bf16.msrb.mxu3 %v8882_v47  ;;  %v9936_v47 = vld [vmem:[#allocation11 + $0x4] sm:$0xf0] }
 0x315   :  { %5277 = vmatpush.bf16.msra.mxu2 %v8630_v50  ;;  %5712 = vmatpush.bf16.msrb.mxu1 %v8938_v48  ;;  %v8842_v23 = vor.u32 %v9936_v47, %v8841_v58  ;;  %v8883_v50 = vld [vmem:[#allocation11 + $0x58] sm:$0xf0]  ;;  %v8875_v48 = vld [vmem:[#allocation11 + $0x48] sm:$0xf0] }
 0x316   :  { %5237 = vmatpush.bf16.msrb.mxu0 %v8262_v3  ;;  %v5049_v18 = vpop.f32.mrf.mxu3  ;;  %v8886_v33 = vor.u32 %v9945_v26, %v8883_v50  ;;  %v9963_v3 = vld [vmem:[#allocation11 + $0xe4] sm:$0xf] }
 0x318   :  { %5699 = vmatpush.bf16.msrb.mxu3 %v8874_v15  ;;  %v8902_v15 = vor.u32 %v9949_v10, %v8899_v16  ;;  %v9939_v16 = vld [vmem:[#allocation11 + $0x24] sm:$0xf] }
 0x319   :  { %5278 = vmatpush.bf16.msra.mxu2 %v8614_v5  ;;  %5713 = vmatpush.bf16.msrb.mxu1 %v8930_v17  ;;  %v8955_v5 = vld [vmem:[#allocation11 + $0xe8] sm:$0xf0]  ;;  %v8870_v17 = vor.u32 %v9941_v36, %v8867_v35  ;;  %v9951_v35 = vld [vmem:[#allocation11 + $0x84] sm:$0xf] }
 0x31a   :  { %5238 = vmatpush.bf16.msrb.mxu0 %v8246_v51  ;;  %v8958_v45 = vor.u32 %v9963_v3, %v8955_v5  ;;  %v10766_v51 = vld [vmem:[#allocation10] sm:$0xf]  ;;  %v9953_v3 = vld [vmem:[#allocation11 + $0x94] sm:$0xf] }
 0x31b   :  { %v8915_v5 = vld [vmem:[#allocation11 + $0x98] sm:$0xf0] }
 0x31c   :  { %5700 = vmatpush.bf16.msrb.mxu3 %v8866_v4  ;;  %v8838_v4 = vor.u32 %v9932_v31, %v8835_v57  ;;  %v4982_v58 = vpop.f32.mrf.mxu0  ;;  %v8774_v31 = vor.u32 %v9916_v42, %v8771_v30  ;;  %v9937_v57 = vld [vmem:[#allocation11 + $0x14] sm:$0xf]  ;;  %v9001_v42 = vld [vmem:[#allocation11 + $0x140] sm:$0xf]  ;;  %v9976_v30 = vld [vmem:[#allocation11 + $0x144] sm:$0xf0] }
 0x31d   :  { %5279 = vmatpush.bf16.msra.mxu2 %v8598_v24  ;;  %5714 = vmatpush.bf16.msrb.mxu1 %v8922_v21  ;;  %v9961_v24 = vld [vmem:[#allocation11 + $0xd4] sm:$0xf]  ;;  %v4983_v8 = vadd.f32 %v4982_v58, %v4970_v12  ;;  %v8854_v50 = vor.u32 %v9937_v57, %v8851_v56  ;;  %v9017_v58 = vld [vmem:[#allocation11 + $0x160] sm:$0xf]  ;;  %v9972_v56 = vld [vmem:[#allocation11 + $0x124] sm:$0xf0] }
 0x31e   :  { %5239 = vmatpush.bf16.msrb.mxu0 %v8230_v34  ;;  %v8950_v18 = vor.u32 %v9961_v24, %v8947_v46  ;;  %v9959_v34 = vld [vmem:[#allocation11 + $0xc4] sm:$0xf]  ;;  %v8985_v57 = vld [vmem:[#allocation11 + $0x120] sm:$0xf] }
 0x31f   :  { %v8942_v22 = vor.u32 %v9959_v34, %v8939_v43 }
 0x320   :  { %5701 = vmatpush.bf16.msrb.mxu3 %v8858_v62  ;;  %5280 = vmatmul.bf16.vlgmr.msra.gmra.mxu2 %v10715_v0  ;;  %v5023_v0 = vpop.f32.mrf.mxu2  ;;  %v9943_v62 = vld [vmem:[#allocation11 + $0x44] sm:$0xf] }
 0x321   :  { %5715 = vmatpush.bf16.msrb.mxu1 %v8914_v25  ;;  %v8878_v6 = vor.u32 %v9943_v62, %v8875_v48  ;;  %v9957_v25 = vld [vmem:[#allocation11 + $0xb4] sm:$0xf]  ;;  %v9025_v0 = vld [vmem:[#allocation11 + $0x170] sm:$0xf]  ;;  %v8739_v62 = vld [vmem:[#allocation8 + $0x738] sm:$0xf0] }
 0x322   :  { %5240 = vmatpush.bf16.msrb.mxu0 %v8214_v38  ;;  %v9912_v38 = vld [vmem:[#allocation8 + $0x74c] sm:$0xf] }
 0x324   :  { %5702 = vmatpush.bf16.msrb.mxu3 %v8850_v11  ;;  %v8787_v11 = vld [vmem:[#allocation8 + $0x798] sm:$0xf0]  ;;  %v4984_v40 = vpop.f32.mrf.mxu0 }
 0x325   :  { %5716 = vmatpush.bf16.msrb.mxu1 %v8906_v44  ;;  %5241 = vmatmul.bf16.vlgmr.msrb.gmra.mxu0 %v10676_v60  ;;  %v5112_v7 = vpop.f32.mrf.mxu1  ;;  %v3596_v60 = vperm.slane %v10766_v51, 2  ;;  %v8790_v10 = vor.u32 %v9920_v9, %v8787_v11  ;;  %v8923_v44 = vld [vmem:[#allocation11 + $0xa8] sm:$0xf0]  ;;  %v5022_v11 = vadd.f32 %v10760_v27, %v10748_v52  ;;  %v9009_v27 = vld [vmem:[#allocation11 + $0x150] sm:$0xf] }
 0x326   :  { %5285 = vmatpush.bf16.msra.mxu0 %v8838_v4  ;;  %v8931_v4 = vld [vmem:[#allocation11 + $0xb8] sm:$0xf0]  ;;  %v8926_v1 = vor.u32 %v9955_v20, %v8923_v44  ;;  %v8907_v9 = vld [vmem:[#allocation11 + $0x88] sm:$0xf0] }
 0x327   :  { %v8934_v29 = vor.u32 %v9957_v25, %v8931_v4  ;;  %v8910_v24 = vor.u32 %v9951_v35, %v8907_v9  ;;  %v8995_v35 = vld [vmem:[#allocation11 + $0x138] sm:$0xf0] }
 0x328   :  { %5703 = vmatpush.bf16.msrb.mxu3 %v8842_v23  ;;  %v10769_v47 = vpop.f32.mrf.mxu2  ;;  %v5298_v23 = vmax.f32 %v4983_v8, 0.0 }
 0x329   :  { %5761 = vmatpush.bf16.msra.mxu1 %v8966_v59 }
 0x32a   :  { %5286 = vmatpush.bf16.msra.mxu0 %v8822_v53  ;;  %v5302_v41 = vpack.c.bf16 %v5298_v23, %v5298_v23  ;;  %v9908_v53 = vld [vmem:[#allocation8 + $0x72c] sm:$0xf] }
 0x32c   :  { %5748 = vmatpush.bf16.msra.mxu3 %v8902_v15  ;;  %v8862_v15 = vor.u32 %v9939_v16, %v8859_v63  ;;  %v5034_v36 = vpop.f32.mrf.mxu0  ;;  %v9978_v16 = vld [vmem:[#allocation11 + $0x154] sm:$0xf0] }
 0x32d   :  { %5762 = vmatpush.bf16.msra.mxu1 %v8958_v45  ;;  %v5114_v32 = vpop.f32.mrf.mxu1  ;;  %5704 = vmatmul.bf16.vlgmr.msrb.gmra.mxu3 %v5302_v41  ;;  %v9904_v45 = vld [vmem:[#allocation8 + $0x70c] sm:$0xf]  ;;  %v9010_v63 = vor.u32 %v9978_v16, %v9009_v27 }
 0x32e   :  { %5287 = vmatpush.bf16.msra.mxu0 %v8806_v37  ;;  %v5099_v14 = vpop.f32.mrf.mxu3  ;;  %v8918_v37 = vor.u32 %v9953_v3, %v8915_v5  ;;  %v9003_v3 = vld [vmem:[#allocation11 + $0x148] sm:$0xf0] }
 0x32f   :  { %v5100_v21 = vadd.f32 %v5099_v14, %v3596_v60  ;;  %v5035_v60 = vadd.f32 %v5034_v36, %v5022_v11  ;;  %v9973_v36 = vld [vmem:[#allocation11 + $0x134] sm:$0xf] }
 0x330   :  { %5749 = vmatpush.bf16.msra.mxu3 %v8894_v13  ;;  %v8755_v13 = vld [vmem:[#allocation8 + $0x758] sm:$0xf0]  ;;  %v5075_v26 = vpop.f32.mrf.mxu2  ;;  %v8998_v11 = vor.u32 %v9973_v36, %v8995_v35 }
 0x331   :  { %5763 = vmatpush.bf16.msra.mxu1 %v8950_v18  ;;  %v10771_v61 = vadd.f32 %v5112_v7, %v5100_v21  ;;  %v8758_v49 = vor.u32 %v9912_v38, %v8755_v13  ;;  %v8723_v7 = vld [vmem:[#allocation8 + $0x718] sm:$0xf0]  ;;  %v5048_v46 = vadd.f32 %v10758_v55, %v5035_v60  ;;  %v8977_v38 = vld [vmem:[#allocation11 + $0x110] sm:$0xf]  ;;  %v8969_v26 = vld [vmem:[#allocation11 + $0x100] sm:$0xf] }
 0x332   :  { %5288 = vmatpush.bf16.msra.mxu0 %v8790_v10  ;;  %v8726_v12 = vor.u32 %v9904_v45, %v8723_v7  ;;  %v9970_v13 = vld [vmem:[#allocation11 + $0x114] sm:$0xf0]  ;;  %v9971_v60 = vld [vmem:[#allocation11 + $0x124] sm:$0xf] }
 0x333   :  { %v5061_v52 = vadd.f32 %v10754_v28, %v5048_v46  ;;  %v9974_v28 = vld [vmem:[#allocation11 + $0x134] sm:$0xf0]  ;;  %v8978_v40 = vor.u32 %v9970_v13, %v8977_v38 }
 0x334   :  { %5750 = vmatpush.bf16.msra.mxu3 %v8886_v33  ;;  %v9982_v33 = vld [vmem:[#allocation11 + $0x174] sm:$0xf0]  ;;  %v5036_v18 = vpop.f32.mrf.mxu0 }
 0x335   :  { %5764 = vmatpush.bf16.msra.mxu1 %v8942_v22  ;;  %v9026_v48 = vor.u32 %v9982_v33, %v9025_v0  ;;  %v5074_v55 = vadd.f32 %v10769_v47, %v5061_v52  ;;  %v8993_v22 = vld [vmem:[#allocation11 + $0x130] sm:$0xf]  ;;  %v8986_v47 = vor.u32 %v9972_v56, %v8985_v57  ;;  %v9065_v56 = vld [vmem:[#allocation11 + $0x1c0] sm:$0xf] }
 0x336   :  { %5289 = vmatpush.bf16.msra.mxu0 %v8774_v31  ;;  %v5101_v59 = vpop.f32.mrf.mxu3  ;;  %v9089_v18 = vld [vmem:[#allocation11 + $0x1f0] sm:$0xf] }
 0x337   :  { %5722 = vmatpush.bf16.msrb.mxu2 %v9026_v48  ;;  %v9977_v59 = vld [vmem:[#allocation11 + $0x154] sm:$0xf] }
 0x338   :  { %5751 = vmatpush.bf16.msra.mxu3 %v8878_v6  ;;  %v8742_v6 = vor.u32 %v9908_v53, %v8739_v62  ;;  %v9011_v53 = vld [vmem:[#allocation11 + $0x158] sm:$0xf0] }
 0x339   :  { %5765 = vmatpush.bf16.msra.mxu1 %v8934_v29  ;;  %v9027_v29 = vld [vmem:[#allocation11 + $0x178] sm:$0xf0]  ;;  %v9014_v62 = vor.u32 %v9977_v59, %v9011_v53  ;;  %v9033_v53 = vld [vmem:[#allocation11 + $0x180] sm:$0xf] }
 0x33a   :  { %5290 = vmatpush.bf16.msra.mxu0 %v8758_v49  ;;  %v9030_v44 = vor.u32 %v9981_v54, %v9027_v29  ;;  %v9979_v49 = vld [vmem:[#allocation11 + $0x164] sm:$0xf]  ;;  %v9988_v29 = vld [vmem:[#allocation11 + $0x1a4] sm:$0xf0] }
 0x33b   :  { %v9022_v0 = vor.u32 %v9979_v49, %v9019_v19  ;;  %v9041_v49 = vld [vmem:[#allocation11 + $0x190] sm:$0xf]  ;;  %v9986_v19 = vld [vmem:[#allocation11 + $0x194] sm:$0xf0] }
 0x33c   :  { %5752 = vmatpush.bf16.msra.mxu3 %v8870_v17  ;;  %v9980_v17 = vld [vmem:[#allocation11 + $0x164] sm:$0xf0]  ;;  %v10780_v14 = vpop.f32.mrf.mxu2  ;;  %v9042_v59 = vor.u32 %v9986_v19, %v9041_v49  ;;  %v9155_v19 = vld [vmem:[#allocation14 + $0x78] sm:$0xf0] }
 0x33d   :  { %5766 = vmatpush.bf16.msra.mxu1 %v8926_v1  ;;  %v9018_v8 = vor.u32 %v9980_v17, %v9017_v58  ;;  %v3597_v1 = vperm.slane %v10766_v51, 3  ;;  %v9969_v51 = vld [vmem:[#allocation11 + $0x114] sm:$0xf]  ;;  %v8979_v58 = vld [vmem:[#allocation11 + $0x118] sm:$0xf0] }
 0x33e   :  { %5291 = vmatpush.bf16.msra.mxu0 %v8742_v6  ;;  %v8982_v16 = vor.u32 %v9969_v51, %v8979_v58  ;;  %v9059_v51 = vld [vmem:[#allocation11 + $0x1b8] sm:$0xf0] }
 0x33f   :  { %5723 = vmatpush.bf16.msrb.mxu2 %v9018_v8  ;;  %v5086_v23 = vpop.f32.mrf.mxu0  ;;  %v9998_v8 = vld [vmem:[#allocation11 + $0x1f4] sm:$0xf0] }
 0x340   :  { %5753 = vmatpush.bf16.msra.mxu3 %v8862_v15  ;;  %v5087_v34 = vadd.f32 %v5086_v23, %v5074_v55  ;;  %v9090_v27 = vor.u32 %v9998_v8, %v9089_v18  ;;  %v8971_v55 = vld [vmem:[#allocation11 + $0x108] sm:$0xf0] }
 0x341   :  { %5767 = vmatpush.bf16.msra.mxu1 %v8918_v37  ;;  %v9051_v18 = vld [vmem:[#allocation11 + $0x1a8] sm:$0xf0] }
 0x342   :  { %5292 = vmatpush.bf16.msra.mxu0 %v8726_v12  ;;  %v5299_v43 = vmax.f32 %v5087_v34, 0.0  ;;  %v9996_v34 = vld [vmem:[#allocation11 + $0x1e4] sm:$0xf0] }
 0x343   :  { %5724 = vmatpush.bf16.msrb.mxu2 %v9010_v63  ;;  %v9967_v63 = vld [vmem:[#allocation11 + $0x104] sm:$0xf] }
 0x344   :  { %5754 = vmatpush.bf16.msra.mxu3 %v8854_v50  ;;  %v5303_v32 = vpack.c.bf16 %v5299_v43, %v5299_v43  ;;  %v5127_v31 = vpop.f32.mrf.mxu2  ;;  %v9968_v50 = vld [vmem:[#allocation11 + $0x104] sm:$0xf0] }
 0x345   :  { %5768 = vmatpush.bf16.msra.mxu1 %v8910_v24  ;;  %5293 = vmatmul.bf16.vlgmr.msra.gmra.mxu0 %v10726_v39  ;;  %v10777_v10 = vpop.f32.mrf.mxu1  ;;  %v9002_v39 = vor.u32 %v9976_v30, %v9001_v42  ;;  %v8970_v20 = vor.u32 %v9968_v50, %v8969_v26  ;;  %v8987_v24 = vld [vmem:[#allocation11 + $0x128] sm:$0xf0]  ;;  %v8974_v42 = vor.u32 %v9967_v63, %v8971_v55  ;;  %v9043_v63 = vld [vmem:[#allocation11 + $0x198] sm:$0xf0] }
 0x346   :  { %5717 = vmatmul.bf16.vlgmr.msrb.gmra.mxu1 %v5303_v32  ;;  %v8990_v46 = vor.u32 %v9971_v60, %v8987_v24  ;;  %5735 = vmatpush.bf16.msrb.mxu0 %v9090_v27  ;;  %v5126_v30 = vadd.f32 %v10780_v14, %v10771_v61  ;;  %v9992_v61 = vld [vmem:[#allocation11 + $0x1c4] sm:$0xf0] }
 0x347   :  { %5725 = vmatpush.bf16.msrb.mxu2 %v9002_v39  ;;  %v5088_v25 = vpop.f32.mrf.mxu0  ;;  %v9081_v39 = vld [vmem:[#allocation11 + $0x1e0] sm:$0xf] }
 0x348   :  { %5755 = vmatpush.bf16.msra.mxu3 %v8846_v2  ;;  %v9975_v2 = vld [vmem:[#allocation11 + $0x144] sm:$0xf]  ;;  %v9057_v25 = vld [vmem:[#allocation11 + $0x1b0] sm:$0xf] }
 0x349   :  { %v9006_v6 = vor.u32 %v9975_v2, %v9003_v3  ;;  %v9091_v2 = vld [vmem:[#allocation11 + $0x1f8] sm:$0xf0] }
 0x34b   :  { %5756 = vmatmul.bf16.vlgmr.msra.gmra.mxu3 %v5302_v41  ;;  %v8994_v41 = vor.u32 %v9974_v28, %v8993_v22  ;;  %v9073_v22 = vld [vmem:[#allocation11 + $0x1d0] sm:$0xf]  ;;  %v9994_v28 = vld [vmem:[#allocation11 + $0x1d4] sm:$0xf0] }
 0x34c   :  { %v9074_v31 = vor.u32 %v9994_v28, %v9073_v22 }
 0x34d   :  { %v5166_v15 = vpop.f32.mrf.mxu1  ;;  %5726 = vmatpush.bf16.msrb.mxu2 %v8994_v41 }
 0x34e   :  { %v10783_v21 = vpop.f32.mrf.mxu3  ;;  %v9082_v15 = vor.u32 %v9996_v34, %v9081_v39 }
 0x350   :  { %5736 = vmatpush.bf16.msrb.mxu0 %v9082_v15 }
 0x351   :  { %5727 = vmatpush.bf16.msrb.mxu2 %v8986_v47  ;;  %v9066_v47 = vor.u32 %v9992_v61, %v9065_v56 }
 0x354   :  { %5737 = vmatpush.bf16.msrb.mxu0 %v9074_v31 }
 0x355   :  { %5728 = vmatpush.bf16.msrb.mxu2 %v8978_v40 }
 0x356   :  { %v5153_v4 = vpop.f32.mrf.mxu3  ;;  %5769 = vmatmul.bf16.vlgmr.msra.gmra.mxu1 %v5303_v32 }
 0x357   :  { %v9990_v4 = vld [vmem:[#allocation11 + $0x1b4] sm:$0xf0] }
 0x358   :  { %5738 = vmatpush.bf16.msrb.mxu0 %v9066_v47  ;;  %v9058_v50 = vor.u32 %v9990_v4, %v9057_v25 }
 0x359   :  { %5729 = vmatpush.bf16.msrb.mxu2 %v8970_v20 }
 0x35c   :  { %5739 = vmatpush.bf16.msrb.mxu0 %v9058_v50 }
 0x35d   :  { %5774 = vmatpush.bf16.msra.mxu2 %v9030_v44 }
 0x35e   :  { %v5177_v48 = vpop.f32.mrf.mxu2 }
 0x35f   :  { %v5138_v5 = vpop.f32.mrf.mxu0 }
 0x360   :  { %v5139_v23 = vadd.f32 %v5138_v5, %v5126_v30  ;;  %v9995_v5 = vld [vmem:[#allocation11 + $0x1e4] sm:$0xf]  ;;  %v9035_v30 = vld [vmem:[#allocation11 + $0x188] sm:$0xf0] }
 0x361   :  { %5775 = vmatpush.bf16.msra.mxu2 %v9022_v0 }
 0x362   :  { %v5152_v43 = vadd.f32 %v10783_v21, %v5139_v23 }
 0x364   :  { %v5165_v32 = vadd.f32 %v10777_v10, %v5152_v43  ;;  %v9049_v10 = vld [vmem:[#allocation11 + $0x1a0] sm:$0xf] }
 0x365   :  { %v5216_v33 = vpop.f32.mrf.mxu1  ;;  %5776 = vmatpush.bf16.msra.mxu2 %v9014_v62  ;;  %v9050_v44 = vor.u32 %v9988_v29, %v9049_v10  ;;  %v9984_v62 = vld [vmem:[#allocation11 + $0x184] sm:$0xf0]  ;;  %v9153_v29 = vld [vmem:[#allocation14 + $0x70] sm:$0xf] }
 0x366   :  { %v5179_v12 = vpop.f32.mrf.mxu2  ;;  %v5178_v14 = vadd.f32 %v5177_v48, %v5165_v32  ;;  %v9034_v48 = vor.u32 %v9984_v62, %v9033_v53  ;;  %v10011_v53 = vld [vmem:[#allocation14 + $0x64] sm:$0xf]  ;;  %v9147_v62 = vld [vmem:[#allocation14 + $0x68] sm:$0xf0] }
 0x367   :  { %v5140_v17 = vpop.f32.mrf.mxu0  ;;  %5740 = vmatpush.bf16.msrb.mxu0 %v9050_v44  ;;  %v9067_v12 = vld [vmem:[#allocation11 + $0x1c8] sm:$0xf0]  ;;  %v10013_v44 = vld [vmem:[#allocation14 + $0x74] sm:$0xf] }
 0x368   :  { %v9987_v17 = vld [vmem:[#allocation11 + $0x1a4] sm:$0xf] }
 0x369   :  { %5777 = vmatpush.bf16.msra.mxu2 %v9006_v6  ;;  %v9083_v6 = vld [vmem:[#allocation11 + $0x1e8] sm:$0xf0] }
 0x36b   :  { %5741 = vmatpush.bf16.msrb.mxu0 %v9042_v59  ;;  %v9158_v59 = vor.u32 %v10013_v44, %v9155_v19  ;;  %v10000_v44 = vld [vmem:[#allocation14 + $0x4] sm:$0xf0] }
 0x36d   :  { %v5218_v37 = vpop.f32.mrf.mxu1  ;;  %5778 = vmatpush.bf16.msra.mxu2 %v8998_v11  ;;  %v9991_v11 = vld [vmem:[#allocation11 + $0x1c4] sm:$0xf] }
 0x36e   :  { %v5203_v45 = vpop.f32.mrf.mxu3  ;;  %v9075_v37 = vld [vmem:[#allocation11 + $0x1d8] sm:$0xf0]  ;;  %v9070_v60 = vor.u32 %v9991_v11, %v9067_v12 }
 0x36f   :  { %v5204_v7 = vadd.f32 %v5203_v45, %v3597_v1  ;;  %v9997_v1 = vld [vmem:[#allocation11 + $0x1f4] sm:$0xf]  ;;  %5742 = vmatpush.bf16.msrb.mxu0 %v9034_v48  ;;  %v9086_v45 = vor.u32 %v9995_v5, %v9083_v6  ;;  %v9139_v6 = vld [vmem:[#allocation14 + $0x58] sm:$0xf0] }
 0x370   :  { %v9094_v3 = vor.u32 %v9997_v1, %v9091_v2  ;;  %v9150_v1 = vor.u32 %v10011_v53, %v9147_v62  ;;  %v9137_v2 = vld [vmem:[#allocation14 + $0x50] sm:$0xf]  ;;  %v10009_v5 = vld [vmem:[#allocation14 + $0x54] sm:$0xf]  ;;  %v9219_v11 = vld [vmem:[#allocation14 + $0xf8] sm:$0xf0] }
 0x371   :  { %v10786_v9 = vadd.f32 %v5216_v33, %v5204_v7  ;;  %5779 = vmatpush.bf16.msra.mxu2 %v8990_v46  ;;  %v9993_v7 = vld [vmem:[#allocation11 + $0x1d4] sm:$0xf] }
 0x372   :  { %v9078_v36 = vor.u32 %v9993_v7, %v9075_v37  ;;  %v9989_v46 = vld [vmem:[#allocation11 + $0x1b4] sm:$0xf]  ;;  %v10030_v7 = vld [vmem:[#allocation14 + $0xf4] sm:$0xf0] }
 0x373   :  { %5787 = vmatpush.bf16.msra.mxu0 %v9094_v3  ;;  %v9062_v58 = vor.u32 %v9989_v46, %v9059_v51  ;;  %v10010_v3 = vld [vmem:[#allocation14 + $0x54] sm:$0xf0]  ;;  %v10008_v46 = vld [vmem:[#allocation14 + $0x44] sm:$0xf0] }
 0x374   :  { %v9138_v37 = vor.u32 %v10010_v3, %v9137_v2 }
 0x375   :  { %5780 = vmatpush.bf16.msra.mxu2 %v8982_v16  ;;  %v9985_v16 = vld [vmem:[#allocation11 + $0x194] sm:$0xf] }
 0x376   :  { %v5205_v52 = vpop.f32.mrf.mxu3  ;;  %v9046_v55 = vor.u32 %v9985_v16, %v9043_v63  ;;  %v9211_v16 = vld [vmem:[#allocation14 + $0xe8] sm:$0xf0] }
 0x377   :  { %5788 = vmatpush.bf16.msra.mxu0 %v9086_v45  ;;  %v9054_v52 = vor.u32 %v9987_v17, %v9051_v18  ;;  %v9217_v45 = vld [vmem:[#allocation14 + $0xf0] sm:$0xf]  ;;  %v10007_v17 = vld [vmem:[#allocation14 + $0x44] sm:$0xf]  ;;  %v9131_v18 = vld [vmem:[#allocation14 + $0x48] sm:$0xf0] }
 0x379   :  { %5781 = vmatpush.bf16.msra.mxu2 %v8974_v42  ;;  %v9983_v42 = vld [vmem:[#allocation11 + $0x184] sm:$0xf] }
 0x37a   :  { %v9038_v39 = vor.u32 %v9983_v42, %v9035_v30  ;;  %v9134_v42 = vor.u32 %v10007_v17, %v9131_v18  ;;  %v9121_v30 = vld [vmem:[#allocation14 + $0x30] sm:$0xf]  ;;  %v10018_v17 = vld [vmem:[#allocation14 + $0x94] sm:$0xf0]  ;;  %v10017_v18 = vld [vmem:[#allocation14 + $0x94] sm:$0xf] }
 0x37b   :  { %5789 = vmatpush.bf16.msra.mxu0 %v9078_v36  ;;  %v9218_v36 = vor.u32 %v10030_v7, %v9217_v45  ;;  %v10021_v45 = vld [vmem:[#allocation14 + $0xb4] sm:$0xf] }
 0x37d   :  { %6015 = vmatpush.bf16.msrb.mxu1 %v9218_v36 }
 0x37f   :  { %v5190_v38 = vpop.f32.mrf.mxu0  ;;  %5790 = vmatpush.bf16.msra.mxu0 %v9070_v60  ;;  %v9142_v60 = vor.u32 %v10009_v5, %v9139_v6  ;;  %v9185_v5 = vld [vmem:[#allocation14 + $0xb0] sm:$0xf]  ;;  %v10022_v6 = vld [vmem:[#allocation14 + $0xb4] sm:$0xf0] }
 0x380   :  { %v5191_v21 = vadd.f32 %v5190_v38, %v5178_v14  ;;  %v5370_v38 = vld [vmem:[#allocation13] sm:$0x3]  ;;  %v9186_v7 = vor.u32 %v10022_v6, %v9185_v5 }
 0x381   :  { %v5372_v25 = vperm.slane %v5370_v38, 0 }
 0x382   :  { %v5300_v40 = vmax.f32 %v5191_v21, 0.0 }
 0x383   :  { %v10794_v57 = vpop.f32.mrf.mxu2  ;;  %5791 = vmatpush.bf16.msra.mxu0 %v9062_v58  ;;  %v9209_v58 = vld [vmem:[#allocation14 + $0xe0] sm:$0xf] }
 0x384   :  { %v5304_v54 = vpack.c.bf16 %v5300_v40, %v5300_v40  ;;  %v5230_v23 = vadd.f32 %v10794_v57, %v10786_v9 }
 0x385   :  { %v10791_v41 = vpop.f32.mrf.mxu1 }
 0x386   :  { %5730 = vmatmul.bf16.vlgmr.msrb.gmra.mxu2 %v5304_v54 }
 0x387   :  { %v5192_v0 = vpop.f32.mrf.mxu0  ;;  %5792 = vmatpush.bf16.msra.mxu0 %v9054_v52  ;;  %6028 = vmatpush.bf16.msrb.mxu2 %v9158_v59  ;;  %v9099_v59 = vld [vmem:[#allocation14 + $0x8] sm:$0xf0] }
 0x388   :  { %v9145_v0 = vld [vmem:[#allocation14 + $0x60] sm:$0xf] }
 0x38b   :  { %v5231_v20 = vpop.f32.mrf.mxu2  ;;  %5793 = vmatpush.bf16.msra.mxu0 %v9046_v55  ;;  %6029 = vmatpush.bf16.msrb.mxu2 %v9150_v1  ;;  %v9195_v1 = vld [vmem:[#allocation14 + $0xc8] sm:$0xf0] }
 0x38c   :  { %v10014_v20 = vld [vmem:[#allocation14 + $0x74] sm:$0xf0] }
 0x38d   :  { %v5270_v26 = vpop.f32.mrf.mxu1  ;;  %v9154_v49 = vor.u32 %v10014_v20, %v9153_v29  ;;  %v9097_v20 = vld [vmem:[#allocation14] sm:$0xf] }
 0x38e   :  { %v10796_v13 = vpop.f32.mrf.mxu3  ;;  %v5373_v26 = vperm.slane %v5370_v38, 1  ;;  %v9105_v38 = vld [vmem:[#allocation14 + $0x10] sm:$0xf]  ;;  %v9098_v19 = vor.u32 %v10000_v44, %v9097_v20 }
 0x38f   :  { %5794 = vmatpush.bf16.msra.mxu0 %v9038_v39  ;;  %6002 = vmatpush.bf16.msrb.mxu3 %v9154_v49  ;;  %v10005_v39 = vld [vmem:[#allocation14 + $0x34] sm:$0xf]  ;;  %v9193_v49 = vld [vmem:[#allocation14 + $0xc0] sm:$0xf]  ;;  %v10040_v20 = vld [vmem:[#allocation17 + $0x48] sm:$0xff] }
 0x390   :  { %6030 = vmatpush.bf16.msrb.mxu2 %v9142_v60  ;;  %v10019_v60 = vld [vmem:[#allocation14 + $0xa4] sm:$0xf] }
 0x394   :  { %6031 = vmatpush.bf16.msrb.mxu2 %v9134_v42 }
 0x396   :  { %v5257_v33 = vpop.f32.mrf.mxu3  ;;  %5782 = vmatmul.bf16.vlgmr.msra.gmra.mxu2 %v5304_v54 }
 0x397   :  { %v10012_v33 = vld [vmem:[#allocation14 + $0x64] sm:$0xf0] }
 0x398   :  { %v9146_v48 = vor.u32 %v10012_v33, %v9145_v0  ;;  %v10024_v0 = vld [vmem:[#allocation14 + $0xc4] sm:$0xf0]  ;;  %v9999_v33 = vld [vmem:[#allocation14 + $0x4] sm:$0xf] }
 0x399   :  { %v9194_v53 = vor.u32 %v10024_v0, %v9193_v49  ;;  %v9102_v62 = vor.u32 %v9999_v33, %v9099_v59 }
 0x39a   :  { %6003 = vmatpush.bf16.msrb.mxu3 %v9146_v48  ;;  %v10023_v48 = vld [vmem:[#allocation14 + $0xc4] sm:$0xf] }
 0x39b   :  { %v9198_v3 = vor.u32 %v10023_v48, %v9195_v1 }
 0x39e   :  { %6004 = vmatpush.bf16.msrb.mxu3 %v9138_v37  ;;  %v9187_v37 = vld [vmem:[#allocation14 + $0xb8] sm:$0xf0] }
 0x39f   :  { %v9190_v36 = vor.u32 %v10021_v45, %v9187_v37 }
 0x3a2   :  { %v5242_v24 = vpop.f32.mrf.mxu0 }
 0x3a3   :  { %v5281_v35 = vpop.f32.mrf.mxu2  ;;  %v5243_v34 = vadd.f32 %v5242_v24, %v5230_v23  ;;  %v9129_v24 = vld [vmem:[#allocation14 + $0x40] sm:$0xf]  ;;  %v10006_v23 = vld [vmem:[#allocation14 + $0x34] sm:$0xf0] }
 0x3a4   :  { %v9130_v63 = vor.u32 %v10008_v46, %v9129_v24  ;;  %v9179_v46 = vld [vmem:[#allocation14 + $0xa8] sm:$0xf0] }
 0x3a5   :  { %v5256_v15 = vadd.f32 %v10796_v13, %v5243_v34  ;;  %v9123_v34 = vld [vmem:[#allocation14 + $0x38] sm:$0xf0] }
 0x3a6   :  { %6005 = vmatpush.bf16.msrb.mxu3 %v9130_v63  ;;  %v10016_v63 = vld [vmem:[#allocation14 + $0x84] sm:$0xf0] }
 0x3a7   :  { %v5269_v22 = vadd.f32 %v10791_v41, %v5256_v15 }
 0x3a9   :  { %v5282_v32 = vadd.f32 %v5281_v35, %v5269_v22  ;;  %v10029_v35 = vld [vmem:[#allocation14 + $0xf4] sm:$0xf]  ;;  %v9126_v22 = vor.u32 %v10005_v39, %v9123_v34  ;;  %v10038_v39 = vld [vmem:[#allocation17 + $0x38] sm:$0xff] }
 0x3aa   :  { %v5244_v27 = vpop.f32.mrf.mxu0  ;;  %v9222_v51 = vor.u32 %v10029_v35, %v9219_v11  ;;  %v9177_v35 = vld [vmem:[#allocation14 + $0xa0] sm:$0xf]  ;;  %v10020_v11 = vld [vmem:[#allocation14 + $0xa4] sm:$0xf0] }
 0x3ab   :  { %v5283_v8 = vpop.f32.mrf.mxu2  ;;  %v10027_v27 = vld [vmem:[#allocation14 + $0xe4] sm:$0xf]  ;;  %6032 = vmatpush.bf16.msrb.mxu2 %v9126_v22  ;;  %v9178_v24 = vor.u32 %v10020_v11, %v9177_v35  ;;  %v10046_v34 = vld [vmem:[#allocation17 + $0x78] sm:$0xff]  ;;  %v10036_v22 = vld [vmem:[#allocation17 + $0x28] sm:$0xff] }
 0x3ac   :  { %v10028_v8 = vld [vmem:[#allocation14 + $0xe4] sm:$0xf0]  ;;  %v9214_v55 = vor.u32 %v10027_v27, %v9211_v16  ;;  %v9161_v16 = vld [vmem:[#allocation14 + $0x80] sm:$0xf] }
 0x3ad   :  { %v9210_v52 = vor.u32 %v10028_v8, %v9209_v58  ;;  %v9169_v58 = vld [vmem:[#allocation14 + $0x90] sm:$0xf]  ;;  %v9162_v42 = vor.u32 %v10016_v63, %v9161_v16 }
 0x3ae   :  { %v9170_v8 = vor.u32 %v10018_v17, %v9169_v58 }
 0x3af   :  { %6016 = vmatpush.bf16.msrb.mxu1 %v9210_v52  ;;  %v9171_v52 = vld [vmem:[#allocation14 + $0x98] sm:$0xf0] }
 0x3b0   :  { %v5705_v43 = vpop.f32.mrf.mxu3  ;;  %v9174_v27 = vor.u32 %v10017_v18, %v9171_v52 }
 0x3b1   :  { %v5706_v57 = vadd.f32 %v5705_v43, %v5372_v25  ;;  %v9122_v43 = vor.u32 %v10006_v23, %v9121_v30  ;;  %v9201_v25 = vld [vmem:[#allocation14 + $0xd0] sm:$0xf]  ;;  %v9163_v30 = vld [vmem:[#allocation14 + $0x88] sm:$0xf0] }
 0x3b3   :  { %6006 = vmatpush.bf16.msrb.mxu3 %v9122_v43  ;;  %v10037_v43 = vld [vmem:[#allocation17 + $0x30] sm:$0xff] }
 0x3b8   :  { %v5707_v28 = vpop.f32.mrf.mxu3 }
 0x3b9   :  { %v9113_v28 = vld [vmem:[#allocation14 + $0x20] sm:$0xf] }
 0x3c2   :  { %v5294_v31 = vpop.f32.mrf.mxu0 }
 0x3c3   :  { %v5295_v56 = vadd.f32 %v5294_v31, %v5282_v32  ;;  %v5718_v4 = vpop.f32.mrf.mxu1  ;;  %v10004_v32 = vld [vmem:[#allocation14 + $0x24] sm:$0xf0]  ;;  %v10003_v31 = vld [vmem:[#allocation14 + $0x24] sm:$0xf] }
 0x3c4   :  { %v10802_v40 = vadd.f32 %v5718_v4, %v5706_v57  ;;  %v10026_v57 = vld [vmem:[#allocation14 + $0xd4] sm:$0xf0]  ;;  %v10001_v4 = vld [vmem:[#allocation14 + $0x14] sm:$0xf] }
 0x3c5   :  { %v5301_v61 = vmax.f32 %v5295_v56, 0.0  ;;  %v9115_v56 = vld [vmem:[#allocation14 + $0x28] sm:$0xf0] }
 0x3c7   :  { %v5305_v14 = vpack.c.bf16 %v5301_v61, %v5301_v61  ;;  %v9114_v61 = vor.u32 %v10004_v32, %v9113_v28  ;;  %v10044_v28 = vld [vmem:[#allocation17 + $0x68] sm:$0xff] }
 0x3c9   :  { %5743 = vmatmul.bf16.vlgmr.msrb.gmra.mxu0 %v5305_v14  ;;  %6007 = vmatpush.bf16.msrb.mxu3 %v9114_v61  ;;  %v10035_v61 = vld [vmem:[#allocation17 + $0x20] sm:$0xff] }
 0x3ca   :  { %v5296_v21 = vpop.f32.mrf.mxu0  ;;  %6041 = vmatpush.bf16.msrb.mxu0 %v9222_v51  ;;  %v9182_v51 = vor.u32 %v10019_v60, %v9179_v46  ;;  %v10067_v60 = vld [vmem:[#allocation19] ss:$0 sm:$0xff] }
 0x3cb   :  { %v5720_v13 = vpop.f32.mrf.mxu1  ;;  %v10002_v21 = vld [vmem:[#allocation14 + $0x14] sm:$0xf0] }
 0x3cc   :  { %v9107_v13 = vld [vmem:[#allocation14 + $0x18] sm:$0xf0] }
 0x3ce   :  { %v5757_v47 = vpop.f32.mrf.mxu3  ;;  %6042 = vmatpush.bf16.msrb.mxu0 %v9214_v55  ;;  %v10015_v55 = vld [vmem:[#allocation14 + $0x84] sm:$0xf] }
 0x3cf   :  { %v5758_v41 = vadd.f32 %v5757_v47, %v5373_v26  ;;  %v9202_v26 = vor.u32 %v10026_v57, %v9201_v25  ;;  %v9166_v23 = vor.u32 %v10015_v55, %v9163_v30 }
 0x3d1   :  { %6017 = vmatpush.bf16.msrb.mxu1 %v9202_v26  ;;  %v10034_v26 = vld [vmem:[#allocation17 + $0x18] sm:$0xff] }
 0x3d3   :  { %v5770_v50 = vpop.f32.mrf.mxu1 }
 0x3d4   :  { %v10804_v54 = vadd.f32 %v5770_v50, %v5758_v41  ;;  %v9110_v41 = vor.u32 %v10001_v4, %v9107_v13  ;;  %v10025_v50 = vld [vmem:[#allocation14 + $0xd4] sm:$0xf] }
 0x3d5   :  { %6018 = vmatpush.bf16.msrb.mxu1 %v9194_v53 }
 0x3d6   :  { %v5759_v9 = vpop.f32.mrf.mxu3 }
 0x3d7   :  { %v9106_v9 = vor.u32 %v10002_v21, %v9105_v38 }
 0x3d9   :  { %5795 = vmatmul.bf16.vlgmr.msra.gmra.mxu0 %v5305_v14  ;;  %v9118_v14 = vor.u32 %v10003_v31, %v9115_v56  ;;  %6008 = vmatpush.bf16.msrb.mxu3 %v9106_v9 }
 0x3da   :  { %6019 = vmatpush.bf16.msrb.mxu1 %v9186_v7 }
 0x3db   :  { %v5772_v10 = vpop.f32.mrf.mxu1  ;;  %6033 = vmatpush.bf16.msrb.mxu2 %v9118_v14  ;;  %v10043_v14 = vld [vmem:[#allocation17 + $0x60] sm:$0xff] }
 0x3dc   :  { %v9203_v10 = vld [vmem:[#allocation14 + $0xd8] sm:$0xf0] }
 0x3dd   :  { %v9206_v29 = vor.u32 %v10025_v50, %v9203_v10  ;;  %6009 = vmatpush.bf16.msrb.mxu3 %v9098_v19  ;;  %v10033_v50 = vld [vmem:[#allocation17 + $0x10] sm:$0xff]  ;;  %v5836_v19 = vld [vmem:[#allocation16] sm:$0x3] }
 0x3de   :  { %6020 = vmatpush.bf16.msrb.mxu1 %v9178_v24  ;;  %v10041_v10 = vld [vmem:[#allocation17 + $0x50] sm:$0xff]  ;;  %v5838_v0 = vperm.slane %v5836_v19, 0  ;;  %v5839_v33 = vperm.slane %v5836_v19, 1 }
 0x3df   :  { %6034 = vmatpush.bf16.msrb.mxu2 %v9110_v41  ;;  %6043 = vmatpush.bf16.msrb.mxu0 %v9206_v29  ;;  %v10042_v41 = vld [vmem:[#allocation17 + $0x58] sm:$0xff]  ;;  %v10032_v29 = vld [vmem:[#allocation17 + $0x8] sm:$0xff] }
 0x3e1   :  { %6190 = vmatpush.bf16.msra.mxu3 %v10038_v39 }
 0x3e2   :  { %6021 = vmatpush.bf16.msrb.mxu1 %v9170_v8 }
 0x3e3   :  { %6035 = vmatpush.bf16.msrb.mxu2 %v9102_v62  ;;  %6044 = vmatpush.bf16.msrb.mxu0 %v9198_v3 }
 0x3e5   :  { %6191 = vmatpush.bf16.msra.mxu3 %v10037_v43 }
 0x3e6   :  { %6022 = vmatpush.bf16.msrb.mxu1 %v9162_v42 }
 0x3e7   :  { %6045 = vmatpush.bf16.msrb.mxu0 %v9190_v36 }
 0x3e9   :  { %6192 = vmatpush.bf16.msra.mxu3 %v10036_v22 }
 0x3ea   :  { %6203 = vmatpush.bf16.msra.mxu1 %v10046_v34 }
 0x3eb   :  { %6046 = vmatpush.bf16.msrb.mxu0 %v9182_v51 }
 0x3ed   :  { %6193 = vmatpush.bf16.msra.mxu3 %v10035_v61 }
 0x3ef   :  { %6047 = vmatpush.bf16.msrb.mxu0 %v9174_v27 }
 0x3f1   :  { %6194 = vmatpush.bf16.msra.mxu3 %v10034_v26 }
 0x3f3   :  { %6048 = vmatpush.bf16.msrb.mxu0 %v9166_v23 }
 0x3f5   :  { %6195 = vmatpush.bf16.msra.mxu3 %v10033_v50 }
 0x3f9   :  { %6196 = vmatpush.bf16.msra.mxu3 %v10032_v29 }
 0x409   :  { %v10806_v12 = vpop.f32.mrf.mxu2 }
 0x40a   :  { %v5732_v32 = vadd.f32 %v10806_v12, %v10802_v40 }
 0x411   :  { %v5733_v15 = vpop.f32.mrf.mxu2 }
 0x412   :  { %v10045_v15 = vld [vmem:[#allocation17 + $0x70] sm:$0xff] }
 0x413   :  { %6204 = vmatpush.bf16.msra.mxu1 %v10045_v15 }
 0x417   :  { %6205 = vmatpush.bf16.msra.mxu1 %v10044_v28 }
 0x419   :  { %v10808_v47 = vpop.f32.mrf.mxu2 }
 0x41a   :  { %v5784_v9 = vadd.f32 %v10808_v47, %v10804_v54  ;;  %v10031_v54 = vld [vmem:[#allocation17] sm:$0xff] }
 0x41b   :  { %6206 = vmatpush.bf16.msra.mxu1 %v10043_v14  ;;  %v10039_v47 = vld [vmem:[#allocation17 + $0x40] sm:$0xff]  ;;  %6197 = vmatpush.bf16.msra.mxu3 %v10031_v54 }
 0x41f   :  { %6207 = vmatpush.bf16.msra.mxu1 %v10042_v41 }
 0x421   :  { %v5785_v2 = vpop.f32.mrf.mxu2 }
 0x423   :  { %6208 = vmatpush.bf16.msra.mxu1 %v10041_v10 }
 0x427   :  { %6209 = vmatpush.bf16.msra.mxu1 %v10040_v20 }
 0x42b   :  { %6210 = vmatpush.bf16.msra.mxu1 %v10039_v47 }
 0x446   :  { %v5744_v31 = vpop.f32.mrf.mxu0 }
 0x447   :  { %v5745_v56 = vadd.f32 %v5744_v31, %v5732_v32 }
 0x449   :  { %v5800_v38 = vmax.f32 %v5745_v56, 0.0 }
 0x44b   :  { %v5802_v21 = vpack.c.bf16 %v5800_v38, %v5800_v38 }
 0x44d   :  { %6010 = vmatmul.bf16.vlgmr.msrb.gmra.mxu3 %v5802_v21  ;;  %6036 = vmatmul.bf16.vlgmr.msrb.gmra.mxu2 %v5802_v21 }
 0x44e   :  { %v5746_v25 = vpop.f32.mrf.mxu0 }
 0x456   :  { %v5796_v57 = vpop.f32.mrf.mxu0 }
 0x457   :  { %v5797_v4 = vadd.f32 %v5796_v57, %v5784_v9 }
 0x459   :  { %v5801_v13 = vmax.f32 %v5797_v4, 0.0 }
 0x45b   :  { %v5803_v40 = vpack.c.bf16 %v5801_v13, %v5801_v13 }
 0x45d   :  { %6023 = vmatmul.bf16.vlgmr.msrb.gmra.mxu1 %v5803_v40  ;;  %6049 = vmatmul.bf16.vlgmr.msrb.gmra.mxu0 %v5803_v40 }
 0x45e   :  { %v5798_v12 = vpop.f32.mrf.mxu0 }
 0x4d0   :  { %v6011_v44 = vpop.f32.mrf.mxu3  ;;  %v6037_v49 = vpop.f32.mrf.mxu2 }
 0x4d1   :  { %v6012_v62 = vadd.f32 %v6011_v44, %v5838_v0  ;;  %v6038_v48 = vadd.f32 %v6037_v49, %v5839_v33 }
 0x4d8   :  { %v6013_v59 = vpop.f32.mrf.mxu3  ;;  %v6039_v53 = vpop.f32.mrf.mxu2 }
 0x4da   :  { %v6024_v1 = vpop.f32.mrf.mxu1  ;;  %v6050_v2 = vpop.f32.mrf.mxu0 }
 0x4db   :  { %v6025_v3 = vadd.f32 %v6024_v1, %v6012_v62  ;;  %v6051_v5 = vadd.f32 %v6050_v2, %v6038_v48 }
 0x4dd   :  { %v6054_v6 = vmax.f32 %v6025_v3, 0.0  ;;  %v6055_v45 = vmax.f32 %v6051_v5, 0.0 }
 0x4df   :  { %v6056_v7 = vpack.c.bf16 %v6054_v6, %v6054_v6  ;;  %v6057_v37 = vpack.c.bf16 %v6055_v45, %v6055_v45 }
 0x4e1   :  { %6198 = vmatmul.bf16.vlgmr.msra.gmra.mxu3 %v6056_v7  ;;  %6211 = vmatmul.bf16.vlgmr.msra.gmra.mxu1 %v6057_v37 }
 0x4e2   :  { %v6026_v36 = vpop.f32.mrf.mxu1  ;;  %v6052_v35 = vpop.f32.mrf.mxu0 }
 0x55e   :  { %v6212_v11 = vpop.f32.mrf.mxu1 }
 0x564   :  { %v6199_v24 = vpop.f32.mrf.mxu3 }
 0x565   :  { %v6200_v46 = vadd.f32 %v10067_v60, %v6199_v24 }
 0x566   :  { %v6214_v51 = vpop.f32.mrf.mxu1 }
 0x567   :  { %v6213_v58 = vadd.f32 %v6212_v11, %v6200_v46 }
 0x569   :  { %6216 = vst [vmem:[#allocation20] sm:$0xf] %v6213_v58 }
 0x56a   :  { %6227 = dma.vmem_to_hbm [thread:$0]  %s6223_s10, 64, %s6225_s1, [#allocation4]  }
 0x56c   :  { %v6201_v17 = vpop.f32.mrf.mxu3 }
 0x56d   :  { %10385 = dma.done.wait [#allocation4], 64  }
 0x56e   :  { %10386 = vsyncadd [#allocation4], 4294967232 }
 0x56f   :  { %6232 = vsyncpa [#allocation3], 1 }
 0x570   :  { %6233 = vsyncpa [#allocation6], 1 }
 0x571   :  { %6234 = vsyncpa [#allocation9], 1 }
 0x572   :  { %6235 = vsyncpa [#allocation12], 1 }
 0x573   :  { %6236 = vsyncpa [#allocation15], 1 }
 0x574   :  { %6237 = vsyncpa [#allocation18], 1 }
 0x575   :  { %6238 = vsyncpa [#allocation4], 1 }

</bundles_post_ra>
